<compile_context>
chip_gen: v7x
topology: tpu7x:2x2x1
jax: 0.10.0
libtpu: 0.0.40
codegen_flags: <defaults>
</compile_context>

<pallas_src>
import functools

import jax
import jax.numpy as jnp
import numpy as np
from jax.experimental import pallas as pl
from jax.experimental.pallas import tpu as pltpu

LANES = 128  # output-channel padding width (TPU lane dimension)


def _round_up(x, m):
    return (x + m - 1) // m * m


# ------------------------------ fused kernel --------------------------------
def _vgg_features_kernel(xcol_ref, w1_ref, b1_ref, w2_ref, b2_ref, o_ref,
                         halo_ref, *, BB, H, W, C1):
    """One grid step runs BB images end-to-end (features -> pooled vector)."""
    # xcol_ref: (BB, H*W, K1P)       bf16  conv1 im2col (K = 9*Cin padded)
    # w1_ref  : (K1P, 128)           bf16  conv1 weight (K pad, Cout pad)
    # b1_ref  : (1, 128)             f32
    # w2_ref  : (3, 3*C1, 128)       bf16  conv2 weights packed per dy (dx-major)
    # b2_ref  : (1, 128)             f32
    # o_ref   : (1, BB, 128)         f32   per-image pooled feature vectors
    # halo_ref: (BB, H/2+2, WP, C1)  bf16  zero-border conv2 input (scratch)
    CP = o_ref.shape[-1]
    WP = halo_ref.shape[2]
    H2, W2 = H // 2, W // 2
    H4, W4 = H2 // 2, W2 // 2

    # ---- conv1: one lane-dense im2col matmul over the whole image block.
    k1p = xcol_ref.shape[-1]
    a1 = jnp.dot(xcol_ref[...].reshape(BB * H * W, k1p), w1_ref[...],
                 preferred_element_type=jnp.float32)
    a1 = jnp.maximum(a1 + b1_ref[...], 0.0)                 # (BB*H*W, CP)

    # ---- fused 2x2/2 max pool (x-pairs, then y-pairs; layout-preserving)
    t = a1.reshape(BB * H * W2, 2, CP)
    h = jnp.maximum(t[:, 0, :], t[:, 1, :])                 # (BB*H*W2, CP)
    t = h.reshape(BB * H2, 2, W2, CP)
    pooled1 = jnp.maximum(t[:, 0], t[:, 1])                 # (BB*H2, W2, CP)

    # ---- stage pooled map into the bf16 halo buffer (pad=1 for conv2).
    # Only the 1-pixel border is zeroed (interior is fully rewritten below).
    # NOTE: scratch is uninitialized and the grid axis is "parallel", so a
    # one-time program_id==0 init would be wrong on v7x (two TensorCores);
    # re-zeroing the tiny border every step is megacore-safe.
    zrow = jnp.zeros((BB, 1, WP, C1), halo_ref.dtype)
    halo_ref[:, 0:1, :, :] = zrow
    halo_ref[:, H2 + 1:H2 + 2, :, :] = zrow
    zcol = jnp.zeros((BB, H2 + 2, 1, C1), halo_ref.dtype)
    halo_ref[:, :, 0:1, :] = zcol
    halo_ref[:, :, W2 + 1:W2 + 2, :] = zcol
    halo_ref[:, 1:H2 + 1, 1:W2 + 1, :] = (
        pooled1[:, :, :C1].reshape(BB, H2, W2, C1).astype(halo_ref.dtype))

    # ---- conv2: taps packed along K. For each kernel row dy, the three dx
    # windows (C1 real channels each) are lane-concatenated into a K=3*C1
    # patch -> 3 dense MXU matmuls instead of 9 mostly-zero K=128 ones.
    a2 = jnp.zeros((BB * H2 * W2, CP), jnp.float32)
    for dy in range(3):
        patch = jnp.concatenate(
            [halo_ref[:, dy:dy + H2, dx:dx + W2, :].reshape(BB * H2 * W2, C1)
             for dx in range(3)],
            axis=-1)                                         # (BB*H2*W2, 3*C1)
        a2 = a2 + jnp.dot(patch, w2_ref[dy],
                          preferred_element_type=jnp.float32)
    a2 = jnp.maximum(a2 + b2_ref[...], 0.0)                  # (BB*H2*W2, CP)

    # ---- second fused 2x2/2 max pool
    t = a2.reshape(BB * H2 * W4, 2, CP)
    h = jnp.maximum(t[:, 0, :], t[:, 1, :])                  # (BB*H2*W4, CP)
    t = h.reshape(BB * H4, 2, W4, CP)
    pooled2 = jnp.maximum(t[:, 0], t[:, 1])                  # (BB*H4, W4, CP)

    # ---- AdaptiveAvgPool2d((1,1)) per image; single lane-dense output store.
    inv = 1.0 / float(H4 * W4)
    p2 = pooled2.reshape(BB, H4 * W4, CP)
    g = jnp.concatenate(
        [jnp.sum(p2[b], axis=0, keepdims=True) for b in range(BB)], axis=0)
    o_ref[...] = (g * inv).reshape(1, BB, CP).astype(o_ref.dtype)


def _vgg_features(xcol, w1p, b1p, w2p, b2p, *, BB, H, W, C1, vmem_limit):
    Npad, HW, K1P = xcol.shape
    G = Npad // BB
    H2, W2 = H // 2, W // 2
    WP = _round_up(W2 + 2, 16)           # whole bf16 sublane tiles per halo row
    kernel = functools.partial(_vgg_features_kernel, BB=BB, H=H, W=W, C1=C1)
    return pl.pallas_call(
        kernel,
        out_shape=jax.ShapeDtypeStruct((G, BB, LANES), jnp.float32),
        grid=(G,),
        in_specs=[
            pl.BlockSpec((BB, HW, K1P), lambda n: (n, 0, 0)),       # im2col
            # TODO(synk): mark the constant-index weight/bias specs with
            # pipeline_mode=pl.Buffered(1) to drop their dead second buffer
            # (v7x VMEM headroom) once single-buffer pipelining is guaranteed.
            pl.BlockSpec((K1P, LANES), lambda n: (0, 0)),           # w1
            pl.BlockSpec((1, LANES), lambda n: (0, 0)),             # b1
            pl.BlockSpec((3, 3 * C1, LANES), lambda n: (0, 0, 0)),  # w2 packed
            pl.BlockSpec((1, LANES), lambda n: (0, 0)),             # b2
        ],
        out_specs=pl.BlockSpec((1, BB, LANES), lambda n: (n, 0, 0)),
        scratch_shapes=[pltpu.VMEM((BB, H2 + 2, WP, C1), jnp.bfloat16)],
        compiler_params=pltpu.CompilerParams(
            dimension_semantics=("parallel",),
            vmem_limit_bytes=vmem_limit),
    )(xcol, w1p, b1p, w2p, b2p)


# ------------------------------ sizing helpers --------------------------------
def _vmem_estimate(bb, H, W, k1p, c1, cp=LANES):
    """Rough per-step VMEM footprint (bytes) for a block of `bb` images."""
    H2, W2 = H // 2, W // 2
    wp = _round_up(W2 + 2, 16)
    per_img = (2 * H * W * k1p * 2          # xcol block (bf16, double-buffered)
               + 2 * H * W * cp * 4         # a1 + pooling temporaries (f32)
               + (H2 + 2) * wp * c1 * 2     # halo slot (bf16)
               + H2 * W2 * 3 * c1 * 2       # packed conv2 patch (bf16)
               + 2 * H2 * W2 * cp * 4       # a2 + pooling temporaries (f32)
               + 2 * cp * 4)                # pooled output rows (f32)
    weights = 2 * ((k1p * cp + 3 * 3 * c1 * cp) * 2 + 2 * cp * 4)
    return weights + bb * per_img


def _choose_batch_block(N, H, W, k1p, c1, budget_bytes=24 << 20):
    """Images per grid step: amortize per-step overhead, stay inside a VMEM
    budget that also fits v7x (64 MiB physical), and keep >= 2 grid steps when
    N >= 2 so the "parallel" axis feeds both v7x TensorCores."""
    bb = 1
    while (bb < 8 and 2 * bb <= N
           and _vmem_estimate(2 * bb, H, W, k1p, c1) <= budget_bytes):
        bb *= 2
    if N >= 2:
        bb = min(bb, -(-N // 2))
    return max(1, bb)


# ------------------------------ wrapper glue ---------------------------------
def _prep_inputs(x_nchw, params, k1p, bb):
    """NCHW input -> lane-dense bf16 im2col + padded/packed bf16 weights."""
    N, Cin, H, W = x_nchw.shape
    w1, b1 = params["w1"], params["b1"]                      # HWIO, (C1,)
    w2, b2 = params["w2"], params["b2"]
    kh, kw, _, c1 = w1.shape
    c2 = w2.shape[-1]

    assert (kh, kw) == (3, 3) and w2.shape[:2] == (3, 3), "3x3 convs only"
    assert H % 4 == 0 and W % 4 == 0, "both 2x2 pools need even spatial dims"
    assert 9 * Cin <= LANES and c1 <= LANES and c2 <= LANES, (
        "this instantiation requires 9*Cin, C1, C2 <= 128")
    assert w2.shape[2] == c1

    k1 = kh * kw * Cin
    # im2col of conv1 input (pad=1), K padded only to k1p (27 -> 32, not 128).
    x = jnp.transpose(x_nchw, (0, 2, 3, 1))                  # NCHW -> NHWC
    xp = jnp.pad(x, ((0, 0), (1, 1), (1, 1), (0, 0)))
    cols = [xp[:, dy:dy + H, dx:dx + W, :]
            for dy in range(3) for dx in range(3)]
    xcol = jnp.concatenate(cols, axis=-1).reshape(N, H * W, k1)
    xcol = jnp.pad(xcol, ((0, 0), (0, 0), (0, k1p - k1))).astype(jnp.bfloat16)
    npad = _round_up(N, bb)                                  # pad batch to BB
    if npad != N:
        xcol = jnp.pad(xcol, ((0, npad - N), (0, 0), (0, 0)))

    w1p = jnp.pad(w1.reshape(k1, c1),
                  ((0, k1p - k1), (0, LANES - c1))).astype(jnp.bfloat16)
    b1p = jnp.pad(b1, (0, LANES - c1)).reshape(1, LANES).astype(jnp.float32)
    # conv2 weights packed per dy: rows ordered (dx, cin) to match the
    # lane-concatenated in-kernel patch; Cout zero-padded to 128 lanes.
    w2p = jnp.pad(w2.reshape(3, 3 * c1, c2),
                  ((0, 0), (0, 0), (0, LANES - c2))).astype(jnp.bfloat16)
    b2p = jnp.pad(b2, (0, LANES - c2)).reshape(1, LANES).astype(jnp.float32)
    return xcol, w1p, b1p, w2p, b2p


def vgg_forward(x_nchw, params):
    # x_nchw: (N, Cin, H, W) float32, matching PyTorch's NCHW convention.
    N, Cin, H, W = x_nchw.shape
    c1 = params["w1"].shape[-1]
    c2 = params["w2"].shape[-1]
    k1p = max(32, _round_up(9 * Cin, 8))
    bb = _choose_batch_block(N, H, W, k1p, c1)
    vmem_limit = int(min(56 << 20,
                         max(2 * _vmem_estimate(bb, H, W, k1p, c1), 16 << 20)))
    xcol, w1p, b1p, w2p, b2p = _prep_inputs(x_nchw, params, k1p, bb)
    out = _vgg_features(xcol, w1p, b1p, w2p, b2p, BB=bb, H=H, W=W, C1=c1,
                        vmem_limit=vmem_limit)               # (G, BB, 128)
    return out.reshape(-1, LANES)[:N, :c2]                   # flatten(x, 1)


# ------------------------------ params & reference ---------------------------
def init_params(key, cin=3, c1=32, c2=64):
    # Conv2d: kaiming_normal_(mode='fan_out', nonlinearity='relu'), bias = 0
    k1, k2 = jax.random.split(key, 2)
    std1 = (2.0 / (c1 * 3 * 3)) ** 0.5
    std2 = (2.0 / (c2 * 3 * 3)) ** 0.5
    return dict(
        w1=jax.random.normal(k1, (3, 3, cin, c1), jnp.float32) * std1,
        b1=jnp.zeros((c1,), jnp.float32),
        w2=jax.random.normal(k2, (3, 3, c1, c2), jnp.float32) * std2,
        b2=jnp.zeros((c2,), jnp.float32),
    )


def vgg_reference(x_nchw, params):
    """Pure-JAX f32 reference of the same forward pass (for validation)."""
    x = jnp.transpose(x_nchw, (0, 2, 3, 1)).astype(jnp.float32)

    def conv_relu(x, w, b):
        y = jax.lax.conv_general_dilated(
            x, w, window_strides=(1, 1), padding="SAME",
            dimension_numbers=("NHWC", "HWIO", "NHWC"))
        return jax.nn.relu(y + b)

    def pool(x):
        n, h, w, c = x.shape
        return x.reshape(n, h // 2, 2, w // 2, 2, c).max(axis=(2, 4))

    x = pool(conv_relu(x, params["w1"], params["b1"]))
    x = pool(conv_relu(x, params["w2"], params["b2"]))
    return x.mean(axis=(1, 2))                               # (N, C2)


# ---------------------------------- main -------------------------------------
if __name__ == "__main__":
    key = jax.random.PRNGKey(0)
    k_x, k_p = jax.random.split(key)
    N, CIN, H, W = 4, 3, 16, 16         # BB=2 images/step, grid=(2,)
    x = jax.random.normal(k_x, (N, CIN, H, W), dtype=jnp.float32)
    params = init_params(k_p, cin=CIN, c1=32, c2=64)

    out = jax.jit(vgg_forward)(x, params)
    out = jax.block_until_ready(out)
    assert out.shape == (N, 64) and out.dtype == jnp.float32

    ref = vgg_reference(x, params)
    np.testing.assert_allclose(np.asarray(out), np.asarray(ref),
                               rtol=5e-2, atol=5e-2)
    print("KERNEL_OK")
</pallas_src>

<mosaic_0001>
module attributes {stable_mosaic.version = 11 : i64} {
  func.func @_vgg_features_kernel(%arg0: i32, %arg1: memref<2x256x32xbf16, #tpu.memory_space<vmem>>, %arg2: memref<32x128xbf16, #tpu.memory_space<vmem>>, %arg3: memref<1x128xf32, #tpu.memory_space<vmem>>, %arg4: memref<3x96x128xbf16, #tpu.memory_space<vmem>>, %arg5: memref<1x128xf32, #tpu.memory_space<vmem>>, %arg6: memref<1x2x128xf32, #tpu.memory_space<vmem>>, %arg7: memref<2x10x16x32xbf16, #tpu.memory_space<vmem>>) attributes {dimension_semantics = [#tpu.dimension_semantics<parallel>], iteration_bounds = array<i64: 2>, scalar_prefetch = 0 : i64, scratch_operands = 1 : i64, tpu.core_type = #tpu.core_type<tc>, window_params = [{transform_indices = @transform_0, window_bounds = array<i64: 2, 256, 32>}, {pipeline_mode = #tpu.pipeline_mode<synchronous>, transform_indices = @transform_1, window_bounds = array<i64: 32, 128>}, {pipeline_mode = #tpu.pipeline_mode<synchronous>, transform_indices = @transform_2, window_bounds = array<i64: 1, 128>}, {pipeline_mode = #tpu.pipeline_mode<synchronous>, transform_indices = @transform_3, window_bounds = array<i64: 3, 96, 128>}, {pipeline_mode = #tpu.pipeline_mode<synchronous>, transform_indices = @transform_4, window_bounds = array<i64: 1, 128>}, {transform_indices = @transform_5, window_bounds = array<i64: 1, 2, 128>}]} {
    %c0 = arith.constant 0 : index
    %c0_0 = arith.constant 0 : index
    %c0_1 = arith.constant 0 : index
    %0 = vector.load %arg1[%c0, %c0_0, %c0_1] : memref<2x256x32xbf16, #tpu.memory_space<vmem>>, vector<2x256x32xbf16>
    %1 = vector.shape_cast %0 : vector<2x256x32xbf16> to vector<512x32xbf16>
    %c0_2 = arith.constant 0 : index
    %c0_3 = arith.constant 0 : index
    %2 = vector.load %arg2[%c0_2, %c0_3] : memref<32x128xbf16, #tpu.memory_space<vmem>>, vector<32x128xbf16>
    %cst = arith.constant dense<0.000000e+00> : vector<512x128xf32>
    %3 = tpu.matmul %1, %2, %cst {dimension_numbers = #tpu.dot_dimension_numbers<[1], [0], [0], [1], [0, 0, 1, 1], [], []>} : vector<512x32xbf16>, vector<32x128xbf16>, vector<512x128xf32> -> vector<512x128xf32>
    %c0_4 = arith.constant 0 : index
    %c0_5 = arith.constant 0 : index
    %4 = vector.load %arg3[%c0_4, %c0_5] : memref<1x128xf32, #tpu.memory_space<vmem>>, vector<1x128xf32>
    %5 = vector.broadcast %4 : vector<1x128xf32> to vector<512x128xf32>
    %6 = arith.addf %3, %5 : vector<512x128xf32>
    %cst_6 = arith.constant 0.000000e+00 : f32
    %7 = vector.broadcast %cst_6 : f32 to vector<512x128xf32>
    %8 = arith.maximumf %6, %7 : vector<512x128xf32>
    %9 = vector.shape_cast %8 : vector<512x128xf32> to vector<256x2x128xf32>
    %10 = vector.extract_strided_slice %9 {offsets = [0, 0, 0], sizes = [256, 1, 128], strides = [1, 1, 1]} : vector<256x2x128xf32> to vector<256x1x128xf32>
    %11 = vector.shape_cast %10 : vector<256x1x128xf32> to vector<256x128xf32>
    %12 = vector.extract_strided_slice %9 {offsets = [0, 1, 0], sizes = [256, 1, 128], strides = [1, 1, 1]} : vector<256x2x128xf32> to vector<256x1x128xf32>
    %13 = vector.shape_cast %12 : vector<256x1x128xf32> to vector<256x128xf32>
    %14 = arith.maximumf %11, %13 : vector<256x128xf32>
    %15 = vector.shape_cast %14 : vector<256x128xf32> to vector<16x2x8x128xf32>
    %16 = vector.extract_strided_slice %15 {offsets = [0, 0, 0, 0], sizes = [16, 1, 8, 128], strides = [1, 1, 1, 1]} : vector<16x2x8x128xf32> to vector<16x1x8x128xf32>
    %17 = vector.shape_cast %16 : vector<16x1x8x128xf32> to vector<16x8x128xf32>
    %18 = vector.extract_strided_slice %15 {offsets = [0, 1, 0, 0], sizes = [16, 1, 8, 128], strides = [1, 1, 1, 1]} : vector<16x2x8x128xf32> to vector<16x1x8x128xf32>
    %19 = vector.shape_cast %18 : vector<16x1x8x128xf32> to vector<16x8x128xf32>
    %20 = arith.maximumf %17, %19 : vector<16x8x128xf32>
    %cst_7 = arith.constant 0.000000e+00 : bf16
    %21 = vector.broadcast %cst_7 : bf16 to vector<2x1x16x32xbf16>
    %c0_8 = arith.constant 0 : index
    %c0_9 = arith.constant 0 : index
    %c0_10 = arith.constant 0 : index
    %c0_11 = arith.constant 0 : index
    %22 = vector.load %arg7[%c0_8, %c0_9, %c0_10, %c0_11] : memref<2x10x16x32xbf16, #tpu.memory_space<vmem>>, vector<2x1x16x32xbf16>
    tpu.vector_store %arg7[%c0_8, %c0_9, %c0_10, %c0_11], %21 {strides = array<i32>} : memref<2x10x16x32xbf16, #tpu.memory_space<vmem>>, vector<2x1x16x32xbf16>,
    %c0_12 = arith.constant 0 : index
    %c9 = arith.constant 9 : index
    %c0_13 = arith.constant 0 : index
    %c0_14 = arith.constant 0 : index
    %23 = vector.load %arg7[%c0_12, %c9, %c0_13, %c0_14] : memref<2x10x16x32xbf16, #tpu.memory_space<vmem>>, vector<2x1x16x32xbf16>
    tpu.vector_store %arg7[%c0_12, %c9, %c0_13, %c0_14], %21 {strides = array<i32>} : memref<2x10x16x32xbf16, #tpu.memory_space<vmem>>, vector<2x1x16x32xbf16>,
    %cst_15 = arith.constant 0.000000e+00 : bf16
    %24 = vector.broadcast %cst_15 : bf16 to vector<2x10x1x32xbf16>
    %c0_16 = arith.constant 0 : index
    %c0_17 = arith.constant 0 : index
    %c0_18 = arith.constant 0 : index
    %c0_19 = arith.constant 0 : index
    %25 = vector.load %arg7[%c0_16, %c0_17, %c0_18, %c0_19] : memref<2x10x16x32xbf16, #tpu.memory_space<vmem>>, vector<2x10x1x32xbf16>
    tpu.vector_store %arg7[%c0_16, %c0_17, %c0_18, %c0_19], %24 {strides = array<i32>} : memref<2x10x16x32xbf16, #tpu.memory_space<vmem>>, vector<2x10x1x32xbf16>,
    %c0_20 = arith.constant 0 : index
    %c0_21 = arith.constant 0 : index
    %c9_22 = arith.constant 9 : index
    %c0_23 = arith.constant 0 : index
    %26 = vector.load %arg7[%c0_20, %c0_21, %c9_22, %c0_23] : memref<2x10x16x32xbf16, #tpu.memory_space<vmem>>, vector<2x10x1x32xbf16>
    tpu.vector_store %arg7[%c0_20, %c0_21, %c9_22, %c0_23], %24 {strides = array<i32>} : memref<2x10x16x32xbf16, #tpu.memory_space<vmem>>, vector<2x10x1x32xbf16>,
    %27 = vector.extract_strided_slice %20 {offsets = [0, 0, 0], sizes = [16, 8, 32], strides = [1, 1, 1]} : vector<16x8x128xf32> to vector<16x8x32xf32>
    %28 = vector.shape_cast %27 : vector<16x8x32xf32> to vector<2x8x8x32xf32>
    %29 = arith.truncf %28 : vector<2x8x8x32xf32> to vector<2x8x8x32xbf16>
    %c0_24 = arith.constant 0 : index
    %c1 = arith.constant 1 : index
    %c1_25 = arith.constant 1 : index
    %c0_26 = arith.constant 0 : index
    %30 = vector.load %arg7[%c0_24, %c1, %c1_25, %c0_26] : memref<2x10x16x32xbf16, #tpu.memory_space<vmem>>, vector<2x8x8x32xbf16>
    tpu.vector_store %arg7[%c0_24, %c1, %c1_25, %c0_26], %29 {strides = array<i32>} : memref<2x10x16x32xbf16, #tpu.memory_space<vmem>>, vector<2x8x8x32xbf16>,
    %cst_27 = arith.constant 0.000000e+00 : f32
    %31 = vector.broadcast %cst_27 : f32 to vector<128x128xf32>
    %c0_28 = arith.constant 0 : index
    %c0_29 = arith.constant 0 : index
    %c0_30 = arith.constant 0 : index
    %c0_31 = arith.constant 0 : index
    %32 = vector.load %arg7[%c0_28, %c0_29, %c0_30, %c0_31] : memref<2x10x16x32xbf16, #tpu.memory_space<vmem>>, vector<2x8x8x32xbf16>
    %33 = vector.shape_cast %32 : vector<2x8x8x32xbf16> to vector<128x32xbf16>
    %c0_32 = arith.constant 0 : index
    %c0_33 = arith.constant 0 : index
    %c1_34 = arith.constant 1 : index
    %c0_35 = arith.constant 0 : index
    %34 = vector.load %arg7[%c0_32, %c0_33, %c1_34, %c0_35] : memref<2x10x16x32xbf16, #tpu.memory_space<vmem>>, vector<2x8x8x32xbf16>
    %35 = vector.shape_cast %34 : vector<2x8x8x32xbf16> to vector<128x32xbf16>
    %c0_36 = arith.constant 0 : index
    %c0_37 = arith.constant 0 : index
    %c2 = arith.constant 2 : index
    %c0_38 = arith.constant 0 : index
    %36 = vector.load %arg7[%c0_36, %c0_37, %c2, %c0_38] : memref<2x10x16x32xbf16, #tpu.memory_space<vmem>>, vector<2x8x8x32xbf16>
    %37 = vector.shape_cast %36 : vector<2x8x8x32xbf16> to vector<128x32xbf16>
    %38 = tpu.concatenate %33, %35, %37 in 1 : vector<128x32xbf16>, vector<128x32xbf16>, vector<128x32xbf16> -> vector<128x96xbf16>
    %c0_39 = arith.constant 0 : index
    %c0_40 = arith.constant 0 : index
    %c0_41 = arith.constant 0 : index
    %39 = vector.load %arg4[%c0_39, %c0_40, %c0_41] : memref<3x96x128xbf16, #tpu.memory_space<vmem>>, vector<1x96x128xbf16>
    %40 = vector.shape_cast %39 : vector<1x96x128xbf16> to vector<96x128xbf16>
    %cst_42 = arith.constant dense<0.000000e+00> : vector<128x128xf32>
    %41 = tpu.matmul %38, %40, %cst_42 {dimension_numbers = #tpu.dot_dimension_numbers<[1], [0], [0], [1], [0, 0, 1, 1], [], []>} : vector<128x96xbf16>, vector<96x128xbf16>, vector<128x128xf32> -> vector<128x128xf32>
    %42 = arith.addf %31, %41 : vector<128x128xf32>
    %c0_43 = arith.constant 0 : index
    %c1_44 = arith.constant 1 : index
    %c0_45 = arith.constant 0 : index
    %c0_46 = arith.constant 0 : index
    %43 = vector.load %arg7[%c0_43, %c1_44, %c0_45, %c0_46] : memref<2x10x16x32xbf16, #tpu.memory_space<vmem>>, vector<2x8x8x32xbf16>
    %44 = vector.shape_cast %43 : vector<2x8x8x32xbf16> to vector<128x32xbf16>
    %c0_47 = arith.constant 0 : index
    %c1_48 = arith.constant 1 : index
    %c1_49 = arith.constant 1 : index
    %c0_50 = arith.constant 0 : index
    %45 = vector.load %arg7[%c0_47, %c1_48, %c1_49, %c0_50] : memref<2x10x16x32xbf16, #tpu.memory_space<vmem>>, vector<2x8x8x32xbf16>
    %46 = vector.shape_cast %45 : vector<2x8x8x32xbf16> to vector<128x32xbf16>
    %c0_51 = arith.constant 0 : index
    %c1_52 = arith.constant 1 : index
    %c2_53 = arith.constant 2 : index
    %c0_54 = arith.constant 0 : index
    %47 = vector.load %arg7[%c0_51, %c1_52, %c2_53, %c0_54] : memref<2x10x16x32xbf16, #tpu.memory_space<vmem>>, vector<2x8x8x32xbf16>
    %48 = vector.shape_cast %47 : vector<2x8x8x32xbf16> to vector<128x32xbf16>
    %49 = tpu.concatenate %44, %46, %48 in 1 : vector<128x32xbf16>, vector<128x32xbf16>, vector<128x32xbf16> -> vector<128x96xbf16>
    %c1_55 = arith.constant 1 : index
    %c0_56 = arith.constant 0 : index
    %c0_57 = arith.constant 0 : index
    %50 = vector.load %arg4[%c1_55, %c0_56, %c0_57] : memref<3x96x128xbf16, #tpu.memory_space<vmem>>, vector<1x96x128xbf16>
    %51 = vector.shape_cast %50 : vector<1x96x128xbf16> to vector<96x128xbf16>
    %cst_58 = arith.constant dense<0.000000e+00> : vector<128x128xf32>
    %52 = tpu.matmul %49, %51, %cst_58 {dimension_numbers = #tpu.dot_dimension_numbers<[1], [0], [0], [1], [0, 0, 1, 1], [], []>} : vector<128x96xbf16>, vector<96x128xbf16>, vector<128x128xf32> -> vector<128x128xf32>
    %53 = arith.addf %42, %52 : vector<128x128xf32>
    %c0_59 = arith.constant 0 : index
    %c2_60 = arith.constant 2 : index
    %c0_61 = arith.constant 0 : index
    %c0_62 = arith.constant 0 : index
    %54 = vector.load %arg7[%c0_59, %c2_60, %c0_61, %c0_62] : memref<2x10x16x32xbf16, #tpu.memory_space<vmem>>, vector<2x8x8x32xbf16>
    %55 = vector.shape_cast %54 : vector<2x8x8x32xbf16> to vector<128x32xbf16>
    %c0_63 = arith.constant 0 : index
    %c2_64 = arith.constant 2 : index
    %c1_65 = arith.constant 1 : index
    %c0_66 = arith.constant 0 : index
    %56 = vector.load %arg7[%c0_63, %c2_64, %c1_65, %c0_66] : memref<2x10x16x32xbf16, #tpu.memory_space<vmem>>, vector<2x8x8x32xbf16>
    %57 = vector.shape_cast %56 : vector<2x8x8x32xbf16> to vector<128x32xbf16>
    %c0_67 = arith.constant 0 : index
    %c2_68 = arith.constant 2 : index
    %c2_69 = arith.constant 2 : index
    %c0_70 = arith.constant 0 : index
    %58 = vector.load %arg7[%c0_67, %c2_68, %c2_69, %c0_70] : memref<2x10x16x32xbf16, #tpu.memory_space<vmem>>, vector<2x8x8x32xbf16>
    %59 = vector.shape_cast %58 : vector<2x8x8x32xbf16> to vector<128x32xbf16>
    %60 = tpu.concatenate %55, %57, %59 in 1 : vector<128x32xbf16>, vector<128x32xbf16>, vector<128x32xbf16> -> vector<128x96xbf16>
    %c2_71 = arith.constant 2 : index
    %c0_72 = arith.constant 0 : index
    %c0_73 = arith.constant 0 : index
    %61 = vector.load %arg4[%c2_71, %c0_72, %c0_73] : memref<3x96x128xbf16, #tpu.memory_space<vmem>>, vector<1x96x128xbf16>
    %62 = vector.shape_cast %61 : vector<1x96x128xbf16> to vector<96x128xbf16>
    %cst_74 = arith.constant dense<0.000000e+00> : vector<128x128xf32>
    %63 = tpu.matmul %60, %62, %cst_74 {dimension_numbers = #tpu.dot_dimension_numbers<[1], [0], [0], [1], [0, 0, 1, 1], [], []>} : vector<128x96xbf16>, vector<96x128xbf16>, vector<128x128xf32> -> vector<128x128xf32>
    %64 = arith.addf %53, %63 : vector<128x128xf32>
    %c0_75 = arith.constant 0 : index
    %c0_76 = arith.constant 0 : index
    %65 = vector.load %arg5[%c0_75, %c0_76] : memref<1x128xf32, #tpu.memory_space<vmem>>, vector<1x128xf32>
    %66 = vector.broadcast %65 : vector<1x128xf32> to vector<128x128xf32>
    %67 = arith.addf %64, %66 : vector<128x128xf32>
    %cst_77 = arith.constant 0.000000e+00 : f32
    %68 = vector.broadcast %cst_77 : f32 to vector<128x128xf32>
    %69 = arith.maximumf %67, %68 : vector<128x128xf32>
    %70 = vector.shape_cast %69 : vector<128x128xf32> to vector<64x2x128xf32>
    %71 = vector.extract_strided_slice %70 {offsets = [0, 0, 0], sizes = [64, 1, 128], strides = [1, 1, 1]} : vector<64x2x128xf32> to vector<64x1x128xf32>
    %72 = vector.shape_cast %71 : vector<64x1x128xf32> to vector<64x128xf32>
    %73 = vector.extract_strided_slice %70 {offsets = [0, 1, 0], sizes = [64, 1, 128], strides = [1, 1, 1]} : vector<64x2x128xf32> to vector<64x1x128xf32>
    %74 = vector.shape_cast %73 : vector<64x1x128xf32> to vector<64x128xf32>
    %75 = arith.maximumf %72, %74 : vector<64x128xf32>
    %76 = vector.shape_cast %75 : vector<64x128xf32> to vector<8x2x4x128xf32>
    %77 = vector.extract_strided_slice %76 {offsets = [0, 0, 0, 0], sizes = [8, 1, 4, 128], strides = [1, 1, 1, 1]} : vector<8x2x4x128xf32> to vector<8x1x4x128xf32>
    %78 = vector.shape_cast %77 : vector<8x1x4x128xf32> to vector<8x4x128xf32>
    %79 = vector.extract_strided_slice %76 {offsets = [0, 1, 0, 0], sizes = [8, 1, 4, 128], strides = [1, 1, 1, 1]} : vector<8x2x4x128xf32> to vector<8x1x4x128xf32>
    %80 = vector.shape_cast %79 : vector<8x1x4x128xf32> to vector<8x4x128xf32>
    %81 = arith.maximumf %78, %80 : vector<8x4x128xf32>
    %82 = vector.shape_cast %81 : vector<8x4x128xf32> to vector<2x16x128xf32>
    %83 = vector.extract_strided_slice %82 {offsets = [0, 0, 0], sizes = [1, 16, 128], strides = [1, 1, 1]} : vector<2x16x128xf32> to vector<1x16x128xf32>
    %84 = vector.shape_cast %83 : vector<1x16x128xf32> to vector<16x128xf32>
    %cst_78 = arith.constant dense<0.000000e+00> : vector<128xf32>
    %85 = vector.multi_reduction <add>, %84, %cst_78 [0] : vector<16x128xf32> to vector<128xf32>
    %86 = vector.shape_cast %85 : vector<128xf32> to vector<1x128xf32>
    %87 = vector.extract_strided_slice %82 {offsets = [1, 0, 0], sizes = [1, 16, 128], strides = [1, 1, 1]} : vector<2x16x128xf32> to vector<1x16x128xf32>
    %88 = vector.shape_cast %87 : vector<1x16x128xf32> to vector<16x128xf32>
    %cst_79 = arith.constant dense<0.000000e+00> : vector<128xf32>
    %89 = vector.multi_reduction <add>, %88, %cst_79 [0] : vector<16x128xf32> to vector<128xf32>
    %90 = vector.shape_cast %89 : vector<128xf32> to vector<1x128xf32>
    %91 = tpu.concatenate %86, %90 in 0 : vector<1x128xf32>, vector<1x128xf32> -> vector<2x128xf32>
    %cst_80 = arith.constant 6.250000e-02 : f32
    %92 = vector.broadcast %cst_80 : f32 to vector<2x128xf32>
    %93 = arith.mulf %91, %92 : vector<2x128xf32>
    %94 = vector.shape_cast %93 : vector<2x128xf32> to vector<1x2x128xf32>
    %c0_81 = arith.constant 0 : index
    %c0_82 = arith.constant 0 : index
    %c0_83 = arith.constant 0 : index
    %95 = vector.load %arg6[%c0_81, %c0_82, %c0_83] : memref<1x2x128xf32, #tpu.memory_space<vmem>>, vector<1x2x128xf32>
    tpu.vector_store %arg6[%c0_81, %c0_82, %c0_83], %94 {strides = array<i32>} : memref<1x2x128xf32, #tpu.memory_space<vmem>>, vector<1x2x128xf32>,
    return
  }
  func.func @transform_0(%arg0: i32) -> (i32, i32, i32) {
    %c0_i32 = arith.constant 0 : i32
    %c0_i32_0 = arith.constant 0 : i32
    %c0_i32_1 = arith.constant 0 : i32
    return %arg0, %c0_i32, %c0_i32_0 : i32, i32, i32
  }
  func.func @transform_1(%arg0: i32) -> (i32, i32) {
    %c0_i32 = arith.constant 0 : i32
    %c0_i32_0 = arith.constant 0 : i32
    %c0_i32_1 = arith.constant 0 : i32
    return %c0_i32, %c0_i32_0 : i32, i32
  }
  func.func @transform_2(%arg0: i32) -> (i32, i32) {
    %c0_i32 = arith.constant 0 : i32
    %c0_i32_0 = arith.constant 0 : i32
    %c0_i32_1 = arith.constant 0 : i32
    return %c0_i32, %c0_i32_0 : i32, i32
  }
  func.func @transform_3(%arg0: i32) -> (i32, i32, i32) {
    %c0_i32 = arith.constant 0 : i32
    %c0_i32_0 = arith.constant 0 : i32
    %c0_i32_1 = arith.constant 0 : i32
    %c0_i32_2 = arith.constant 0 : i32
    return %c0_i32, %c0_i32_0, %c0_i32_1 : i32, i32, i32
  }
  func.func @transform_4(%arg0: i32) -> (i32, i32) {
    %c0_i32 = arith.constant 0 : i32
    %c0_i32_0 = arith.constant 0 : i32
    %c0_i32_1 = arith.constant 0 : i32
    return %c0_i32, %c0_i32_0 : i32, i32
  }
  func.func @transform_5(%arg0: i32) -> (i32, i32, i32) {
    %c0_i32 = arith.constant 0 : i32
    %c0_i32_0 = arith.constant 0 : i32
    %c0_i32_1 = arith.constant 0 : i32
    return %arg0, %c0_i32, %c0_i32_0 : i32, i32, i32
  }
}

</mosaic_0001>

<bundles_post_ra>
// kernel: vgg_forward.1
= control target key start
LH: loop header
LB: loop body
LE: loop exit
PB: predicated region body
PF: predicated region fallthrough
CT: control target
= control target key end

     0   :  { %10 = vsyncpa [#allocation4], 0  ;;  %s10642_s0 = inlined_call_operand.vmem [shape: bf16[4,256,32], index: 0, kind: input, shape index: {}]   ;;  %s10643_s1 = inlined_call_operand.vmem [shape: bf16[32,128], index: 1, kind: input, shape index: {}]   ;;  %s10644_s2 = inlined_call_operand.vmem [shape: f32[1,128], index: 2, kind: input, shape index: {}]   ;;  %s10645_s3 = inlined_call_operand.vmem [shape: bf16[3,96,128], index: 3, kind: input, shape index: {}]   ;;  %s10646_s4 = inlined_call_operand.vmem [shape: f32[1,128], index: 4, kind: input, shape index: {}]   ;;  %s10647_s5 = inlined_call_operand.hbm [shape: f32[2,2,128], index: 5, kind: output, shape index: {}]  }
   0x1   :  { %12 = vsyncpa [#allocation4 + $0x1], 0  ;;  %s9195_s18 = smov 0   ;;  %s9197_s19 = smov 0  }
   0x2   :  { %s9199_s20 = smov 0   ;;  %s9201_s21 = smov 0  }
   0x3 LB: > { %s9216_s22 = sadd.s32 4294967295, %s9158_s21   ;;  %s7743_s23 = sadd.s32 4294967294, %s9158_s21   ;;  %s9158_s21 = sphi %s9201_s21, %s10663_s21   ;;  %s9154_s20 = sphi %s9199_s20, %s10662_s20   ;;  %s9150_s19 = sphi %s9197_s19, %s10661_s19   ;;  %s9146_s18 = sphi %s9195_s18, %s10660_s18  }
   0x4   : > { %s9220_s24 = sadd.s32 1, %s9158_s21   ;;  %s135_s25 = sadd.s32 1, %s9154_s20 }
   0x5   : > { %s132_s26 = ssub.s32 %s9158_s21, %s9220_s24  ;;  %p145_p0 = scmp.ne.s32.totalorder %s9154_s20, %s9150_s19 }
   0x6   : > { %p133_p1 = scmp.eq.s32.totalorder %s132_s26, 0  ;;  %p146_p2 = scmp.eq.s32.totalorder %s9216_s22, 1 }
   0x7   : > { %p151_p3 = scmp.ne.s32.totalorder %s9150_s19, %s9146_s18  ;;  %p152_p4 = scmp.eq.s32.totalorder %s7743_s23, 1 }
   0x8   : > { %s9231_s27 = scalar_select %p133_p1, %s9154_s20, %s135_s25  }
   0x9   : > { %p9233_p5 = por %p146_p2, %p145_p0  ;;  %p9237_p6 = por %p152_p4, %p151_p3 }
   0xa   : > { %p7746_p7 = scmp.ge.s32.totalorder %s9158_s21, 1  ;;  %p192_p8 = scmp.lt.s32.totalorder %s9158_s21, 3 }
   0xc   : > { %p193_p9 = pnand %p7746_p7, %p192_p8 }
   0xd   : > { %v8825_v0 = vld [vmem:[%s10643_s1] sm:$0xff] (!%p193_p9)   ;;  %s7748_s7 = sshll.u32 (!%p193_p9), %s9216_s22, 1  ;;  %v8826_v1 = vld [vmem:[%s10643_s1 + $0x8] sm:$0xff] (!%p193_p9)   ;;  %vm476_vm0 = vcmask (!%p193_p9), 261120   ;;  %vm3491_vm1 = vcmask (!%p193_p9), 253952   ;;  %vm3554_vm3 = vcmask (!%p193_p9), 258052   ;;  %v994_v54 = vlaneseq (!%p193_p9) }
   0xe   : > { %196 = sbr.rel (%p193_p9) target bundleno = 1269 (0x4f5), region = 40  ;;  %p222_p10 = scmp.lt.s32.totalorder (!%p193_p9), %s7748_s7, 3  ;;  %8598 = vmatprep.subr.bf16.mxu0 (!%p193_p9), %v8825_v0  ;;  %vm3492_vm2 = vsmask.f32 (!%p193_p9), 256  ;;  %v3497_v33 = vld [vmem:[#allocation2 + $0x8] sm:$0x1] (!%p193_p9) }
   0xf   : > { %8599 = vmatpush3.bf16.msra.mxu0 (!%p193_p9), %v8825_v0  ;;  %vm9315_vm4 = vmand (!%p193_p9), %vm3491_vm1, %vm3492_vm2  ;;  %vm3555_vm5 = vsmask.f32 (!%p193_p9), 7954  ;;  %v3560_v35 = vld [vmem:[#allocation2 + $0x8] sm:$0x10] (!%p193_p9)  ;;  %v3500_v40 = vld [vmem:[#allocation2 + $0x10] sm:$0x1] (!%p193_p9) }
  0x10   : > { %8600 = vmatprep.subr.bf16.mxu0 (!%p193_p9), %v8826_v1  ;;  %v3498_v36 = vsel (!%p193_p9), %vm9315_vm4, 0, %v3497_v33  ;;  %vm9322_vm6 = vmand (!%p193_p9), %vm3554_vm3, %vm3555_vm5  ;;  %v3563_v41 = vld [vmem:[#allocation2 + $0x10] sm:$0x10] (!%p193_p9)  ;;  %v3501_v42 = vsel (!%p193_p9), %vm9315_vm4, 0, %v3500_v40  ;;  %v3503_v44 = vld [vmem:[#allocation2 + $0x18] sm:$0x1] (!%p193_p9) }
  0x11   : > { %3499 = vst [vmem:[#allocation2 + $0x8] sm:$0x1] (!%p193_p9), %v3498_v36  ;;  %v3561_v38 = vsel (!%p193_p9), %vm9322_vm6, 0, %v3560_v35  ;;  %v3564_v43 = vsel (!%p193_p9), %vm9322_vm6, 0, %v3563_v41  ;;  %3502 = vst [vmem:[#allocation2 + $0x10] sm:$0x1] (!%p193_p9), %v3501_v42 }
  0x12   : > { %3562 = vst [vmem:[#allocation2 + $0x8] sm:$0x10] (!%p193_p9), %v3561_v38  ;;  %3565 = vst [vmem:[#allocation2 + $0x10] sm:$0x10] (!%p193_p9), %v3564_v43  ;;  %v3566_v45 = vld [vmem:[#allocation2 + $0x18] sm:$0x10] (!%p193_p9) }
  0x13   : > { %8601 = vmatpush3.bf16.msra.mxu0 (!%p193_p9), %v8826_v1  ;;  %v3504_v46 = vsel (!%p193_p9), %vm9315_vm4, 0, %v3503_v44  ;;  %v3567_v47 = vsel (!%p193_p9), %vm9322_vm6, 0, %v3566_v45  ;;  %v3506_v48 = vld [vmem:[#allocation2 + $0x20] sm:$0x1] (!%p193_p9)  ;;  %v3569_v49 = vld [vmem:[#allocation2 + $0x20] sm:$0x10] (!%p193_p9) }
  0x14   : > { %3505 = vst [vmem:[#allocation2 + $0x18] sm:$0x1] (!%p193_p9), %v3504_v46  ;;  %3568 = vst [vmem:[#allocation2 + $0x18] sm:$0x10] (!%p193_p9), %v3567_v47  ;;  %v3507_v50 = vsel (!%p193_p9), %vm9315_vm4, 0, %v3506_v48  ;;  %v3570_v51 = vsel (!%p193_p9), %vm9322_vm6, 0, %v3569_v49 }
  0x15   : > { %s10665_s7 = smov (!%p222_p10, %s7748_s7), 3  ;;  %3508 = vst [vmem:[#allocation2 + $0x20] sm:$0x1] %v3507_v50  ;;  %3571 = vst [vmem:[#allocation2 + $0x20] sm:$0x10] %v3570_v51  ;;  %v9343_v56 = vshrl.u32 %v994_v54, 7 }
  0x16   : > { %s8521_s10 = sshll.u32 %s10665_s7, 7  ;;  %v9160_v52 = vmov 1983009808   ;;  %v9348_v57 = vld [vmem:[%s10644_s2] ss:$0 sm:$0xff]  ;;  %vm4003_vm7 = vcmask 1042434  }
  0x17   : > { %s9253_s13 = scalar_lea.vmem %s10642_s0, %s8521_s10  ;;  %v992_v53 = vunpack.c.l.s4 %v9160_v52  ;;  %v3509_v58 = vld [vmem:[#allocation2 + $0x28] sm:$0x1]  ;;  %v3572_v59 = vld [vmem:[#allocation2 + $0x28] sm:$0x10]  ;;  %vm4006_vm8 = vcmask 1043459   ;;  %vm4009_vm9 = vcmask 1044484  }
  0x18   : > { %v8827_v2 = vld [vmem:[%s9253_s13] sm:$0xff]   ;;  %v8828_v3 = vld [vmem:[%s9253_s13 + $0x8] sm:$0xff]   ;;  %v8829_v4 = vld [vmem:[%s9253_s13 + $0x10] sm:$0xff]   ;;  %v3510_v61 = vsel %vm9315_vm4, 0, %v3509_v58  ;;  %v3573_v62 = vsel %vm9322_vm6, 0, %v3572_v59  ;;  %vm4012_vm10 = vcmask 1045509  }
  0x19   : > { %8602 = vmatprep.mubr.msk.bf16.mxu0 %vm476_vm0, %v8827_v2  ;;  %v8830_v5 = vld [vmem:[%s9253_s13 + $0x18] sm:$0xff]   ;;  %v8831_v6 = vld [vmem:[%s9253_s13 + $0x20] sm:$0xff]   ;;  %v8832_v7 = vld [vmem:[%s9253_s13 + $0x28] sm:$0xff]   ;;  %v993_v55 = vunpack.c.0.s8 %v992_v53  ;;  %3511 = vst [vmem:[#allocation2 + $0x28] sm:$0x1] %v3510_v61  ;;  %vm4015_vm11 = vcmask 1046534  }
  0x1a   : > { %8603 = vmatmul.mubr.msk.bf16.vlgmr.msra.gmra.mrb[0].mxu0 %vm476_vm0, %v8828_v3  ;;  %v8833_v8 = vld [vmem:[%s9253_s13 + $0x30] sm:$0xff]   ;;  %v8834_v9 = vld [vmem:[%s9253_s13 + $0x38] sm:$0xff]   ;;  %v8835_v10 = vld [vmem:[%s9253_s13 + $0x40] sm:$0xff]   ;;  %3574 = vst [vmem:[#allocation2 + $0x28] sm:$0x10] %v3573_v62  ;;  %vm4018_vm12 = vcmask 1047559  }
  0x1b   : > { %8606 = vmatprep.mubr.msk.bf16.mxu0 %vm476_vm0, %v8829_v4  ;;  %v8836_v11 = vld [vmem:[%s9253_s13 + $0x48] sm:$0xff]   ;;  %v8837_v12 = vld [vmem:[%s9253_s13 + $0x50] sm:$0xff]   ;;  %v8838_v13 = vld [vmem:[%s9253_s13 + $0x58] sm:$0xff]   ;;  %v9356_v0 = vsub.s32 %v993_v55, %v9343_v56  ;;  %vm4248_vm13 = vcmask 258048   ;;  %vm4249_vm14 = vsmask.f32 4354 }
  0x1c   : > { %v8839_v14 = vld [vmem:[%s9253_s13 + $0x60] sm:$0xff]   ;;  %v8840_v15 = vld [vmem:[%s9253_s13 + $0x68] sm:$0xff]   ;;  %v8841_v16 = vld [vmem:[%s9253_s13 + $0x70] sm:$0xff]   ;;  %vm4734_vm1 = vcmask 1042432   ;;  %vm4735_vm2 = vcmask 1046532   ;;  %s9161_s23 = smov 64  }
  0x1d   : > { %v8842_v17 = vld [vmem:[%s9253_s13 + $0x78] sm:$0xff]   ;;  %v8843_v18 = vld [vmem:[%s9253_s13 + $0x80] sm:$0xff]   ;;  %v8844_v19 = vld [vmem:[%s9253_s13 + $0x88] sm:$0xff]   ;;  %vm4411_vm5 = vsmask.f32 3328  ;;  %s9162_s25 = smov 32  }
  0x1e   : > { %v8845_v20 = vld [vmem:[%s9253_s13 + $0x90] sm:$0xff]   ;;  %v8846_v21 = vld [vmem:[%s9253_s13 + $0x98] sm:$0xff]   ;;  %v8847_v22 = vld [vmem:[%s9253_s13 + $0xa0] sm:$0xff]   ;;  %s218_s16 = sand.u32 1, %s9150_s19   ;;  %s8518_s26 = sshll.u32 %s9216_s22, 5 }
  0x1f   : > { %v8848_v23 = vld [vmem:[%s9253_s13 + $0xa8] sm:$0xff]   ;;  %v8849_v24 = vld [vmem:[%s9253_s13 + $0xb0] sm:$0xff]   ;;  %v8850_v25 = vld [vmem:[%s9253_s13 + $0xb8] sm:$0xff]   ;;  %s7747_s17 = sshll.u32 %s218_s16, 1  ;;  %s7671_s9 = scalar_lea.sflag [#allocation4], %s218_s16 }
  0x20   : > { %v8851_v26 = vld [vmem:[%s9253_s13 + $0xc0] sm:$0xff]   ;;  %v8852_v27 = vld [vmem:[%s9253_s13 + $0xc8] sm:$0xff]   ;;  %v8853_v28 = vld [vmem:[%s9253_s13 + $0xd0] sm:$0xff]   ;;  %s220_s30 = scalar_lea.vmem [#allocation3], %s7747_s17  ;;  %s9164_s22 = smov [#allocation3]  }
  0x21   : > { %v8854_v29 = vld [vmem:[%s9253_s13 + $0xd8] sm:$0xff]   ;;  %v8855_v30 = vld [vmem:[%s9253_s13 + $0xe0] sm:$0xff]   ;;  %v8856_v31 = vld [vmem:[%s9253_s13 + $0xe8] sm:$0xff]   ;;  %s7684_s6 = sshll.u32 %s220_s30, 4  ;;  %s9100_s11 = sshll.u32 %s9164_s22, 4  ;;  %s10602_s6 = int_to_ptr.vmem [resolvable:$true] %s7684_s6  ;;  %s9101_s11 = int_to_ptr.vmem [resolvable:$false] %s9100_s11 }
  0x22   : > { %8607 = vmatmul.mubr.msk.bf16.gmra.mrb[4].mxu0 %vm476_vm0, %v8830_v5  ;;  %v8857_v32 = vld [vmem:[%s9253_s13 + $0xf0] sm:$0xff]   ;;  %v8858_v39 = vld [vmem:[%s9253_s13 + $0xf8] sm:$0xff]   ;;  %vm9417_vm15 = vmand %vm4248_vm13, %vm4249_vm14  ;;  %vm4412_vm13 = vsmask.f32 7440  ;;  %s9096_s10 = scalar_lea.vmem %s10602_s6, 32  ;;  %s9102_s12 = scalar_lea.vmem %s9101_s11, 64 }
  0x23   : > { %8610 = vmatprep.mubr.msk.bf16.mxu0 %vm476_vm0, %v8831_v6  ;;  %vm9627_vm3 = vmor %vm4734_vm1, %vm4735_vm2  ;;  %vm5679_vm1 = vcmask 785408   ;;  %p9097_p11 = scmp.ne.s32.totalorder %s10602_s6, %s9096_s10  ;;  %p9103_p0 = scmp.lt.s32.totalorder %s10602_s6, %s9101_s11 }
  0x24   : > { %vm9671_vm14 = vmor %vm4411_vm5, %vm4412_vm13  ;;  %p9104_p1 = scmp.lt.s32.totalorder %s9102_s12, %s9096_s10 }
  0x25   : > { %p9098_p12 = pnand %p9097_p11, %p9233_p5 }
  0x26   : > { %p9105_p2 = por %p9104_p1, %p9103_p0 }
  0x27   : > { %p9099_p13 = pneg %p9098_p12 }
  0x29   : > { %p9106_p3 = pnand %p9105_p2, %p9099_p13 }
  0x2a   : > { %8611 = vmatmul.mubr.msk.bf16.gmra.mrb[8].mxu0 %vm476_vm0, %v8832_v7 }
  0x2b   : > { %8614 = vmatprep.mubr.msk.bf16.mxu0 %vm476_vm0, %v8833_v8 }
  0x32   : > { %8615 = vmatmul.mubr.msk.bf16.gmra.mrb[12].mxu0 %vm476_vm0, %v8834_v9 }
  0x33   : > { %8618 = vmatprep.mubr.msk.bf16.mxu0 %vm476_vm0, %v8835_v10 }
  0x3a   : > { %8619 = vmatmul.mubr.msk.bf16.gmra.mrb[16].mxu0 %vm476_vm0, %v8836_v11 }
  0x3b   : > { %8622 = vmatprep.mubr.msk.bf16.mxu0 %vm476_vm0, %v8837_v12 }
  0x42   : > { %8623 = vmatmul.mubr.msk.bf16.gmra.mrb[20].mxu0 %vm476_vm0, %v8838_v13 }
  0x43   : > { %8626 = vmatprep.mubr.msk.bf16.mxu0 %vm476_vm0, %v8839_v14 }
  0x4a   : > { %8627 = vmatmul.mubr.msk.bf16.gmra.mrb[24].mxu0 %vm476_vm0, %v8840_v15 }
  0x4b   : > { %8630 = vmatprep.mubr.msk.bf16.mxu0 %vm476_vm0, %v8841_v16 }
  0x52   : > { %8631 = vmatmul.mubr.msk.bf16.gmra.mrb[28].mxu0 %vm476_vm0, %v8842_v17 }
  0x53   : > { %8634 = vmatprep.mubr.msk.bf16.mxu0 %vm476_vm0, %v8843_v18 }
  0x5a   : > { %8635 = vmatmul.mubr.msk.bf16.gmra.mrb[32].mxu0 %vm476_vm0, %v8844_v19 }
  0x5b   : > { %8638 = vmatprep.mubr.msk.bf16.mxu0 %vm476_vm0, %v8845_v20 }
  0x62   : > { %8639 = vmatmul.mubr.msk.bf16.gmra.mrb[36].mxu0 %vm476_vm0, %v8846_v21 }
  0x63   : > { %8642 = vmatprep.mubr.msk.bf16.mxu0 %vm476_vm0, %v8847_v22 }
  0x6a   : > { %8643 = vmatmul.mubr.msk.bf16.gmra.mrb[40].mxu0 %vm476_vm0, %v8848_v23 }
  0x6b   : > { %8646 = vmatprep.mubr.msk.bf16.mxu0 %vm476_vm0, %v8849_v24 }
  0x72   : > { %8647 = vmatmul.mubr.msk.bf16.gmra.mrb[44].mxu0 %vm476_vm0, %v8850_v25 }
  0x73   : > { %8650 = vmatprep.mubr.msk.bf16.mxu0 %vm476_vm0, %v8851_v26 }
  0x7a   : > { %8651 = vmatmul.mubr.msk.bf16.gmra.mrb[48].mxu0 %vm476_vm0, %v8852_v27 }
  0x7b   : > { %8654 = vmatprep.mubr.msk.bf16.mxu0 %vm476_vm0, %v8853_v28 }
  0x82   : > { %8655 = vmatmul.mubr.msk.bf16.gmra.mrb[52].mxu0 %vm476_vm0, %v8854_v29 }
  0x83   : > { %8658 = vmatprep.mubr.msk.bf16.mxu0 %vm476_vm0, %v8855_v30 }
  0x8a   : > { %8659 = vmatmul.mubr.msk.bf16.gmra.mrb[56].mxu0 %vm476_vm0, %v8856_v31 }
  0x8b   : > { %8662 = vmatprep.mubr.msk.bf16.mxu0 %vm476_vm0, %v8857_v32 }
  0x92   : > { %8663 = vmatmul.mubr.msk.bf16.gmra.mrb[60].mxu0 %vm476_vm0, %v8858_v39 }
  0xed   : > { %v8604_v60 = vpop.f32.mrb[0].mxu0 }
  0xee   : > { %v616_v63 = vadd.f32 %v8604_v60, %v9348_v57  ;;  %v607_v1 = vpop.f32.mrb[1].mxu0 }
  0xef   : > { %v608_v2 = vadd.f32 %v9348_v57, %v607_v1  ;;  %v8605_v3 = vpop.f32.mrb[2].mxu0 }
  0xf0   : > { %v864_v4 = vmax.f32 %v616_v63, 0.0  ;;  %v619_v5 = vadd.f32 %v8605_v3, %v9348_v57  ;;  %v610_v6 = vpop.f32.mrb[3].mxu0 }
  0xf1   : > { %v862_v7 = vmax.f32 %v608_v2, 0.0  ;;  %v611_v8 = vadd.f32 %v9348_v57, %v610_v6 }
  0xf2   : > { %v1024_v9 = vcombine.high %v864_v4, %v864_v4  ;;  %v1031_v10 = vrot.slane %v864_v4, %v9356_v0  ;;  %v865_v11 = vmax.f32 %v619_v5, 0.0 }
  0xf3   : > { %v990_v12 = vcombine.high %v862_v7, %v862_v7  ;;  %v997_v13 = vrot.slane %v862_v7, %v9356_v0  ;;  %v863_v14 = vmax.f32 %v611_v8, 0.0 }
  0xf4   : > { %v1038_v15 = vrot.slane %v1024_v9, %v9356_v0  ;;  %v1039_v16 = vcombine.high %v1031_v10, %v1031_v10  ;;  %v7826_v17 = vrot.slane %v1031_v10, 9  ;;  %v1041_v18 = vcombine.high %v865_v11, %v865_v11 }
  0xf5   : > { %v1004_v19 = vrot.slane %v990_v12, %v9356_v0  ;;  %v1005_v20 = vcombine.high %v997_v13, %v997_v13  ;;  %v7818_v21 = vrot.slane %v997_v13, 9  ;;  %v1048_v22 = vrot.slane %v865_v11, %v9356_v0  ;;  %v8608_v23 = vpop.f32.mrb[4].mxu0 }
  0xf6   : > { %v1040_v24 = vcombine.high %v1038_v15, %v1038_v15  ;;  %v7827_v25 = vrot.slane %v1039_v16, 9  ;;  %v7828_v26 = vrot.slane %v1038_v15, 9  ;;  %v3110_v27 = vmax.f32 %v1031_v10, %v7826_v17  ;;  %v623_v28 = vpop.f32.mrb[5].mxu0 }
  0xf7   : > { %v1006_v29 = vcombine.high %v1004_v19, %v1004_v19  ;;  %v7819_v30 = vrot.slane %v1005_v20, 9  ;;  %v7820_v31 = vrot.slane %v1004_v19, 9  ;;  %v3102_v32 = vmax.f32 %v997_v13, %v7818_v21  ;;  %v8609_v33 = vpop.f32.mrb[6].mxu0 }
  0xf8   : > { %v7829_v35 = vrot.slane %v1040_v24, 9  ;;  %v3111_v36 = vmax.f32 %v1039_v16, %v7827_v25  ;;  %v3112_v38 = vmax.f32 %v1038_v15, %v7828_v26  ;;  %v1055_v39 = vrot.slane %v1041_v18, %v9356_v0  ;;  %v9367_v40 = vpop.f32.mrb[7].mxu0 }
  0xf9   : > { %v7821_v41 = vrot.slane %v1006_v29, 9  ;;  %v3103_v42 = vmax.f32 %v1005_v20, %v7819_v30  ;;  %v3104_v43 = vmax.f32 %v1004_v19, %v7820_v31  ;;  %v3358_v44 = vmax.f32 %v3102_v32, %v3110_v27 }
  0xfa   : > { %v3113_v45 = vmax.f32 %v1040_v24, %v7829_v35  ;;  %v1056_v46 = vcombine.high %v1048_v22, %v1048_v22  ;;  %v1057_v47 = vcombine.high %v1055_v39, %v1055_v39  ;;  %v7830_v48 = vrot.slane %v1048_v22, 9 }
  0xfb   : > { %v3105_v49 = vmax.f32 %v1006_v29, %v7821_v41  ;;  %v3359_v50 = vmax.f32 %v3103_v42, %v3111_v36  ;;  %v3360_v51 = vmax.f32 %v3104_v43, %v3112_v38  ;;  %v3617_v52 = vpack.c.bf16 %v3358_v44, %v3358_v44 }
  0xfc   : > { %v7831_v53 = vrot.slane %v1056_v46, 9  ;;  %v7832_v54 = vrot.slane %v1055_v39, 9  ;;  %v7833_v55 = vrot.slane %v1057_v47, 9  ;;  %v3114_v58 = vmax.f32 %v1048_v22, %v7830_v48 }
  0xfd   : > { %v3361_v59 = vmax.f32 %v3105_v49, %v3113_v45  ;;  %v3618_v60 = vpack.c.bf16 %v3359_v50, %v3359_v50  ;;  %v3619_v61 = vpack.c.bf16 %v3360_v51, %v3360_v51  ;;  %v3873_v62 = vunpack.c.l.b16 %v3617_v52  ;;  %v9369_v63 = vpop.f32.mrb[8].mxu0 }
  0xfe   : > { %v3115_v1 = vmax.f32 %v1056_v46, %v7831_v53  ;;  %v3116_v2 = vmax.f32 %v1055_v39, %v7832_v54  ;;  %v3117_v3 = vmax.f32 %v1057_v47, %v7833_v55  ;;  %v1007_v4 = vcombine.high %v863_v14, %v863_v14  ;;  %v9371_v5 = vpop.f32.mrb[9].mxu0 }
  0xff   : > { %v3620_v6 = vpack.c.bf16 %v3361_v59, %v3361_v59  ;;  %v3874_v7 = vunpack.c.l.b16 %v3618_v60  ;;  %v3875_v8 = vunpack.c.l.b16 %v3619_v61  ;;  %v4001_v9 = vrot.slane %v3873_v62, 7  ;;  %v9373_v10 = vpop.f32.mrb[10].mxu0 }
 0x100   : > { %v1014_v11 = vrot.slane %v863_v14, %v9356_v0  ;;  %v1021_v12 = vrot.slane %v1007_v4, %v9356_v0  ;;  %v632_v13 = vadd.f32 %v8608_v23, %v9348_v57  ;;  %v624_v15 = vadd.f32 %v9348_v57, %v623_v28  ;;  %v9379_v16 = vpop.f32.mrb[11].mxu0 }
 0x101   : > { %v3876_v17 = vunpack.c.l.b16 %v3620_v6  ;;  %v4002_v18 = vrot.slane %v3874_v7, 6  ;;  %v4005_v19 = vrot.slane %v3875_v8, 5  ;;  %v9382_v20 = vadd.f32 %v8609_v33, %v9348_v57 }
 0x102   : > { %v1022_v21 = vcombine.high %v1014_v11, %v1014_v11  ;;  %v1023_v22 = vcombine.high %v1021_v12, %v1021_v12  ;;  %v7822_v24 = vrot.slane %v1014_v11, 9  ;;  %v7824_v25 = vrot.slane %v1021_v12, 9 }
 0x103   : > { %v4004_v14 = vsel %vm4003_vm7, %v4002_v18, %v4001_v9  ;;  %v4008_v26 = vrot.slane %v3876_v17, 4  ;;  %v868_v27 = vmax.f32 %v632_v13, 0.0  ;;  %v866_v23 = vmax.f32 %v624_v15, 0.0 }
 0x104   : > { %v4007_v28 = vsel %vm4006_vm8, %v4005_v19, %v4004_v14  ;;  %v7823_v29 = vrot.slane %v1022_v21, 9  ;;  %v7825_v30 = vrot.slane %v1023_v22, 9  ;;  %v3106_v31 = vmax.f32 %v1014_v11, %v7822_v24 }
 0x105   : > { %v3108_v32 = vmax.f32 %v1021_v12, %v7824_v25  ;;  %v4010_v35 = vsel %vm4009_vm9, %v4008_v26, %v4007_v28  ;;  %v1092_v33 = vcombine.high %v868_v27, %v868_v27  ;;  %v1099_v36 = vrot.slane %v868_v27, %v9356_v0  ;;  %v9388_v38 = vpop.f32.mrb[12].mxu0 }
 0x106   : > { %v3107_v39 = vmax.f32 %v1022_v21, %v7823_v29  ;;  %v3109_v41 = vmax.f32 %v1023_v22, %v7825_v30  ;;  %v3362_v42 = vmax.f32 %v3106_v31, %v3114_v58  ;;  %v1058_v43 = vcombine.high %v866_v23, %v866_v23  ;;  %v9390_v44 = vpop.f32.mrb[13].mxu0 }
 0x107   : > { %v3364_v45 = vmax.f32 %v3108_v32, %v3116_v2  ;;  %v1106_v46 = vrot.slane %v1092_v33, %v9356_v0  ;;  %v1107_v47 = vcombine.high %v1099_v36, %v1099_v36  ;;  %v7842_v48 = vrot.slane %v1099_v36, 9  ;;  %v9393_v49 = vpop.f32.mrb[14].mxu0 }
 0x108   : > { %v3363_v50 = vmax.f32 %v3107_v39, %v3115_v1  ;;  %v3365_v51 = vmax.f32 %v3109_v41, %v3117_v3  ;;  %v3621_v52 = vpack.c.bf16 %v3362_v42, %v3362_v42  ;;  %v1065_v53 = vrot.slane %v866_v23, %v9356_v0  ;;  %v9396_v54 = vpop.f32.mrb[15].mxu0 }
 0x109   : > { %v3623_v55 = vpack.c.bf16 %v3364_v45, %v3364_v45  ;;  %v1108_v58 = vcombine.high %v1106_v46, %v1106_v46  ;;  %v7843_v59 = vrot.slane %v1107_v47, 9  ;;  %v7844_v60 = vrot.slane %v1106_v46, 9 }
 0x10a   : > { %v3622_v61 = vpack.c.bf16 %v3363_v50, %v3363_v50  ;;  %v3624_v62 = vpack.c.bf16 %v3365_v51, %v3365_v51  ;;  %v3877_v2 = vunpack.c.l.b16 %v3621_v52  ;;  %v3126_v4 = vmax.f32 %v1099_v36, %v7842_v48 }
 0x10b   : > { %v3879_v6 = vunpack.c.l.b16 %v3623_v55  ;;  %v7845_v7 = vrot.slane %v1108_v58, 9  ;;  %v3127_v8 = vmax.f32 %v1107_v47, %v7843_v59  ;;  %v3128_v9 = vmax.f32 %v1106_v46, %v7844_v60 }
 0x10c   : > { %v3878_v11 = vunpack.c.l.b16 %v3622_v61  ;;  %v3880_v1 = vunpack.c.l.b16 %v3624_v62  ;;  %v4011_v3 = vrot.slane %v3877_v2, 3  ;;  %v1072_v12 = vrot.slane %v1058_v43, %v9356_v0 }
 0x10d   : > { %v4017_v13 = vrot.slane %v3879_v6, 1  ;;  %v3129_v15 = vmax.f32 %v1108_v58, %v7845_v7  ;;  %v1073_v17 = vcombine.high %v1065_v53, %v1065_v53  ;;  %v7834_v18 = vrot.slane %v1065_v53, 9  ;;  %v9399_v19 = vpop.f32.mrb[16].mxu0 }
 0x10e   : > { %v4013_v21 = vsel %vm4012_vm10, %v4011_v3, %v4010_v35  ;;  %v4014_v22 = vrot.slane %v3878_v11, 2  ;;  %v1074_v24 = vcombine.high %v1072_v12, %v1072_v12  ;;  %v7836_v25 = vrot.slane %v1072_v12, 9  ;;  %v9402_v14 = vpop.f32.mrb[17].mxu0 }
 0x10f   : > { %v7835_v26 = vrot.slane %v1073_v17, 9  ;;  %v3118_v27 = vmax.f32 %v1065_v53, %v7834_v18  ;;  %v869_v23 = vmax.f32 %v9382_v20, 0.0  ;;  %v627_v28 = vadd.f32 %v9348_v57, %v9367_v40  ;;  %v9407_v29 = vpop.f32.mrb[18].mxu0  ;;  %v4251_v40 = vld [vmem:[#allocation2 + $0x8] sm:$0x1f] }
 0x110   : > { %v4016_v30 = vsel %vm4015_vm11, %v4014_v22, %v4013_v21  ;;  %v7837_v31 = vrot.slane %v1074_v24, 9  ;;  %v3120_v32 = vmax.f32 %v1072_v12, %v7836_v25  ;;  %v648_v35 = vadd.f32 %v9369_v63, %v9348_v57  ;;  %v9412_v33 = vpop.f32.mrb[19].mxu0 }
 0x111   : > { %v4019_v36 = vsel %vm4018_vm12, %v4017_v13, %v4016_v30  ;;  %v3119_v39 = vmax.f32 %v1073_v17, %v7835_v26  ;;  %v3366_v41 = vmax.f32 %v3118_v27, %v3126_v4  ;;  %v1109_v42 = vcombine.high %v869_v23, %v869_v23 }
 0x112   : > { %v4215_v43 = vpack.c.b16 %v3880_v1, %v4019_v36  ;;  %v3121_v45 = vmax.f32 %v1074_v24, %v7837_v31  ;;  %v3368_v46 = vmax.f32 %v3120_v32, %v3128_v9  ;;  %v1116_v47 = vrot.slane %v869_v23, %v9356_v0 }
 0x113   : > { %v3367_v63 = vmax.f32 %v3119_v39, %v3127_v8  ;;  %v3625_v48 = vpack.c.bf16 %v3366_v41, %v3366_v41  ;;  %v1123_v50 = vrot.slane %v1109_v42, %v9356_v0  ;;  %v867_v51 = vmax.f32 %v627_v28, 0.0 }
 0x114   : > { %v4252_v52 = vsel %vm9417_vm15, %v4215_v43, %v4251_v40  ;;  %v3369_v53 = vmax.f32 %v3121_v45, %v3129_v15  ;;  %v3627_v55 = vpack.c.bf16 %v3368_v46, %v3368_v46  ;;  %v1124_v58 = vcombine.high %v1116_v47, %v1116_v47 }
 0x115   : > { %4253 = vst [vmem:[#allocation2 + $0x8] sm:$0x1f] %v4252_v52  ;;  %v3626_v59 = vpack.c.bf16 %v3367_v63, %v3367_v63  ;;  %v3881_v60 = vunpack.c.l.b16 %v3625_v48  ;;  %v1125_v61 = vcombine.high %v1123_v50, %v1123_v50  ;;  %v7846_v62 = vrot.slane %v1116_v47, 9  ;;  %v9425_v2 = vpop.f32.mrb[20].mxu0 }
 0x116   : > { %v3628_v4 = vpack.c.bf16 %v3369_v53, %v3369_v53  ;;  %v3883_v6 = vunpack.c.l.b16 %v3627_v55  ;;  %v7847_v7 = vrot.slane %v1124_v58, 9  ;;  %v7848_v8 = vrot.slane %v1123_v50, 9  ;;  %v9427_v9 = vpop.f32.mrb[21].mxu0 }
 0x117   : > { %v3882_v11 = vunpack.c.l.b16 %v3626_v59  ;;  %v4020_v1 = vrot.slane %v3881_v60, 7  ;;  %v7849_v3 = vrot.slane %v1125_v61, 9  ;;  %v3130_v12 = vmax.f32 %v1116_v47, %v7846_v62  ;;  %v9429_v13 = vpop.f32.mrb[22].mxu0 }
 0x118   : > { %v3884_v15 = vunpack.c.l.b16 %v3628_v4  ;;  %v4023_v17 = vrot.slane %v3883_v6, 5  ;;  %v3131_v18 = vmax.f32 %v1124_v58, %v7847_v7  ;;  %v3132_v21 = vmax.f32 %v1123_v50, %v7848_v8  ;;  %v9431_v22 = vpop.f32.mrb[23].mxu0 }
 0x119   : > { %v4021_v24 = vrot.slane %v3882_v11, 6  ;;  %v3133_v25 = vmax.f32 %v1125_v61, %v7849_v3  ;;  %v1075_v26 = vcombine.high %v867_v51, %v867_v51  ;;  %v1082_v27 = vrot.slane %v867_v51, %v9356_v0 }
 0x11a   : > { %v4025_v23 = vrot.slane %v3884_v15, 4  ;;  %v872_v28 = vmax.f32 %v648_v35, 0.0  ;;  %v640_v30 = vadd.f32 %v9348_v57, %v9371_v5  ;;  %v651_v31 = vadd.f32 %v9373_v10, %v9348_v57 }
 0x11b   : > { %v4022_v32 = vsel %vm4003_vm7, %v4021_v24, %v4020_v1  ;;  %v1089_v36 = vrot.slane %v1075_v26, %v9356_v0  ;;  %v1090_v40 = vcombine.high %v1082_v27, %v1082_v27  ;;  %v7838_v39 = vrot.slane %v1082_v27, 9 }
 0x11c   : > { %v4024_v41 = vsel %vm4006_vm8, %v4023_v17, %v4022_v32  ;;  %v1160_v42 = vcombine.high %v872_v28, %v872_v28  ;;  %v1167_v43 = vrot.slane %v872_v28, %v9356_v0  ;;  %v870_v45 = vmax.f32 %v640_v30, 0.0 }
 0x11d   : > { %v1091_v46 = vcombine.high %v1089_v36, %v1089_v36  ;;  %v7839_v35 = vrot.slane %v1090_v40, 9  ;;  %v7840_v47 = vrot.slane %v1089_v36, 9  ;;  %v3122_v63 = vmax.f32 %v1082_v27, %v7838_v39  ;;  %v9442_v5 = vpop.f32.mrb[24].mxu0 }
 0x11e   : > { %v4026_v10 = vsel %vm4009_vm9, %v4025_v23, %v4024_v41  ;;  %v1174_v48 = vrot.slane %v1160_v42, %v9356_v0  ;;  %v1175_v50 = vcombine.high %v1167_v43, %v1167_v43  ;;  %v7858_v51 = vrot.slane %v1167_v43, 9  ;;  %v9446_v52 = vpop.f32.mrb[25].mxu0 }
 0x11f   : > { %v7841_v53 = vrot.slane %v1091_v46, 9  ;;  %v3123_v55 = vmax.f32 %v1090_v40, %v7839_v35  ;;  %v3124_v58 = vmax.f32 %v1089_v36, %v7840_v47  ;;  %v3370_v59 = vmax.f32 %v3122_v63, %v3130_v12  ;;  %v9448_v60 = vpop.f32.mrb[26].mxu0 }
 0x120   : > { %v1176_v61 = vcombine.high %v1174_v48, %v1174_v48  ;;  %v7859_v62 = vrot.slane %v1175_v50, 9  ;;  %v7860_v4 = vrot.slane %v1174_v48, 9  ;;  %v3142_v6 = vmax.f32 %v1167_v43, %v7858_v51  ;;  %v9450_v7 = vpop.f32.mrb[27].mxu0 }
 0x121   : > { %v3125_v8 = vmax.f32 %v1091_v46, %v7841_v53  ;;  %v3371_v11 = vmax.f32 %v3123_v55, %v3131_v18  ;;  %v3372_v1 = vmax.f32 %v3124_v58, %v3132_v21  ;;  %v3629_v3 = vpack.c.bf16 %v3370_v59, %v3370_v59 }
 0x122   : > { %v7861_v15 = vrot.slane %v1176_v61, 9  ;;  %v3143_v17 = vmax.f32 %v1175_v50, %v7859_v62  ;;  %v3144_v24 = vmax.f32 %v1174_v48, %v7860_v4  ;;  %v1126_v26 = vcombine.high %v870_v45, %v870_v45  ;;  %v4254_v4 = vld [vmem:[#allocation2 + $0x10] sm:$0x1f] }
 0x123   : > { %v3373_v27 = vmax.f32 %v3125_v8, %v3133_v25  ;;  %v3630_v23 = vpack.c.bf16 %v3371_v11, %v3371_v11  ;;  %v3631_v28 = vpack.c.bf16 %v3372_v1, %v3372_v1  ;;  %v3885_v12 = vunpack.c.l.b16 %v3629_v3 }
 0x124   : > { %v3145_v30 = vmax.f32 %v1176_v61, %v7861_v15  ;;  %v1133_v32 = vrot.slane %v870_v45, %v9356_v0  ;;  %v1140_v36 = vrot.slane %v1126_v26, %v9356_v0  ;;  %v873_v40 = vmax.f32 %v651_v31, 0.0 }
 0x125   : > { %v3632_v39 = vpack.c.bf16 %v3373_v27, %v3373_v27  ;;  %v3886_v41 = vunpack.c.l.b16 %v3630_v23  ;;  %v3887_v42 = vunpack.c.l.b16 %v3631_v28  ;;  %v4027_v18 = vrot.slane %v3885_v12, 3  ;;  %v9455_v55 = vpop.f32.mrb[28].mxu0 }
 0x126   : > { %v1141_v21 = vcombine.high %v1133_v32, %v1133_v32  ;;  %v1142_v43 = vcombine.high %v1140_v36, %v1140_v36  ;;  %v7850_v46 = vrot.slane %v1133_v32, 9  ;;  %v7852_v35 = vrot.slane %v1140_v36, 9  ;;  %v9461_v62 = vpop.f32.mrb[29].mxu0 }
 0x127   : > { %v3888_v47 = vunpack.c.l.b16 %v3632_v39  ;;  %v4028_v25 = vsel %vm4012_vm10, %v4027_v18, %v4026_v10  ;;  %v4029_v63 = vrot.slane %v3886_v41, 2  ;;  %v4031_v48 = vrot.slane %v3887_v42, 1  ;;  %v9464_v3 = vpop.f32.mrb[30].mxu0 }
 0x128   : > { %v7851_v50 = vrot.slane %v1141_v21, 9  ;;  %v7853_v51 = vrot.slane %v1142_v43, 9  ;;  %v3134_v53 = vmax.f32 %v1133_v32, %v7850_v46  ;;  %v3136_v45 = vmax.f32 %v1140_v36, %v7852_v35  ;;  %v9467_v28 = vpop.f32.mrb[31].mxu0 }
 0x129   : > { %v4030_v31 = vsel %vm4015_vm11, %v4029_v63, %v4028_v25  ;;  %v1177_v58 = vcombine.high %v873_v40, %v873_v40  ;;  %v1184_v59 = vrot.slane %v873_v40, %v9356_v0  ;;  %v643_v61 = vadd.f32 %v9348_v57, %v9379_v16 }
 0x12a   : > { %v4032_v10 = vsel %vm4018_vm12, %v4031_v48, %v4030_v31  ;;  %v3135_v8 = vmax.f32 %v1141_v21, %v7851_v50  ;;  %v3137_v11 = vmax.f32 %v1142_v43, %v7853_v51  ;;  %v3374_v1 = vmax.f32 %v3134_v53, %v3142_v6 }
 0x12b   : > { %v4216_v15 = vpack.c.b16 %v3888_v47, %v4032_v10  ;;  %v3376_v26 = vmax.f32 %v3136_v45, %v3144_v24  ;;  %v1191_v27 = vrot.slane %v1177_v58, %v9356_v0  ;;  %v1192_v23 = vcombine.high %v1184_v59, %v1184_v59 }
 0x12c   : > { %v3375_v12 = vmax.f32 %v3135_v8, %v3143_v17  ;;  %v3377_v32 = vmax.f32 %v3137_v11, %v3145_v30  ;;  %v3633_v16 = vpack.c.bf16 %v3374_v1, %v3374_v1  ;;  %v7862_v36 = vrot.slane %v1184_v59, 9 }
 0x12d   : > { %v4255_v40 = vsel %vm9417_vm15, %v4216_v15, %v4254_v4  ;;  %v3635_v39 = vpack.c.bf16 %v3376_v26, %v3376_v26  ;;  %v1193_v41 = vcombine.high %v1191_v27, %v1191_v27  ;;  %v7863_v42 = vrot.slane %v1192_v23, 9 }
 0x12e   : > { %4256 = vst [vmem:[#allocation2 + $0x10] sm:$0x1f] %v4255_v40  ;;  %v3634_v6 = vpack.c.bf16 %v3375_v12, %v3375_v12  ;;  %v3636_v18 = vpack.c.bf16 %v3377_v32, %v3377_v32  ;;  %v3889_v21 = vunpack.c.l.b16 %v3633_v16  ;;  %v7864_v24 = vrot.slane %v1191_v27, 9 }
 0x12f   : > { %v3891_v43 = vunpack.c.l.b16 %v3635_v39  ;;  %v7865_v46 = vrot.slane %v1193_v41, 9  ;;  %v3146_v35 = vmax.f32 %v1184_v59, %v7862_v36  ;;  %v3147_v47 = vmax.f32 %v1192_v23, %v7863_v42 }
 0x130   : > { %v3890_v25 = vunpack.c.l.b16 %v3634_v6  ;;  %v3892_v17 = vunpack.c.l.b16 %v3636_v18  ;;  %v4033_v30 = vrot.slane %v3889_v21, 7  ;;  %v3148_v63 = vmax.f32 %v1191_v27, %v7864_v24 }
 0x131   : > { %v4036_v48 = vrot.slane %v3891_v43, 5  ;;  %v3149_v50 = vmax.f32 %v1193_v41, %v7865_v46  ;;  %v871_v51 = vmax.f32 %v643_v61, 0.0  ;;  %v664_v53 = vadd.f32 %v9388_v38, %v9348_v57 }
 0x132   : > { %v4034_v45 = vrot.slane %v3890_v25, 6  ;;  %v4038_v31 = vrot.slane %v3892_v17, 4  ;;  %v656_v58 = vadd.f32 %v9348_v57, %v9390_v44  ;;  %v667_v10 = vadd.f32 %v9393_v49, %v9348_v57 }
 0x133   : > { %v1143_v59 = vcombine.high %v871_v51, %v871_v51  ;;  %v1150_v4 = vrot.slane %v871_v51, %v9356_v0  ;;  %v876_v8 = vmax.f32 %v664_v53, 0.0  ;;  %v9480_v11 = vadd.f32 %v9348_v57, %v9396_v54 }
 0x134   : > { %v4035_v61 = vsel %vm4003_vm7, %v4034_v45, %v4033_v30  ;;  %v874_v1 = vmax.f32 %v656_v58, 0.0  ;;  %v9483_v38 = vmax.f32 %v667_v10, 0.0  ;;  %v9487_v15 = vadd.f32 %v9399_v19, %v9348_v57 }
 0x135   : > { %v4037_v44 = vsel %vm4006_vm8, %v4036_v48, %v4035_v61  ;;  %v1157_v49 = vrot.slane %v1143_v59, %v9356_v0  ;;  %v1158_v26 = vcombine.high %v1150_v4, %v1150_v4  ;;  %v7854_v27 = vrot.slane %v1150_v4, 9 }
 0x136   : > { %v4039_v23 = vsel %vm4009_vm9, %v4038_v31, %v4037_v44  ;;  %v1228_v12 = vcombine.high %v876_v8, %v876_v8  ;;  %v1235_v54 = vrot.slane %v876_v8, %v9356_v0  ;;  %v1194_v32 = vcombine.high %v874_v1, %v874_v1 }
 0x137   : > { %v1159_v16 = vcombine.high %v1157_v49, %v1157_v49  ;;  %v7855_v36 = vrot.slane %v1158_v26, 9  ;;  %v7856_v40 = vrot.slane %v1157_v49, 9  ;;  %v3138_v39 = vmax.f32 %v1150_v4, %v7854_v27 }
 0x138   : > { %v1242_v41 = vrot.slane %v1228_v12, %v9356_v0  ;;  %v1243_v19 = vcombine.high %v1235_v54, %v1235_v54  ;;  %v7874_v42 = vrot.slane %v1235_v54, 9  ;;  %v1201_v6 = vrot.slane %v874_v1, %v9356_v0 }
 0x139   : > { %v7857_v18 = vrot.slane %v1159_v16, 9  ;;  %v3139_v21 = vmax.f32 %v1158_v26, %v7855_v36  ;;  %v3140_v24 = vmax.f32 %v1157_v49, %v7856_v40  ;;  %v3378_v43 = vmax.f32 %v3138_v39, %v3146_v35 }
 0x13a   : > { %v1244_v46 = vcombine.high %v1242_v41, %v1242_v41  ;;  %v7875_v25 = vrot.slane %v1243_v19, 9  ;;  %v7876_v17 = vrot.slane %v1242_v41, 9  ;;  %v3158_v30 = vmax.f32 %v1235_v54, %v7874_v42 }
 0x13b   : > { %v3141_v48 = vmax.f32 %v1159_v16, %v7857_v18  ;;  %v3379_v51 = vmax.f32 %v3139_v21, %v3147_v47  ;;  %v3380_v53 = vmax.f32 %v3140_v24, %v3148_v63  ;;  %v3637_v45 = vpack.c.bf16 %v3378_v43, %v3378_v43 }
 0x13c   : > { %v7877_v31 = vrot.slane %v1244_v46, 9  ;;  %v3159_v58 = vmax.f32 %v1243_v19, %v7875_v25  ;;  %v3160_v10 = vmax.f32 %v1242_v41, %v7876_v17  ;;  %v1208_v59 = vrot.slane %v1194_v32, %v9356_v0  ;;  %v4257_v17 = vld [vmem:[#allocation2 + $0x18] sm:$0x1f] }
 0x13d   : > { %v3381_v4 = vmax.f32 %v3141_v48, %v3149_v50  ;;  %v3638_v8 = vpack.c.bf16 %v3379_v51, %v3379_v51  ;;  %v3639_v61 = vpack.c.bf16 %v3380_v53, %v3380_v53  ;;  %v3893_v1 = vunpack.c.l.b16 %v3637_v45 }
 0x13e   : > { %v3161_v44 = vmax.f32 %v1244_v46, %v7877_v31  ;;  %v1209_v49 = vcombine.high %v1201_v6, %v1201_v6  ;;  %v1210_v35 = vcombine.high %v1208_v59, %v1208_v59  ;;  %v7866_v26 = vrot.slane %v1201_v6, 9 }
 0x13f   : > { %v3640_v27 = vpack.c.bf16 %v3381_v4, %v3381_v4  ;;  %v3894_v12 = vunpack.c.l.b16 %v3638_v8  ;;  %v3895_v54 = vunpack.c.l.b16 %v3639_v61  ;;  %v4040_v16 = vrot.slane %v3893_v1, 3 }
 0x140   : > { %v7867_v47 = vrot.slane %v1209_v49, 9  ;;  %v7868_v63 = vrot.slane %v1208_v59, 9  ;;  %v7869_v36 = vrot.slane %v1210_v35, 9  ;;  %v3150_v40 = vmax.f32 %v1201_v6, %v7866_v26 }
 0x141   : > { %v3896_v39 = vunpack.c.l.b16 %v3640_v27  ;;  %v4041_v41 = vsel %vm4012_vm10, %v4040_v16, %v4039_v23  ;;  %v4042_v32 = vrot.slane %v3894_v12, 2  ;;  %v4044_v50 = vrot.slane %v3895_v54, 1  ;;  %v9507_v16 = vpop.f32.mrb[32].mxu0 }
 0x142   : > { %v3151_v19 = vmax.f32 %v1209_v49, %v7867_v47  ;;  %v3152_v42 = vmax.f32 %v1208_v59, %v7868_v63  ;;  %v3153_v18 = vmax.f32 %v1210_v35, %v7869_v36  ;;  %v3382_v21 = vmax.f32 %v3150_v40, %v3158_v30 }
 0x143   : > { %v4043_v24 = vsel %vm4015_vm11, %v4042_v32, %v4041_v41  ;;  %v1245_v43 = vcombine.high %v9483_v38, %v9483_v38  ;;  %v1252_v46 = vrot.slane %v9483_v38, %v9356_v0  ;;  %v875_v25 = vmax.f32 %v9480_v11, 0.0 }
 0x144   : > { %v4045_v6 = vsel %vm4018_vm12, %v4044_v50, %v4043_v24  ;;  %v3383_v23 = vmax.f32 %v3151_v19, %v3159_v58  ;;  %v3384_v48 = vmax.f32 %v3152_v42, %v3160_v10  ;;  %v3385_v51 = vmax.f32 %v3153_v18, %v3161_v44 }
 0x145   : > { %v4217_v53 = vpack.c.b16 %v3896_v39, %v4045_v6  ;;  %v3641_v45 = vpack.c.bf16 %v3382_v21, %v3382_v21  ;;  %v1259_v30 = vrot.slane %v1245_v43, %v9356_v0  ;;  %v1260_v31 = vcombine.high %v1252_v46, %v1252_v46  ;;  %v9509_v39 = vpop.f32.mrb[33].mxu0 }
 0x146   : > { %v3642_v59 = vpack.c.bf16 %v3383_v23, %v3383_v23  ;;  %v3643_v4 = vpack.c.bf16 %v3384_v48, %v3384_v48  ;;  %v3644_v8 = vpack.c.bf16 %v3385_v51, %v3385_v51  ;;  %v7878_v61 = vrot.slane %v1252_v46, 9 }
 0x147   : > { %v4258_v38 = vsel %vm9417_vm15, %v4217_v53, %v4257_v17  ;;  %v3897_v1 = vunpack.c.l.b16 %v3641_v45  ;;  %v1261_v11 = vcombine.high %v1259_v30, %v1259_v30  ;;  %v7879_v49 = vrot.slane %v1260_v31, 9 }
 0x148   : > { %4259 = vst [vmem:[#allocation2 + $0x18] sm:$0x1f] %v4258_v38  ;;  %v3898_v35 = vunpack.c.l.b16 %v3642_v59  ;;  %v3899_v58 = vunpack.c.l.b16 %v3643_v4  ;;  %v3900_v10 = vunpack.c.l.b16 %v3644_v8  ;;  %v7880_v44 = vrot.slane %v1259_v30, 9  ;;  %v9525_v59 = vpop.f32.mrb[34].mxu0 }
 0x149   : > { %v4046_v26 = vrot.slane %v3897_v1, 7  ;;  %v7881_v27 = vrot.slane %v1261_v11, 9  ;;  %v3162_v12 = vmax.f32 %v1252_v46, %v7878_v61  ;;  %v3163_v54 = vmax.f32 %v1260_v31, %v7879_v49  ;;  %v9527_v1 = vpop.f32.mrb[35].mxu0 }
 0x14a   : > { %v4047_v47 = vrot.slane %v3898_v35, 6  ;;  %v4049_v63 = vrot.slane %v3899_v58, 5  ;;  %v4051_v36 = vrot.slane %v3900_v10, 4  ;;  %v3164_v40 = vmax.f32 %v1259_v30, %v7880_v44 }
 0x14b   : > { %v3165_v41 = vmax.f32 %v1261_v11, %v7881_v27  ;;  %v1211_v32 = vcombine.high %v875_v25, %v875_v25  ;;  %v1218_v50 = vrot.slane %v875_v25, %v9356_v0  ;;  %v880_v19 = vmax.f32 %v9487_v15, 0.0 }
 0x14c   : > { %v4048_v42 = vsel %vm4003_vm7, %v4047_v47, %v4046_v26  ;;  %v672_v18 = vadd.f32 %v9348_v57, %v9402_v14  ;;  %v683_v21 = vadd.f32 %v9407_v29, %v9348_v57  ;;  %v675_v24 = vadd.f32 %v9348_v57, %v9412_v33 }
 0x14d   : > { %v4050_v43 = vsel %vm4006_vm8, %v4049_v63, %v4048_v42  ;;  %v1225_v46 = vrot.slane %v1211_v32, %v9356_v0  ;;  %v1226_v6 = vcombine.high %v1218_v50, %v1218_v50  ;;  %v7870_v17 = vrot.slane %v1218_v50, 9 }
 0x14e   : > { %v4052_v25 = vsel %vm4009_vm9, %v4051_v36, %v4050_v43  ;;  %v1296_v15 = vcombine.high %v880_v19, %v880_v19  ;;  %v1303_v23 = vrot.slane %v880_v19, %v9356_v0  ;;  %v878_v48 = vmax.f32 %v672_v18, 0.0 }
 0x14f   : > { %v1227_v51 = vcombine.high %v1225_v46, %v1225_v46  ;;  %v7871_v14 = vrot.slane %v1226_v6, 9  ;;  %v7872_v53 = vrot.slane %v1225_v46, 9  ;;  %v3154_v45 = vmax.f32 %v1218_v50, %v7870_v17 }
 0x150   : > { %v1310_v29 = vrot.slane %v1296_v15, %v9356_v0  ;;  %v1311_v30 = vcombine.high %v1303_v23, %v1303_v23  ;;  %v7890_v33 = vrot.slane %v1303_v23, 9  ;;  %v1262_v31 = vcombine.high %v878_v48, %v878_v48 }
 0x151   : > { %v7873_v4 = vrot.slane %v1227_v51, 9  ;;  %v3155_v8 = vmax.f32 %v1226_v6, %v7871_v14  ;;  %v3156_v61 = vmax.f32 %v1225_v46, %v7872_v53  ;;  %v3386_v38 = vmax.f32 %v3154_v45, %v3162_v12 }
 0x152   : > { %v1312_v11 = vcombine.high %v1310_v29, %v1310_v29  ;;  %v7891_v49 = vrot.slane %v1311_v30, 9  ;;  %v7892_v35 = vrot.slane %v1310_v29, 9  ;;  %v3174_v58 = vmax.f32 %v1303_v23, %v7890_v33 }
 0x153   : > { %v3157_v10 = vmax.f32 %v1227_v51, %v7873_v4  ;;  %v3387_v44 = vmax.f32 %v3155_v8, %v3163_v54  ;;  %v3388_v26 = vmax.f32 %v3156_v61, %v3164_v40  ;;  %v3645_v27 = vpack.c.bf16 %v3386_v38, %v3386_v38 }
 0x154   : > { %v7893_v47 = vrot.slane %v1312_v11, 9  ;;  %v3175_v63 = vmax.f32 %v1311_v30, %v7891_v49  ;;  %v3176_v36 = vmax.f32 %v1310_v29, %v7892_v35  ;;  %v1269_v32 = vrot.slane %v878_v48, %v9356_v0  ;;  %v4260_v35 = vld [vmem:[#allocation2 + $0x20] sm:$0x1f] }
 0x155   : > { %v3389_v50 = vmax.f32 %v3157_v10, %v3165_v41  ;;  %v3646_v19 = vpack.c.bf16 %v3387_v44, %v3387_v44  ;;  %v3647_v42 = vpack.c.bf16 %v3388_v26, %v3388_v26  ;;  %v3901_v18 = vunpack.c.l.b16 %v3645_v27 }
 0x156   : > { %v3177_v12 = vmax.f32 %v1312_v11, %v7893_v47  ;;  %v1276_v43 = vrot.slane %v1262_v31, %v9356_v0  ;;  %v1277_v46 = vcombine.high %v1269_v32, %v1269_v32  ;;  %v7882_v6 = vrot.slane %v1269_v32, 9 }
 0x157   : > { %v3648_v17 = vpack.c.bf16 %v3389_v50, %v3389_v50  ;;  %v3902_v15 = vunpack.c.l.b16 %v3646_v19  ;;  %v3903_v23 = vunpack.c.l.b16 %v3647_v42  ;;  %v4053_v54 = vrot.slane %v3901_v18, 3 }
 0x158   : > { %v1278_v40 = vcombine.high %v1276_v43, %v1276_v43  ;;  %v7883_v51 = vrot.slane %v1277_v46, 9  ;;  %v7884_v14 = vrot.slane %v1276_v43, 9  ;;  %v3166_v53 = vmax.f32 %v1269_v32, %v7882_v6 }
 0x159   : > { %v3904_v45 = vunpack.c.l.b16 %v3648_v17  ;;  %v4054_v48 = vsel %vm4012_vm10, %v4053_v54, %v4052_v25  ;;  %v4055_v41 = vrot.slane %v3902_v15, 2  ;;  %v4057_v29 = vrot.slane %v3903_v23, 1 }
 0x15a   : > { %v7885_v30 = vrot.slane %v1278_v40, 9  ;;  %v3167_v33 = vmax.f32 %v1277_v46, %v7883_v51  ;;  %v3168_v4 = vmax.f32 %v1276_v43, %v7884_v14  ;;  %v3390_v8 = vmax.f32 %v3166_v53, %v3174_v58 }
 0x15b   : > { %v4056_v31 = vsel %vm4015_vm11, %v4055_v41, %v4054_v48  ;;  %v881_v61 = vmax.f32 %v683_v21, 0.0  ;;  %v879_v38 = vmax.f32 %v675_v24, 0.0  ;;  %v696_v11 = vadd.f32 %v9425_v2, %v9348_v57  ;;  %v9541_v48 = vpop.f32.mrb[36].mxu0 }
 0x15c   : > { %v4058_v49 = vsel %vm4018_vm12, %v4057_v29, %v4056_v31  ;;  %v3169_v10 = vmax.f32 %v1278_v40, %v7885_v30  ;;  %v3391_v44 = vmax.f32 %v3167_v33, %v3175_v63  ;;  %v3392_v26 = vmax.f32 %v3168_v4, %v3176_v36 }
 0x15d   : > { %v4218_v25 = vpack.c.b16 %v3904_v45, %v4058_v49  ;;  %v3649_v27 = vpack.c.bf16 %v3390_v8, %v3390_v8  ;;  %v1313_v47 = vcombine.high %v881_v61, %v881_v61  ;;  %v1320_v32 = vrot.slane %v881_v61, %v9356_v0 }
 0x15e   : > { %v3393_v50 = vmax.f32 %v3169_v10, %v3177_v12  ;;  %v3650_v58 = vpack.c.bf16 %v3391_v44, %v3391_v44  ;;  %v3651_v19 = vpack.c.bf16 %v3392_v26, %v3392_v26  ;;  %v1279_v42 = vcombine.high %v879_v38, %v879_v38  ;;  %v9547_v26 = vpop.f32.mrb[37].mxu0 }
 0x15f   : > { %v4261_v21 = vsel %vm9417_vm15, %v4218_v25, %v4260_v35  ;;  %v3905_v24 = vunpack.c.l.b16 %v3649_v27  ;;  %v1327_v57 = vrot.slane %v1313_v47, %v9356_v0  ;;  %v1328_v2 = vcombine.high %v1320_v32, %v1320_v32 }
 0x160   : > { %4262 = vst [vmem:[#allocation2 + $0x20] sm:$0x1f] %v4261_v21  ;;  %v3652_v18 = vpack.c.bf16 %v3393_v50, %v3393_v50  ;;  %v3906_v63 = vunpack.c.l.b16 %v3650_v58  ;;  %v3907_v36 = vunpack.c.l.b16 %v3651_v19  ;;  %v7894_v43 = vrot.slane %v1320_v32, 9 }
 0x161   : > { %v4059_v46 = vrot.slane %v3905_v24, 7  ;;  %v1329_v6 = vcombine.high %v1327_v57, %v1327_v57  ;;  %v7895_v17 = vrot.slane %v1328_v2, 9  ;;  %v7896_v15 = vrot.slane %v1327_v57, 9 }
 0x162   : > { %v3908_v12 = vunpack.c.l.b16 %v3652_v18  ;;  %v4060_v23 = vrot.slane %v3906_v63, 6  ;;  %v4062_v54 = vrot.slane %v3907_v36, 5  ;;  %v3178_v40 = vmax.f32 %v1320_v32, %v7894_v43  ;;  %v9560_v43 = vpop.f32.mrb[38].mxu0 }
 0x163   : > { %v7897_v51 = vrot.slane %v1329_v6, 9  ;;  %v3179_v14 = vmax.f32 %v1328_v2, %v7895_v17  ;;  %v3180_v53 = vmax.f32 %v1327_v57, %v7896_v15  ;;  %v1286_v45 = vrot.slane %v879_v38, %v9356_v0  ;;  %v9562_v15 = vpop.f32.mrb[39].mxu0 }
 0x164   : > { %v4061_v41 = vsel %vm4003_vm7, %v4060_v23, %v4059_v46  ;;  %v4064_v29 = vrot.slane %v3908_v12, 4  ;;  %v1293_v30 = vrot.slane %v1279_v42, %v9356_v0  ;;  %v884_v33 = vmax.f32 %v696_v11, 0.0  ;;  %v9553_v11 = vld [vmem:[%s10644_s2] ss:$0 sm:$0xff] }
 0x165   : > { %v4063_v4 = vsel %vm4006_vm8, %v4062_v54, %v4061_v41  ;;  %v3181_v8 = vmax.f32 %v1329_v6, %v7897_v51  ;;  %v1294_v31 = vcombine.high %v1286_v45, %v1286_v45  ;;  %v7886_v61 = vrot.slane %v1286_v45, 9 }
 0x166   : > { %v1295_v49 = vcombine.high %v1293_v30, %v1293_v30  ;;  %v7888_v35 = vrot.slane %v1293_v30, 9  ;;  %v4065_v10 = vsel %vm4009_vm9, %v4064_v29, %v4063_v4  ;;  %v1364_v44 = vcombine.high %v884_v33, %v884_v33 }
 0x167   : > { %v7887_v38 = vrot.slane %v1294_v31, 9  ;;  %v3170_v25 = vmax.f32 %v1286_v45, %v7886_v61  ;;  %v1371_v27 = vrot.slane %v884_v33, %v9356_v0  ;;  %v688_v47 = vadd.f32 %v9553_v11, %v9427_v9 }
 0x168   : > { %v7889_v32 = vrot.slane %v1295_v49, 9  ;;  %v3172_v50 = vmax.f32 %v1293_v30, %v7888_v35  ;;  %v1378_v58 = vrot.slane %v1364_v44, %v9356_v0  ;;  %v699_v19 = vadd.f32 %v9553_v11, %v9429_v13 }
 0x169   : > { %v3171_v42 = vmax.f32 %v1294_v31, %v7887_v38  ;;  %v3394_v21 = vmax.f32 %v3170_v25, %v3178_v40  ;;  %v1379_v24 = vcombine.high %v1371_v27, %v1371_v27  ;;  %v7906_v57 = vrot.slane %v1371_v27, 9 }
 0x16a   : > { %v3173_v2 = vmax.f32 %v1295_v49, %v7889_v32  ;;  %v3396_v18 = vmax.f32 %v3172_v50, %v3180_v53  ;;  %v1380_v63 = vcombine.high %v1378_v58, %v1378_v58  ;;  %v7908_v36 = vrot.slane %v1378_v58, 9 }
 0x16b   : > { %v3395_v46 = vmax.f32 %v3171_v42, %v3179_v14  ;;  %v3653_v6 = vpack.c.bf16 %v3394_v21, %v3394_v21  ;;  %v7907_v9 = vrot.slane %v1379_v24, 9  ;;  %v3190_v17 = vmax.f32 %v1371_v27, %v7906_v57 }
 0x16c   : > { %v3397_v12 = vmax.f32 %v3173_v2, %v3181_v8  ;;  %v3655_v23 = vpack.c.bf16 %v3396_v18, %v3396_v18  ;;  %v7909_v54 = vrot.slane %v1380_v63, 9  ;;  %v3192_v13 = vmax.f32 %v1378_v58, %v7908_v36  ;;  %v4263_v18 = vld [vmem:[#allocation2 + $0x28] sm:$0x1f] }
 0x16d   : > { %v3654_v51 = vpack.c.bf16 %v3395_v46, %v3395_v46  ;;  %v3909_v40 = vunpack.c.l.b16 %v3653_v6  ;;  %v3191_v45 = vmax.f32 %v1379_v24, %v7907_v9  ;;  %v882_v41 = vmax.f32 %v688_v47, 0.0 }
 0x16e   : > { %v3656_v29 = vpack.c.bf16 %v3397_v12, %v3397_v12  ;;  %v3911_v53 = vunpack.c.l.b16 %v3655_v23  ;;  %v3193_v30 = vmax.f32 %v1380_v63, %v7909_v54  ;;  %v885_v33 = vmax.f32 %v699_v19, 0.0 }
 0x16f   : > { %v3910_v4 = vunpack.c.l.b16 %v3654_v51  ;;  %v4066_v31 = vrot.slane %v3909_v40, 3  ;;  %v1330_v14 = vcombine.high %v882_v41, %v882_v41  ;;  %v1337_v61 = vrot.slane %v882_v41, %v9356_v0 }
 0x170   : > { %v3912_v49 = vunpack.c.l.b16 %v3656_v29  ;;  %v4070_v35 = vrot.slane %v3911_v53, 1  ;;  %v1381_v44 = vcombine.high %v885_v33, %v885_v33  ;;  %v1388_v8 = vrot.slane %v885_v33, %v9356_v0 }
 0x171   : > { %v4067_v38 = vsel %vm4012_vm10, %v4066_v31, %v4065_v10  ;;  %v4068_v25 = vrot.slane %v3910_v4, 2  ;;  %v1344_v27 = vrot.slane %v1330_v14, %v9356_v0  ;;  %v1345_v47 = vcombine.high %v1337_v61, %v1337_v61  ;;  %v3512_v4 = vld [vmem:[#allocation2 + $0x30] sm:$0x1]  ;;  %v3575_v31 = vld [vmem:[#allocation2 + $0x30] sm:$0x10] }
 0x172   : > { %v7898_v32 = vrot.slane %v1337_v61, 9  ;;  %v1395_v50 = vrot.slane %v1381_v44, %v9356_v0  ;;  %v1396_v58 = vcombine.high %v1388_v8, %v1388_v8  ;;  %v7910_v19 = vrot.slane %v1388_v8, 9 }
 0x173   : > { %v4069_v42 = vsel %vm4015_vm11, %v4068_v25, %v4067_v38  ;;  %v1346_v21 = vcombine.high %v1344_v27, %v1344_v27  ;;  %v7899_v24 = vrot.slane %v1345_v47, 9  ;;  %v7900_v57 = vrot.slane %v1344_v27, 9 }
 0x174   : > { %v4071_v2 = vsel %vm4018_vm12, %v4070_v35, %v4069_v42  ;;  %v3182_v63 = vmax.f32 %v1337_v61, %v7898_v32  ;;  %v1397_v36 = vcombine.high %v1395_v50, %v1395_v50  ;;  %v7911_v10 = vrot.slane %v1396_v58, 9 }
 0x175   : > { %v4219_v46 = vpack.c.b16 %v3912_v49, %v4071_v2  ;;  %v7901_v6 = vrot.slane %v1346_v21, 9  ;;  %v3183_v9 = vmax.f32 %v1345_v47, %v7899_v24  ;;  %v3184_v12 = vmax.f32 %v1344_v27, %v7900_v57 }
 0x176   : > { %v3398_v23 = vmax.f32 %v3182_v63, %v3190_v17  ;;  %v7912_v54 = vrot.slane %v1395_v50, 9  ;;  %v7913_v51 = vrot.slane %v1397_v36, 9  ;;  %v3194_v40 = vmax.f32 %v1388_v8, %v7910_v19 }
 0x177   : > { %v4264_v41 = vsel %vm9417_vm15, %v4219_v46, %v4263_v18  ;;  %v3185_v29 = vmax.f32 %v1346_v21, %v7901_v6  ;;  %v3399_v53 = vmax.f32 %v3183_v9, %v3191_v45  ;;  %v3400_v33 = vmax.f32 %v3184_v12, %v3192_v13 }
 0x178   : > { %4265 = vst [vmem:[#allocation2 + $0x28] sm:$0x1f] %v4264_v41  ;;  %v3657_v14 = vpack.c.bf16 %v3398_v23, %v3398_v23  ;;  %v3195_v61 = vmax.f32 %v1396_v58, %v7911_v10  ;;  %v3196_v35 = vmax.f32 %v1395_v50, %v7912_v54  ;;  %v3197_v49 = vmax.f32 %v1397_v36, %v7913_v51 }
 0x179   : > { %v3401_v44 = vmax.f32 %v3185_v29, %v3193_v30  ;;  %v3658_v38 = vpack.c.bf16 %v3399_v53, %v3399_v53  ;;  %v3659_v25 = vpack.c.bf16 %v3400_v33, %v3400_v33  ;;  %v691_v17 = vadd.f32 %v9553_v11, %v9431_v22  ;;  %v9592_v53 = vpop.f32.mrb[40].mxu0 }
 0x17a   : > { %v3913_v8 = vunpack.c.l.b16 %v3657_v14  ;;  %v3513_v27 = vsel %vm9315_vm4, 0, %v3512_v4  ;;  %v3576_v13 = vsel %vm9322_vm6, 0, %v3575_v31  ;;  %v712_v45 = vadd.f32 %v9553_v11, %v9442_v5 }
 0x17b   : > { %v3660_v47 = vpack.c.bf16 %v3401_v44, %v3401_v44  ;;  %v3914_v32 = vunpack.c.l.b16 %v3658_v38  ;;  %v3915_v50 = vunpack.c.l.b16 %v3659_v25  ;;  %v883_v58 = vmax.f32 %v691_v17, 0.0  ;;  %3514 = vst [vmem:[#allocation2 + $0x30] sm:$0x1] %v3513_v27  ;;  %3577 = vst [vmem:[#allocation2 + $0x30] sm:$0x10] %v3576_v13 }
 0x17c   : > { %v4072_v30 = vrot.slane %v3913_v8, 7  ;;  %v888_v19 = vmax.f32 %v712_v45, 0.0  ;;  %v704_v22 = vadd.f32 %v9553_v11, %v9446_v52  ;;  %v715_v42 = vadd.f32 %v9553_v11, %v9448_v60 }
 0x17d   : > { %v3916_v21 = vunpack.c.l.b16 %v3660_v47  ;;  %v4073_v24 = vrot.slane %v3914_v32, 6  ;;  %v4075_v57 = vrot.slane %v3915_v50, 5  ;;  %v1347_v2 = vcombine.high %v883_v58, %v883_v58 }
 0x17e   : > { %v1354_v5 = vrot.slane %v883_v58, %v9356_v0  ;;  %v1432_v18 = vcombine.high %v888_v19, %v888_v19  ;;  %v1439_v63 = vrot.slane %v888_v19, %v9356_v0  ;;  %v886_v36 = vmax.f32 %v704_v22, 0.0 }
 0x17f   : > { %v4074_v10 = vsel %vm4003_vm7, %v4073_v24, %v4072_v30  ;;  %v4077_v46 = vrot.slane %v3916_v21, 4  ;;  %v1361_v6 = vrot.slane %v1347_v2, %v9356_v0  ;;  %v889_v9 = vmax.f32 %v715_v42, 0.0  ;;  %v9594_v30 = vpop.f32.mrb[41].mxu0 }
 0x180   : > { %v4076_v52 = vsel %vm4006_vm8, %v4075_v57, %v4074_v10  ;;  %v1362_v12 = vcombine.high %v1354_v5, %v1354_v5  ;;  %v7902_v60 = vrot.slane %v1354_v5, 9  ;;  %v1446_v23 = vrot.slane %v1432_v18, %v9356_v0 }
 0x181   : > { %v1363_v54 = vcombine.high %v1361_v6, %v1361_v6  ;;  %v7904_v51 = vrot.slane %v1361_v6, 9  ;;  %v4078_v41 = vsel %vm4009_vm9, %v4077_v46, %v4076_v52  ;;  %v1447_v29 = vcombine.high %v1439_v63, %v1439_v63 }
 0x182   : > { %v7903_v33 = vrot.slane %v1362_v12, 9  ;;  %v3186_v4 = vmax.f32 %v1354_v5, %v7902_v60  ;;  %v1448_v31 = vcombine.high %v1446_v23, %v1446_v23  ;;  %v7922_v14 = vrot.slane %v1439_v63, 9 }
 0x183   : > { %v7905_v44 = vrot.slane %v1363_v54, 9  ;;  %v3188_v38 = vmax.f32 %v1361_v6, %v7904_v51  ;;  %v7923_v25 = vrot.slane %v1447_v29, 9  ;;  %v7924_v17 = vrot.slane %v1446_v23, 9 }
 0x184   : > { %v3187_v8 = vmax.f32 %v1362_v12, %v7903_v33  ;;  %v3402_v27 = vmax.f32 %v3186_v4, %v3194_v40  ;;  %v7925_v13 = vrot.slane %v1448_v31, 9  ;;  %v3206_v45 = vmax.f32 %v1439_v63, %v7922_v14 }
 0x185   : > { %v3189_v47 = vmax.f32 %v1363_v54, %v7905_v44  ;;  %v3404_v32 = vmax.f32 %v3188_v38, %v3196_v35  ;;  %v3207_v50 = vmax.f32 %v1447_v29, %v7923_v25  ;;  %v3208_v58 = vmax.f32 %v1446_v23, %v7924_v17  ;;  %v9601_v25 = vpop.f32.mrb[42].mxu0 }
 0x186   : > { %v3403_v19 = vmax.f32 %v3187_v8, %v3195_v61  ;;  %v3661_v22 = vpack.c.bf16 %v3402_v27, %v3402_v27  ;;  %v3209_v42 = vmax.f32 %v1448_v31, %v7925_v13  ;;  %v1398_v21 = vcombine.high %v886_v36, %v886_v36 }
 0x187   : > { %v3405_v24 = vmax.f32 %v3189_v47, %v3197_v49  ;;  %v3663_v57 = vpack.c.bf16 %v3404_v32, %v3404_v32  ;;  %v1405_v2 = vrot.slane %v886_v36, %v9356_v0  ;;  %v1449_v5 = vcombine.high %v889_v9, %v889_v9  ;;  %v9604_v47 = vpop.f32.mrb[43].mxu0 }
 0x188   : > { %v3662_v18 = vpack.c.bf16 %v3403_v19, %v3403_v19  ;;  %v3917_v10 = vunpack.c.l.b16 %v3661_v22  ;;  %v1412_v40 = vrot.slane %v1398_v21, %v9356_v0  ;;  %v1456_v63 = vrot.slane %v889_v9, %v9356_v0 }
 0x189   : > { %v3664_v35 = vpack.c.bf16 %v3405_v24, %v3405_v24  ;;  %v3919_v46 = vunpack.c.l.b16 %v3663_v57  ;;  %v1413_v6 = vcombine.high %v1405_v2, %v1405_v2  ;;  %v7914_v52 = vrot.slane %v1405_v2, 9 }
 0x18a   : > { %v3918_v12 = vunpack.c.l.b16 %v3662_v18  ;;  %v4079_v61 = vrot.slane %v3917_v10, 3  ;;  %v1414_v60 = vcombine.high %v1412_v40, %v1412_v40  ;;  %v7916_v23 = vrot.slane %v1412_v40, 9 }
 0x18b   : > { %v3920_v54 = vunpack.c.l.b16 %v3664_v35  ;;  %v4083_v49 = vrot.slane %v3919_v46, 1  ;;  %v7915_v51 = vrot.slane %v1413_v6, 9  ;;  %v3198_v29 = vmax.f32 %v1405_v2, %v7914_v52  ;;  %v3515_v52 = vld [vmem:[#allocation2 + $0x38] sm:$0x1] }
 0x18c   : > { %v4080_v36 = vsel %vm4012_vm10, %v4079_v61, %v4078_v41  ;;  %v4081_v33 = vrot.slane %v3918_v12, 2  ;;  %v7917_v4 = vrot.slane %v1414_v60, 9  ;;  %v3200_v31 = vmax.f32 %v1412_v40, %v7916_v23  ;;  %v4266_v41 = vld [vmem:[#allocation2 + $0x30] sm:$0x1f]  ;;  %v3578_v12 = vld [vmem:[#allocation2 + $0x38] sm:$0x10] }
 0x18d   : > { %v3199_v14 = vmax.f32 %v1413_v6, %v7915_v51  ;;  %v3406_v44 = vmax.f32 %v3198_v29, %v3206_v45  ;;  %v1463_v9 = vrot.slane %v1449_v5, %v9356_v0  ;;  %v1464_v38 = vcombine.high %v1456_v63, %v1456_v63 }
 0x18e   : > { %v4082_v17 = vsel %vm4015_vm11, %v4081_v33, %v4080_v36  ;;  %v3201_v8 = vmax.f32 %v1414_v60, %v7917_v4  ;;  %v3408_v27 = vmax.f32 %v3200_v31, %v3208_v58  ;;  %v7926_v13 = vrot.slane %v1456_v63, 9  ;;  %v5311_v33 = vld [vmem:[#allocation2 + $0x10] sm:$0x1e] }
 0x18f   : > { %v4084_v32 = vsel %vm4018_vm12, %v4083_v49, %v4082_v17  ;;  %v3407_v19 = vmax.f32 %v3199_v14, %v3207_v50  ;;  %v3665_v22 = vpack.c.bf16 %v3406_v44, %v3406_v44  ;;  %v1465_v21 = vcombine.high %v1463_v9, %v1463_v9 }
 0x190   : > { %v4220_v24 = vpack.c.b16 %v3920_v54, %v4084_v32  ;;  %v3409_v45 = vmax.f32 %v3201_v8, %v3209_v42  ;;  %v3667_v57 = vpack.c.bf16 %v3408_v27, %v3408_v27  ;;  %v7927_v2 = vrot.slane %v1464_v38, 9  ;;  %v5310_v42 = vld [vmem:[#allocation2 + $0x8] sm:$0x1e]  ;;  %v9609_v54 = vpop.f32.mrb[44].mxu0 }
 0x191   : > { %v3666_v5 = vpack.c.bf16 %v3407_v19, %v3407_v19  ;;  %v3921_v18 = vunpack.c.l.b16 %v3665_v22  ;;  %v7928_v10 = vrot.slane %v1463_v9, 9  ;;  %v7929_v40 = vrot.slane %v1465_v21, 9  ;;  %v9615_v4 = vpop.f32.mrb[45].mxu0  ;;  %v9081_v22 = vld [vmem:[%s10645_s3 + $0x70] sm:$0xff]  }
 0x192   : > { %v4267_v58 = vsel %vm9417_vm15, %v4220_v24, %v4266_v41  ;;  %v3668_v35 = vpack.c.bf16 %v3409_v45, %v3409_v45  ;;  %v3923_v46 = vunpack.c.l.b16 %v3667_v57  ;;  %v3210_v6 = vmax.f32 %v1456_v63, %v7926_v13  ;;  %v9621_v44 = vpop.f32.mrb[46].mxu0 }
 0x193   : > { %4268 = vst [vmem:[#allocation2 + $0x30] sm:$0x1f] %v4267_v58  ;;  %v3922_v50 = vunpack.c.l.b16 %v3666_v5  ;;  %v4085_v61 = vrot.slane %v3921_v18, 7  ;;  %v3211_v60 = vmax.f32 %v1464_v38, %v7927_v2  ;;  %v3212_v23 = vmax.f32 %v1463_v9, %v7928_v10 }
 0x194   : > { %v3924_v49 = vunpack.c.l.b16 %v3668_v35  ;;  %v4088_v51 = vrot.slane %v3923_v46, 5  ;;  %v9611_v29 = vmax.f32 %v1465_v21, %v7929_v40  ;;  %v707_v36 = vadd.f32 %v9553_v11, %v9450_v7 }
 0x195   : > { %v4086_v63 = vrot.slane %v3922_v50, 6  ;;  %v3516_v31 = vsel %vm9315_vm4, 0, %v3515_v52  ;;  %v3579_v14 = vsel %vm9322_vm6, 0, %v3578_v12  ;;  %v8210_v17 = vcombine.low %v5310_v42, %v5310_v42  ;;  %v9643_v12 = vpop.f32.mrb[47].mxu0 }
 0x196   : > { %v4090_v9 = vrot.slane %v3924_v49, 4  ;;  %v887_v38 = vmax.f32 %v707_v36, 0.0  ;;  %3517 = vst [vmem:[#allocation2 + $0x38] sm:$0x1] %v3516_v31  ;;  %3580 = vst [vmem:[#allocation2 + $0x38] sm:$0x10] %v3579_v14  ;;  %v8211_v8 = vcombine.high %v5310_v42, %v5310_v42  ;;  %v8212_v27 = vcombine.low %v5311_v33, %v5311_v33 }
 0x197   : > { %v4087_v7 = vsel %vm4003_vm7, %v4086_v63, %v4085_v61  ;;  %v8213_v13 = vcombine.high %v5311_v33, %v5311_v33  ;;  %v8242_v21 = vrot.slane %v8210_v17, 9  ;;  %v728_v40 = vadd.f32 %v9553_v11, %v9455_v55 }
 0x198   : > { %v4089_v32 = vsel %vm4006_vm8, %v4088_v51, %v4087_v7  ;;  %v1415_v41 = vcombine.high %v887_v38, %v887_v38  ;;  %v1422_v19 = vrot.slane %v887_v38, %v9356_v0  ;;  %v5408_v45 = vrot.slane %v8211_v8, 5 }
 0x199   : > { %v4091_v24 = vsel %vm4009_vm9, %v4090_v9, %v4089_v32  ;;  %v8243_v57 = vrot.slane %v8212_v27, 9  ;;  %v5412_v2 = vrot.slane %v8213_v13, 5  ;;  %v720_v46 = vadd.f32 %v9553_v11, %v9461_v62 }
 0x19a   : > { %v1429_v5 = vrot.slane %v1415_v41, %v9356_v0  ;;  %v1430_v18 = vcombine.high %v1422_v19, %v1422_v19  ;;  %v7918_v10 = vrot.slane %v1422_v19, 9  ;;  %v5409_v58 = vsel %vm9627_vm3, %v8242_v21, %v5408_v45 }
 0x19b   : > { %v5413_v35 = vsel %vm9627_vm3, %v8243_v57, %v5412_v2  ;;  %v731_v52 = vadd.f32 %v9553_v11, %v9464_v3  ;;  %v892_v55 = vmax.f32 %v728_v40, 0.0  ;;  %v890_v36 = vmax.f32 %v720_v46, 0.0 }
 0x19c   : > { %v1431_v50 = vcombine.high %v1429_v5, %v1429_v5  ;;  %v7919_v61 = vrot.slane %v1430_v18, 9  ;;  %v7920_v42 = vrot.slane %v1429_v5, 9  ;;  %v3202_v49 = vmax.f32 %v1422_v19, %v7918_v10 }
 0x19d   : > { %v8274_v51 = vcombine.low %v5409_v58, %v5413_v35  ;;  %v893_v33 = vmax.f32 %v731_v52, 0.0  ;;  %v1500_v62 = vcombine.high %v892_v55, %v892_v55  ;;  %v1507_v3 = vrot.slane %v892_v55, %v9356_v0 }
 0x19e   : > { %v7921_v63 = vrot.slane %v1431_v50, 9  ;;  %v3203_v31 = vmax.f32 %v1430_v18, %v7919_v61  ;;  %v3204_v14 = vmax.f32 %v1429_v5, %v7920_v42  ;;  %v3410_v9 = vmax.f32 %v3202_v49, %v3210_v6 }
 0x19f   : > { %5574 = vrot.lane.b32.xlu1 %v8274_v51, %s9161_s23  ;;  %v1466_v38 = vcombine.high %v890_v36, %v890_v36  ;;  %v1473_v17 = vrot.slane %v890_v36, %v9356_v0  ;;  %v1514_v32 = vrot.slane %v1500_v62, %v9356_v0  ;;  %v1515_v41 = vcombine.high %v1507_v3, %v1507_v3 }
 0x1a0   : > { %v3205_v7 = vmax.f32 %v1431_v50, %v7921_v63  ;;  %v3411_v8 = vmax.f32 %v3203_v31, %v3211_v60  ;;  %v3412_v27 = vmax.f32 %v3204_v14, %v3212_v23  ;;  %v3669_v13 = vpack.c.bf16 %v3410_v9, %v3410_v9 }
 0x1a1   : > { %v7938_v19 = vrot.slane %v1507_v3, 9  ;;  %v1480_v21 = vrot.slane %v1466_v38, %v9356_v0  ;;  %v1516_v5 = vcombine.high %v1514_v32, %v1514_v32  ;;  %v7939_v18 = vrot.slane %v1515_v41, 9 }
 0x1a2   : > { %v3413_v6 = vmax.f32 %v3205_v7, %v9611_v29  ;;  %v3670_v45 = vpack.c.bf16 %v3411_v8, %v3411_v8  ;;  %v3671_v57 = vpack.c.bf16 %v3412_v27, %v3412_v27  ;;  %v3925_v2 = vunpack.c.l.b16 %v3669_v13  ;;  %v4269_v7 = vld [vmem:[#allocation2 + $0x38] sm:$0x1f] }
 0x1a3   : > { %v7940_v10 = vrot.slane %v1514_v32, 9  ;;  %v3222_v40 = vmax.f32 %v1507_v3, %v7938_v19  ;;  %v7941_v46 = vrot.slane %v1516_v5, 9  ;;  %v3223_v52 = vmax.f32 %v1515_v41, %v7939_v18 }
 0x1a4   : > { %v3672_v58 = vpack.c.bf16 %v3413_v6, %v3413_v6  ;;  %v3926_v35 = vunpack.c.l.b16 %v3670_v45  ;;  %v3927_v60 = vunpack.c.l.b16 %v3671_v57  ;;  %v4092_v23 = vrot.slane %v3925_v2, 3 }
 0x1a5   : > { %v3224_v50 = vmax.f32 %v1514_v32, %v7940_v10  ;;  %v1481_v61 = vcombine.high %v1473_v17, %v1473_v17  ;;  %v3225_v55 = vmax.f32 %v1516_v5, %v7941_v46  ;;  %v1482_v36 = vcombine.high %v1480_v21, %v1480_v21 }
 0x1a6   : > { %v3928_v42 = vunpack.c.l.b16 %v3672_v58  ;;  %v4093_v49 = vsel %vm4012_vm10, %v4092_v23, %v4091_v24  ;;  %v4094_v51 = vrot.slane %v3926_v35, 2  ;;  %v4096_v29 = vrot.slane %v3927_v60, 1  ;;  %v3518_v23 = vld [vmem:[#allocation2 + $0x40] sm:$0x1] }
 0x1a7   : > { %v7930_v63 = vrot.slane %v1473_v17, 9  ;;  %v7931_v31 = vrot.slane %v1481_v61, 9  ;;  %v7932_v9 = vrot.slane %v1480_v21, 9  ;;  %v1517_v62 = vcombine.high %v893_v33, %v893_v33 }
 0x1a8   : > { %v4095_v14 = vsel %vm4015_vm11, %v4094_v51, %v4093_v49  ;;  %v1524_v3 = vrot.slane %v893_v33, %v9356_v0  ;;  %v7933_v8 = vrot.slane %v1482_v36, 9  ;;  %v3581_v49 = vld [vmem:[#allocation2 + $0x40] sm:$0x10] }
 0x1a9   : > { %v4097_v38 = vsel %vm4018_vm12, %v4096_v29, %v4095_v14  ;;  %v3214_v27 = vmax.f32 %v1473_v17, %v7930_v63  ;;  %v3215_v13 = vmax.f32 %v1481_v61, %v7931_v31  ;;  %v3216_v24 = vmax.f32 %v1480_v21, %v7932_v9  ;;  %v4990_v31 = vld [vmem:[#allocation2 + $0x8] sm:$0x1f] }
 0x1aa   : > { %v4221_v32 = vpack.c.b16 %v3928_v42, %v4097_v38  ;;  %v1531_v41 = vrot.slane %v1517_v62, %v9356_v0  ;;  %v1532_v19 = vcombine.high %v1524_v3, %v1524_v3  ;;  %v3217_v6 = vmax.f32 %v1482_v36, %v7933_v8  ;;  %v4991_v38 = vld [vmem:[#allocation2 + $0x10] sm:$0x1f] }
 0x1ab   : > { %v3414_v45 = vmax.f32 %v3214_v27, %v3222_v40  ;;  %v3415_v57 = vmax.f32 %v3215_v13, %v3223_v52  ;;  %v7942_v2 = vrot.slane %v1524_v3, 9  ;;  %v3416_v18 = vmax.f32 %v3216_v24, %v3224_v50 }
 0x1ac   : > { %v4270_v5 = vsel %vm9417_vm15, %v4221_v32, %v4269_v7  ;;  %v1533_v33 = vcombine.high %v1531_v41, %v1531_v41  ;;  %v7943_v10 = vrot.slane %v1532_v19, 9  ;;  %v3417_v58 = vmax.f32 %v3217_v6, %v3225_v55 }
 0x1ad   : > { %4271 = vst [vmem:[#allocation2 + $0x38] sm:$0x1f] %v4270_v5  ;;  %v3673_v35 = vpack.c.bf16 %v3414_v45, %v3414_v45  ;;  %v3674_v17 = vpack.c.bf16 %v3415_v57, %v3415_v57  ;;  %v7944_v60 = vrot.slane %v1531_v41, 9  ;;  %v3675_v21 = vpack.c.bf16 %v3416_v18, %v3416_v18 }
 0x1ae   : > { %v7945_v46 = vrot.slane %v1533_v33, 9  ;;  %v3226_v61 = vmax.f32 %v1524_v3, %v7942_v2  ;;  %v3227_v42 = vmax.f32 %v1532_v19, %v7943_v10  ;;  %v3676_v40 = vpack.c.bf16 %v3417_v58, %v3417_v58 }
 0x1af   : > { %v3929_v52 = vunpack.c.l.b16 %v3673_v35  ;;  %v3930_v51 = vunpack.c.l.b16 %v3674_v17  ;;  %v3228_v29 = vmax.f32 %v1531_v41, %v7944_v60  ;;  %v3931_v36 = vunpack.c.l.b16 %v3675_v21 }
 0x1b0   : > { %v3229_v63 = vmax.f32 %v1533_v33, %v7945_v46  ;;  %v723_v50 = vadd.f32 %v9553_v11, %v9467_v28  ;;  %v3519_v55 = vsel %vm9315_vm4, 0, %v3518_v23  ;;  %v3932_v14 = vunpack.c.l.b16 %v3676_v40 }
 0x1b1   : > { %v4098_v9 = vrot.slane %v3929_v52, 7  ;;  %v4099_v62 = vrot.slane %v3930_v51, 6  ;;  %3520 = vst [vmem:[#allocation2 + $0x40] sm:$0x1] %v3519_v55  ;;  %v3582_v3 = vsel %vm9322_vm6, 0, %v3581_v49  ;;  %v4101_v7 = vrot.slane %v3931_v36, 5 }
 0x1b2   : > { %v891_v8 = vmax.f32 %v723_v50, 0.0  ;;  %3583 = vst [vmem:[#allocation2 + $0x40] sm:$0x10] %v3582_v3  ;;  %v4103_v28 = vrot.slane %v3932_v14, 4  ;;  %v8178_v13 = vcombine.low %v4990_v31, %v4990_v31  ;;  %v8179_v32 = vcombine.high %v4990_v31, %v4990_v31 }
 0x1b3   : > { %v4100_v27 = vsel %vm4003_vm7, %v4099_v62, %v4098_v9  ;;  %v8180_v6 = vcombine.low %v4991_v38, %v4991_v38  ;;  %v8181_v57 = vcombine.high %v4991_v38, %v4991_v38  ;;  %v9078_v62 = vld [vmem:[%s10645_s3 + $0x68] sm:$0xff]  }
 0x1b4   : > { %v4102_v24 = vsel %vm4006_vm8, %v4101_v7, %v4100_v27  ;;  %v1483_v41 = vcombine.high %v891_v8, %v891_v8  ;;  %v1490_v19 = vrot.slane %v891_v8, %v9356_v0  ;;  %v5087_v2 = vshrl.u32 %v8178_v13, 16  ;;  %v9677_v27 = vpop.f32.mrb[48].mxu0 }
 0x1b5   : > { %v4104_v45 = vsel %vm4009_vm9, %v4103_v28, %v4102_v24  ;;  %v5090_v5 = vshll.u32 %v8178_v13, 16  ;;  %v5096_v58 = vshll.u32 %v8179_v32, 16  ;;  %v5101_v60 = vshrl.u32 %v8180_v6, 16 }
 0x1b6   : > { %v1497_v18 = vrot.slane %v1483_v41, %v9356_v0  ;;  %v1498_v33 = vcombine.high %v1490_v19, %v1490_v19  ;;  %v7934_v10 = vrot.slane %v1490_v19, 9  ;;  %v5089_v35 = vrot.slane %v5087_v2, 4 }
 0x1b7   : > { %v5092_v17 = vrot.slane %v5090_v5, 5  ;;  %v5104_v23 = vshll.u32 %v8180_v6, 16  ;;  %v5098_v51 = vrot.slane %v5096_v58, 5  ;;  %v5103_v36 = vrot.slane %v5101_v60, 4 }
 0x1b8   : > { %v1499_v21 = vcombine.high %v1497_v18, %v1497_v18  ;;  %v7935_v46 = vrot.slane %v1498_v33, 9  ;;  %v7936_v49 = vrot.slane %v1497_v18, 9  ;;  %v3218_v40 = vmax.f32 %v1490_v19, %v7934_v10 }
 0x1b9   : > { %v5093_v52 = vor.u32 %v5092_v17, %v5089_v35  ;;  %v5106_v50 = vrot.slane %v5104_v23, 5  ;;  %v5110_v7 = vshll.u32 %v8181_v57, 16  ;;  %v744_v8 = vadd.f32 %v9553_v11, %v9507_v16 }
 0x1ba   : > { %v7937_v55 = vrot.slane %v1499_v21, 9  ;;  %v3219_v31 = vmax.f32 %v1498_v33, %v7935_v46  ;;  %v3220_v14 = vmax.f32 %v1497_v18, %v7936_v49  ;;  %v3418_v9 = vmax.f32 %v3218_v40, %v3226_v61 }
 0x1bb   : > { %v5094_v3 = vrot.slane %v5093_v52, 4  ;;  %v5107_v38 = vor.u32 %v5106_v50, %v5103_v36  ;;  %v5112_v19 = vrot.slane %v5110_v7, 5  ;;  %v896_v6 = vmax.f32 %v744_v8, 0.0  ;;  %v4272_v8 = vld [vmem:[#allocation2 + $0x40] sm:$0x1f] }
 0x1bc   : > { %v3221_v28 = vmax.f32 %v1499_v21, %v7937_v55  ;;  %v3419_v13 = vmax.f32 %v3219_v31, %v3227_v42  ;;  %v3420_v32 = vmax.f32 %v3220_v14, %v3228_v29  ;;  %v3677_v24 = vpack.c.bf16 %v3418_v9, %v3418_v9  ;;  %v9686_v29 = vpop.f32.mrb[49].mxu0 }
 0x1bd   : > { %v5099_v61 = vsel %vm9671_vm14, %v5094_v3, %v5098_v51  ;;  %v5108_v41 = vrot.slane %v5107_v38, 4  ;;  %v1568_v16 = vcombine.high %v896_v6, %v896_v6  ;;  %v1575_v10 = vrot.slane %v896_v6, %v9356_v0  ;;  %v3527_v38 = vld [vmem:[#allocation2 + $0x58] sm:$0x1] }
 0x1be   : > { %v3421_v2 = vmax.f32 %v3221_v28, %v3229_v63  ;;  %v3678_v5 = vpack.c.bf16 %v3419_v13, %v3419_v13  ;;  %v3679_v18 = vpack.c.bf16 %v3420_v32, %v3420_v32  ;;  %v3933_v33 = vunpack.c.l.b16 %v3677_v24 }
 0x1bf   : > { %v5113_v57 = vsel %vm9671_vm14, %v5108_v41, %v5112_v19  ;;  %v736_v42 = vadd.f32 %v9553_v11, %v9509_v39  ;;  %v1582_v63 = vrot.slane %v1568_v16, %v9356_v0  ;;  %v1583_v21 = vcombine.high %v1575_v10, %v1575_v10 }
 0x1c0   : > { %v3680_v58 = vpack.c.bf16 %v3421_v2, %v3421_v2  ;;  %v3934_v35 = vunpack.c.l.b16 %v3678_v5  ;;  %v3935_v17 = vunpack.c.l.b16 %v3679_v18  ;;  %v4105_v60 = vrot.slane %v3933_v33, 3 }
 0x1c1   : > { %v8266_v23 = vcombine.low %v5099_v61, %v5113_v57  ;;  %v7954_v46 = vrot.slane %v1575_v10, 9  ;;  %v1584_v39 = vcombine.high %v1582_v63, %v1582_v63  ;;  %v7955_v36 = vrot.slane %v1583_v21, 9 }
 0x1c2   : > { %v3936_v49 = vunpack.c.l.b16 %v3680_v58  ;;  %v4106_v40 = vsel %vm4012_vm10, %v4105_v60, %v4104_v45  ;;  %v4107_v52 = vrot.slane %v3934_v35, 2  ;;  %v4109_v51 = vrot.slane %v3935_v17, 1  ;;  %v3590_v45 = vld [vmem:[#allocation2 + $0x58] sm:$0x10] }
 0x1c3   : > { %5534 = vrot.lane.b32.xlu0 %v8266_v23, %s9162_s25  ;;  %v7956_v50 = vrot.slane %v1582_v63, 9  ;;  %v3238_v55 = vmax.f32 %v1575_v10, %v7954_v46  ;;  %v894_v14 = vmax.f32 %v736_v42, 0.0  ;;  %v747_v9 = vadd.f32 %v9553_v11, %v9525_v59 }
 0x1c4   : > { %v4108_v31 = vsel %vm4015_vm11, %v4107_v52, %v4106_v40  ;;  %v739_v3 = vadd.f32 %v9553_v11, %v9527_v1  ;;  %v7957_v28 = vrot.slane %v1584_v39, 9  ;;  %v3239_v13 = vmax.f32 %v1583_v21, %v7955_v36 }
 0x1c5   : > { %v4110_v7 = vsel %vm4018_vm12, %v4109_v51, %v4108_v31  ;;  %v3240_v32 = vmax.f32 %v1582_v63, %v7956_v50  ;;  %v1534_v61 = vcombine.high %v894_v14, %v894_v14  ;;  %v1541_v41 = vrot.slane %v894_v14, %v9356_v0 }
 0x1c6   : > { %v4222_v24 = vpack.c.b16 %v3936_v49, %v4110_v7  ;;  %v897_v19 = vmax.f32 %v747_v9, 0.0  ;;  %v3241_v6 = vmax.f32 %v1584_v39, %v7957_v28  ;;  %v895_v2 = vmax.f32 %v739_v3, 0.0 }
 0x1c7   : > { %v3528_v59 = vsel %vm9315_vm4, 0, %v3527_v38  ;;  %v3591_v1 = vsel %vm9322_vm6, 0, %v3590_v45  ;;  %v1548_v5 = vrot.slane %v1534_v61, %v9356_v0  ;;  %v1549_v18 = vcombine.high %v1541_v41, %v1541_v41 }
 0x1c8   : > { %v4273_v11 = vsel %vm9417_vm15, %v4222_v24, %v4272_v8  ;;  %v7946_v33 = vrot.slane %v1541_v41, 9  ;;  %3529 = vst [vmem:[#allocation2 + $0x58] sm:$0x1] %v3528_v59  ;;  %3592 = vst [vmem:[#allocation2 + $0x58] sm:$0x10] %v3591_v1  ;;  %v1585_v57 = vcombine.high %v897_v19, %v897_v19  ;;  %v1592_v16 = vrot.slane %v897_v19, %v9356_v0  ;;  %v9709_v24 = vpop.f32.mrb[50].mxu0 }
 0x1c9   : > { %4274 = vst [vmem:[#allocation2 + $0x40] sm:$0x1f] %v4273_v11  ;;  %v1551_v10 = vcombine.high %v895_v2, %v895_v2  ;;  %v1558_v42 = vrot.slane %v895_v2, %v9356_v0  ;;  %v1550_v58 = vcombine.high %v1548_v5, %v1548_v5  ;;  %v7947_v35 = vrot.slane %v1549_v18, 9  ;;  %v5312_v59 = vld [vmem:[#allocation2 + $0x18] sm:$0x1e] }
 0x1ca   : > { %v7948_v17 = vrot.slane %v1548_v5, 9  ;;  %v3230_v60 = vmax.f32 %v1541_v41, %v7946_v33  ;;  %v1599_v23 = vrot.slane %v1585_v57, %v9356_v0  ;;  %v1600_v63 = vcombine.high %v1592_v16, %v1592_v16 }
 0x1cb   : > { %v7958_v21 = vrot.slane %v1592_v16, 9  ;;  %v1565_v46 = vrot.slane %v1551_v10, %v9356_v0  ;;  %v7949_v49 = vrot.slane %v1550_v58, 9  ;;  %v3231_v40 = vmax.f32 %v1549_v18, %v7947_v35 }
 0x1cc   : > { %v3232_v52 = vmax.f32 %v1548_v5, %v7948_v17  ;;  %v3422_v51 = vmax.f32 %v3230_v60, %v3238_v55  ;;  %v1601_v39 = vcombine.high %v1599_v23, %v1599_v23  ;;  %v7959_v36 = vrot.slane %v1600_v63, 9  ;;  %v9711_v55 = vpop.f32.mrb[51].mxu0  ;;  %v5313_v17 = vld [vmem:[#allocation2 + $0x20] sm:$0x1e] }
 0x1cd   : > { %v7960_v50 = vrot.slane %v1599_v23, 9  ;;  %v3242_v31 = vmax.f32 %v1592_v16, %v7958_v21  ;;  %v3233_v14 = vmax.f32 %v1550_v58, %v7949_v49  ;;  %v3423_v9 = vmax.f32 %v3231_v40, %v3239_v13 }
 0x1ce   : > { %v3424_v3 = vmax.f32 %v3232_v52, %v3240_v32  ;;  %v3681_v38 = vpack.c.bf16 %v3422_v51, %v3422_v51  ;;  %v7961_v45 = vrot.slane %v1601_v39, 9  ;;  %v3243_v7 = vmax.f32 %v1600_v63, %v7959_v36  ;;  %v9713_v51 = vpop.f32.mrb[52].mxu0 }
 0x1cf   : > { %v3244_v8 = vmax.f32 %v1599_v23, %v7960_v50  ;;  %v1566_v28 = vcombine.high %v1558_v42, %v1558_v42  ;;  %v3425_v61 = vmax.f32 %v3233_v14, %v3241_v6  ;;  %v3682_v41 = vpack.c.bf16 %v3423_v9, %v3423_v9  ;;  %v9716_v9 = vpop.f32.mrb[53].mxu0 }
 0x1d0   : > { %v3683_v19 = vpack.c.bf16 %v3424_v3, %v3424_v3  ;;  %v3937_v2 = vunpack.c.l.b16 %v3681_v38  ;;  %v3245_v1 = vmax.f32 %v1601_v39, %v7961_v45  ;;  %v1567_v11 = vcombine.high %v1565_v46, %v1565_v46 }
 0x1d1   : > { %v7950_v5 = vrot.slane %v1558_v42, 9  ;;  %v7951_v18 = vrot.slane %v1566_v28, 9  ;;  %v3684_v13 = vpack.c.bf16 %v3425_v61, %v3425_v61  ;;  %v3938_v32 = vunpack.c.l.b16 %v3682_v41 }
 0x1d2   : > { %v3939_v33 = vunpack.c.l.b16 %v3683_v19  ;;  %v4111_v57 = vrot.slane %v3937_v2, 7  ;;  %v7952_v16 = vrot.slane %v1565_v46, 9  ;;  %v7953_v10 = vrot.slane %v1567_v11, 9 }
 0x1d3   : > { %v3234_v58 = vmax.f32 %v1558_v42, %v7950_v5  ;;  %v3235_v35 = vmax.f32 %v1566_v28, %v7951_v18  ;;  %v3940_v6 = vunpack.c.l.b16 %v3684_v13  ;;  %v4112_v60 = vrot.slane %v3938_v32, 6  ;;  %v9719_v28 = vpop.f32.mrb[54].mxu0 }
 0x1d4   : > { %v4114_v23 = vrot.slane %v3939_v33, 5  ;;  %v8214_v63 = vcombine.low %v5312_v59, %v5312_v59  ;;  %v3236_v21 = vmax.f32 %v1565_v46, %v7952_v16  ;;  %v3237_v49 = vmax.f32 %v1567_v11, %v7953_v10  ;;  %v9722_v41 = vpop.f32.mrb[55].mxu0 }
 0x1d5   : > { %v3426_v40 = vmax.f32 %v3234_v58, %v3242_v31  ;;  %v3427_v52 = vmax.f32 %v3235_v35, %v3243_v7  ;;  %v4113_v39 = vsel %vm4003_vm7, %v4112_v60, %v4111_v57  ;;  %v4116_v36 = vrot.slane %v3940_v6, 4  ;;  %v3530_v6 = vld [vmem:[#allocation2 + $0x60] sm:$0x1] }
 0x1d6   : > { %v8215_v50 = vcombine.high %v5312_v59, %v5312_v59  ;;  %v8216_v14 = vcombine.low %v5313_v17, %v5313_v17  ;;  %v4115_v42 = vsel %vm4006_vm8, %v4114_v23, %v4113_v39  ;;  %v3428_v3 = vmax.f32 %v3236_v21, %v3244_v8  ;;  %v9727_v8 = vld [vmem:[%s10644_s2] ss:$0 sm:$0xff] }
 0x1d7   : > { %v3429_v38 = vmax.f32 %v3237_v49, %v3245_v1  ;;  %v3685_v45 = vpack.c.bf16 %v3426_v40, %v3426_v40  ;;  %v3686_v46 = vpack.c.bf16 %v3427_v52, %v3427_v52  ;;  %v4117_v31 = vsel %vm4009_vm9, %v4116_v36, %v4115_v42  ;;  %v4275_v36 = vld [vmem:[#allocation2 + $0x58] sm:$0x1f] }
 0x1d8   : > { %v8217_v7 = vcombine.high %v5313_v17, %v5313_v17  ;;  %v8244_v61 = vrot.slane %v8214_v63, 9  ;;  %v3687_v19 = vpack.c.bf16 %v3428_v3, %v3428_v3  ;;  %v5416_v11 = vrot.slane %v8215_v50, 5 }
 0x1d9   : > { %v3688_v2 = vpack.c.bf16 %v3429_v38, %v3429_v38  ;;  %v3941_v59 = vunpack.c.l.b16 %v3685_v45  ;;  %v3942_v5 = vunpack.c.l.b16 %v3686_v46  ;;  %v8245_v18 = vrot.slane %v8216_v14, 9 }
 0x1da   : > { %v5420_v13 = vrot.slane %v8217_v7, 5  ;;  %v760_v1 = vadd.f32 %v9727_v8, %v9541_v48  ;;  %v3943_v32 = vunpack.c.l.b16 %v3687_v19  ;;  %v5417_v16 = vsel %vm9627_vm3, %v8244_v61, %v5416_v11 }
 0x1db   : > { %v3944_v33 = vunpack.c.l.b16 %v3688_v2  ;;  %v4118_v57 = vrot.slane %v3941_v59, 3  ;;  %v4120_v10 = vrot.slane %v3942_v5, 2  ;;  %v752_v17 = vadd.f32 %v9727_v8, %v9547_v26 }
 0x1dc   : > { %v5421_v58 = vsel %vm9627_vm3, %v8245_v18, %v5420_v13  ;;  %v900_v35 = vmax.f32 %v760_v1, 0.0  ;;  %v4122_v23 = vrot.slane %v3943_v32, 1  ;;  %v763_v48 = vadd.f32 %v9727_v8, %v9560_v43 }
 0x1dd   : > { %v4119_v60 = vsel %vm4012_vm10, %v4118_v57, %v4117_v31  ;;  %v8275_v63 = vcombine.low %v5417_v16, %v5421_v58  ;;  %v898_v52 = vmax.f32 %v752_v17, 0.0  ;;  %v755_v50 = vadd.f32 %v9727_v8, %v9562_v15 }
 0x1de   : > { %v4121_v21 = vsel %vm4015_vm11, %v4120_v10, %v4119_v60  ;;  %v1636_v49 = vcombine.high %v900_v35, %v900_v35  ;;  %v1643_v40 = vrot.slane %v900_v35, %v9356_v0  ;;  %v901_v26 = vmax.f32 %v763_v48, 0.0 }
 0x1df   : > { %v4123_v39 = vsel %vm4018_vm12, %v4122_v23, %v4121_v21  ;;  %5576 = vrot.lane.b32.xlu1 %v8275_v63, %s9161_s23  ;;  %v3531_v14 = vsel %vm9315_vm4, 0, %v3530_v6  ;;  %v1602_v45 = vcombine.high %v898_v52, %v898_v52  ;;  %v1609_v46 = vrot.slane %v898_v52, %v9356_v0 }
 0x1e0   : > { %v4223_v42 = vpack.c.b16 %v3944_v33, %v4123_v39  ;;  %v1650_v43 = vrot.slane %v1636_v49, %v9356_v0  ;;  %v1651_v3 = vcombine.high %v1643_v40, %v1643_v40  ;;  %v7970_v38 = vrot.slane %v1643_v40, 9  ;;  %3532 = vst [vmem:[#allocation2 + $0x60] sm:$0x1] %v3531_v14 }
 0x1e1   : > { %v1653_v31 = vcombine.high %v901_v26, %v901_v26  ;;  %v1660_v7 = vrot.slane %v901_v26, %v9356_v0  ;;  %v1616_v11 = vrot.slane %v1602_v45, %v9356_v0  ;;  %v1617_v5 = vcombine.high %v1609_v46, %v1609_v46 }
 0x1e2   : > { %v4276_v61 = vsel %vm9417_vm15, %v4223_v42, %v4275_v36  ;;  %v1652_v19 = vcombine.high %v1650_v43, %v1650_v43  ;;  %v7971_v15 = vrot.slane %v1651_v3, 9  ;;  %v7972_v2 = vrot.slane %v1650_v43, 9 }
 0x1e3   : > { %4277 = vst [vmem:[#allocation2 + $0x58] sm:$0x1f] %v4276_v61  ;;  %v3254_v59 = vmax.f32 %v1643_v40, %v7970_v38  ;;  %v7962_v18 = vrot.slane %v1609_v46, 9  ;;  %v1667_v33 = vrot.slane %v1653_v31, %v9356_v0  ;;  %v1618_v57 = vcombine.high %v1616_v11, %v1616_v11 }
 0x1e4   : > { %v7973_v13 = vrot.slane %v1652_v19, 9  ;;  %v3255_v1 = vmax.f32 %v1651_v3, %v7971_v15  ;;  %v3256_v32 = vmax.f32 %v1650_v43, %v7972_v2  ;;  %v7963_v16 = vrot.slane %v1617_v5, 9  ;;  %v3593_v43 = vld [vmem:[#allocation2 + $0x60] sm:$0x10]  ;;  %v4992_v3 = vld [vmem:[#allocation2 + $0x18] sm:$0x1f] }
 0x1e5   : > { %v7964_v10 = vrot.slane %v1616_v11, 9  ;;  %v3246_v58 = vmax.f32 %v1609_v46, %v7962_v18  ;;  %v1668_v17 = vcombine.high %v1660_v7, %v1660_v7  ;;  %v1669_v6 = vcombine.high %v1667_v33, %v1667_v33 }
 0x1e6   : > { %v3257_v35 = vmax.f32 %v1652_v19, %v7973_v13  ;;  %v7974_v60 = vrot.slane %v1660_v7, 9  ;;  %v7965_v23 = vrot.slane %v1618_v57, 9  ;;  %v3247_v63 = vmax.f32 %v1617_v5, %v7963_v16  ;;  %v4993_v5 = vld [vmem:[#allocation2 + $0x20] sm:$0x1f] }
 0x1e7   : > { %v3248_v48 = vmax.f32 %v1616_v11, %v7964_v10  ;;  %v3430_v21 = vmax.f32 %v3246_v58, %v3254_v59  ;;  %v7975_v49 = vrot.slane %v1668_v17, 9  ;;  %v7976_v40 = vrot.slane %v1667_v33, 9 }
 0x1e8   : > { %v7977_v52 = vrot.slane %v1669_v6, 9  ;;  %v3258_v39 = vmax.f32 %v1660_v7, %v7974_v60  ;;  %v3249_v36 = vmax.f32 %v1618_v57, %v7965_v23  ;;  %v3431_v26 = vmax.f32 %v3247_v63, %v3255_v1 }
 0x1e9   : > { %v3432_v14 = vmax.f32 %v3248_v48, %v3256_v32  ;;  %v3689_v42 = vpack.c.bf16 %v3430_v21, %v3430_v21  ;;  %v3259_v38 = vmax.f32 %v1668_v17, %v7975_v49  ;;  %v3260_v45 = vmax.f32 %v1667_v33, %v7976_v40 }
 0x1ea   : > { %v3261_v46 = vmax.f32 %v1669_v6, %v7977_v52  ;;  %v899_v31 = vmax.f32 %v755_v50, 0.0  ;;  %v3433_v61 = vmax.f32 %v3249_v36, %v3257_v35  ;;  %v3690_v19 = vpack.c.bf16 %v3431_v26, %v3431_v26 }
 0x1eb   : > { %v3691_v15 = vpack.c.bf16 %v3432_v14, %v3432_v14  ;;  %v3945_v2 = vunpack.c.l.b16 %v3689_v42  ;;  %v3594_v7 = vsel %vm9322_vm6, 0, %v3593_v43  ;;  %v8182_v18 = vcombine.low %v4992_v3, %v4992_v3 }
 0x1ec   : > { %v1619_v11 = vcombine.high %v899_v31, %v899_v31  ;;  %v1626_v59 = vrot.slane %v899_v31, %v9356_v0  ;;  %v3692_v13 = vpack.c.bf16 %v3433_v61, %v3433_v61  ;;  %v3946_v1 = vunpack.c.l.b16 %v3690_v19  ;;  %3595 = vst [vmem:[#allocation2 + $0x60] sm:$0x10] %v3594_v7 }
 0x1ed   : > { %v3947_v32 = vunpack.c.l.b16 %v3691_v15  ;;  %v4124_v57 = vrot.slane %v3945_v2, 7  ;;  %v8183_v10 = vcombine.high %v4992_v3, %v4992_v3  ;;  %v8184_v6 = vcombine.low %v4993_v5, %v4993_v5 }
 0x1ee   : > { %v1633_v33 = vrot.slane %v1619_v11, %v9356_v0  ;;  %v1634_v50 = vcombine.high %v1626_v59, %v1626_v59  ;;  %v7966_v16 = vrot.slane %v1626_v59, 9  ;;  %v3948_v58 = vunpack.c.l.b16 %v3692_v13 }
 0x1ef   : > { %v4125_v35 = vrot.slane %v3946_v1, 6  ;;  %v4127_v17 = vrot.slane %v3947_v32, 5  ;;  %v8185_v40 = vcombine.high %v4993_v5, %v4993_v5  ;;  %v5115_v52 = vshrl.u32 %v8182_v18, 16 }
 0x1f0   : > { %v1635_v60 = vcombine.high %v1633_v33, %v1633_v33  ;;  %v7967_v23 = vrot.slane %v1634_v50, 9  ;;  %v7968_v63 = vrot.slane %v1633_v33, 9  ;;  %v3250_v48 = vmax.f32 %v1626_v59, %v7966_v16  ;;  %v9762_v59 = vpop.f32.mrb[56].mxu0 }
 0x1f1   : > { %v4126_v21 = vsel %vm4003_vm7, %v4125_v35, %v4124_v57  ;;  %v4129_v49 = vrot.slane %v3948_v58, 4  ;;  %v5117_v31 = vrot.slane %v5115_v52, 4  ;;  %v5118_v61 = vshll.u32 %v8182_v18, 16 }
 0x1f2   : > { %v4128_v36 = vsel %vm4006_vm8, %v4127_v17, %v4126_v21  ;;  %v7969_v26 = vrot.slane %v1635_v60, 9  ;;  %v3251_v14 = vmax.f32 %v1634_v50, %v7967_v23  ;;  %v3252_v42 = vmax.f32 %v1633_v33, %v7968_v63 }
 0x1f3   : > { %v3434_v43 = vmax.f32 %v3250_v48, %v3258_v39  ;;  %v4130_v3 = vsel %vm4009_vm9, %v4129_v49, %v4128_v36  ;;  %v5124_v11 = vshll.u32 %v8183_v10, 16  ;;  %v5120_v13 = vrot.slane %v5118_v61, 5  ;;  %v9766_v48 = vpop.f32.mrb[57].mxu0  ;;  %v4278_v61 = vld [vmem:[#allocation2 + $0x60] sm:$0x1f] }
 0x1f4   : > { %v3253_v19 = vmax.f32 %v1635_v60, %v7969_v26  ;;  %v3435_v15 = vmax.f32 %v3251_v14, %v3259_v38  ;;  %v3436_v2 = vmax.f32 %v3252_v42, %v3260_v45  ;;  %v5129_v5 = vshrl.u32 %v8184_v6, 16 }
 0x1f5   : > { %v3693_v7 = vpack.c.bf16 %v3434_v43, %v3434_v43  ;;  %v5132_v1 = vshll.u32 %v8184_v6, 16  ;;  %v5126_v50 = vrot.slane %v5124_v11, 5  ;;  %v5121_v39 = vor.u32 %v5120_v13, %v5117_v31 }
 0x1f6   : > { %v3437_v32 = vmax.f32 %v3253_v19, %v3261_v46  ;;  %v3694_v57 = vpack.c.bf16 %v3435_v15, %v3435_v15  ;;  %v3695_v16 = vpack.c.bf16 %v3436_v2, %v3436_v2  ;;  %v5131_v58 = vrot.slane %v5129_v5, 4 }
 0x1f7   : > { %v3949_v33 = vunpack.c.l.b16 %v3693_v7  ;;  %v5134_v35 = vrot.slane %v5132_v1, 5  ;;  %v5138_v38 = vshll.u32 %v8185_v40, 16  ;;  %v5122_v10 = vrot.slane %v5121_v39, 4 }
 0x1f8   : > { %v3696_v17 = vpack.c.bf16 %v3437_v32, %v3437_v32  ;;  %v3950_v18 = vunpack.c.l.b16 %v3694_v57  ;;  %v3951_v60 = vunpack.c.l.b16 %v3695_v16  ;;  %v776_v63 = vadd.f32 %v9727_v8, %v9592_v53 }
 0x1f9   : > { %v4131_v45 = vrot.slane %v3949_v33, 3  ;;  %v5135_v23 = vor.u32 %v5134_v35, %v5131_v58  ;;  %v5140_v49 = vrot.slane %v5138_v38, 5  ;;  %v5127_v36 = vsel %vm9671_vm14, %v5122_v10, %v5126_v50 }
 0x1fa   : > { %v3952_v46 = vunpack.c.l.b16 %v3696_v17  ;;  %v4133_v6 = vrot.slane %v3950_v18, 2  ;;  %v4135_v21 = vrot.slane %v3951_v60, 1  ;;  %v904_v14 = vmax.f32 %v776_v63, 0.0 }
 0x1fb   : > { %v4132_v52 = vsel %vm4012_vm10, %v4131_v45, %v4130_v3  ;;  %v5136_v26 = vrot.slane %v5135_v23, 4  ;;  %v768_v42 = vadd.f32 %v9727_v8, %v9594_v30  ;;  %v779_v53 = vadd.f32 %v9727_v8, %v9601_v25 }
 0x1fc   : > { %v4134_v40 = vsel %vm4015_vm11, %v4133_v6, %v4132_v52  ;;  %v771_v43 = vadd.f32 %v9727_v8, %v9604_v47  ;;  %v1704_v19 = vcombine.high %v904_v14, %v904_v14  ;;  %v1711_v15 = vrot.slane %v904_v14, %v9356_v0 }
 0x1fd   : > { %v4136_v31 = vsel %vm4018_vm12, %v4135_v21, %v4134_v40  ;;  %v5141_v3 = vsel %vm9671_vm14, %v5136_v26, %v5140_v49  ;;  %v902_v7 = vmax.f32 %v768_v42, 0.0  ;;  %v905_v13 = vmax.f32 %v779_v53, 0.0 }
 0x1fe   : > { %v4224_v2 = vpack.c.b16 %v3952_v46, %v4136_v31  ;;  %v8267_v11 = vcombine.low %v5127_v36, %v5141_v3  ;;  %v1718_v30 = vrot.slane %v1704_v19, %v9356_v0  ;;  %v1719_v5 = vcombine.high %v1711_v15, %v1711_v15  ;;  %v3533_v19 = vld [vmem:[#allocation2 + $0x68] sm:$0x1] }
 0x1ff   : > { %v7986_v25 = vrot.slane %v1711_v15, 9  ;;  %v903_v1 = vmax.f32 %v771_v43, 0.0  ;;  %v1670_v32 = vcombine.high %v902_v7, %v902_v7  ;;  %v1677_v57 = vrot.slane %v902_v7, %v9356_v0 }
 0x200   : > { %v4279_v47 = vsel %vm9417_vm15, %v4224_v2, %v4278_v61  ;;  %5536 = vrot.lane.b32.xlu0 %v8267_v11, %s9162_s25  ;;  %v1721_v16 = vcombine.high %v905_v13, %v905_v13  ;;  %v1720_v50 = vcombine.high %v1718_v30, %v1718_v30  ;;  %v7987_v33 = vrot.slane %v1719_v5, 9 }
 0x201   : > { %4280 = vst [vmem:[#allocation2 + $0x60] sm:$0x1f] %v4279_v47  ;;  %v7988_v39 = vrot.slane %v1718_v30, 9  ;;  %v3270_v58 = vmax.f32 %v1711_v15, %v7986_v25  ;;  %v1684_v35 = vrot.slane %v1670_v32, %v9356_v0  ;;  %v1685_v17 = vcombine.high %v1677_v57, %v1677_v57  ;;  %v9790_v32 = vpop.f32.mrb[58].mxu0 }
 0x202   : > { %v7978_v18 = vrot.slane %v1677_v57, 9  ;;  %v1728_v60 = vrot.slane %v905_v13, %v9356_v0  ;;  %v7989_v38 = vrot.slane %v1720_v50, 9  ;;  %v3271_v45 = vmax.f32 %v1719_v5, %v7987_v33  ;;  %v3596_v13 = vld [vmem:[#allocation2 + $0x68] sm:$0x10] }
 0x203   : > { %v3272_v10 = vmax.f32 %v1718_v30, %v7988_v39  ;;  %v1735_v23 = vrot.slane %v1721_v16, %v9356_v0  ;;  %v1686_v63 = vcombine.high %v1684_v35, %v1684_v35  ;;  %v7979_v46 = vrot.slane %v1685_v17, 9  ;;  %v9792_v39 = vpop.f32.mrb[59].mxu0 }
 0x204   : > { %v7980_v6 = vrot.slane %v1684_v35, 9  ;;  %v3262_v21 = vmax.f32 %v1677_v57, %v7978_v18  ;;  %v3273_v49 = vmax.f32 %v1720_v50, %v7989_v38  ;;  %v1736_v52 = vcombine.high %v1728_v60, %v1728_v60 }
 0x205   : > { %v1737_v36 = vcombine.high %v1735_v23, %v1735_v23  ;;  %v7990_v26 = vrot.slane %v1728_v60, 9  ;;  %v7981_v14 = vrot.slane %v1686_v63, 9  ;;  %v3263_v40 = vmax.f32 %v1685_v17, %v7979_v46 }
 0x206   : > { %v3264_v42 = vmax.f32 %v1684_v35, %v7980_v6  ;;  %v3438_v53 = vmax.f32 %v3262_v21, %v3270_v58  ;;  %v7991_v43 = vrot.slane %v1736_v52, 9  ;;  %v7992_v31 = vrot.slane %v1735_v23, 9 }
 0x207   : > { %v7993_v61 = vrot.slane %v1737_v36, 9  ;;  %v3274_v3 = vmax.f32 %v1728_v60, %v7990_v26  ;;  %v3265_v15 = vmax.f32 %v1686_v63, %v7981_v14  ;;  %v3439_v2 = vmax.f32 %v3263_v40, %v3271_v45 }
 0x208   : > { %v3440_v11 = vmax.f32 %v3264_v42, %v3272_v10  ;;  %v3697_v7 = vpack.c.bf16 %v3438_v53, %v3438_v53  ;;  %v3275_v30 = vmax.f32 %v1736_v52, %v7991_v43  ;;  %v3276_v5 = vmax.f32 %v1735_v23, %v7992_v31 }
 0x209   : > { %v3277_v25 = vmax.f32 %v1737_v36, %v7993_v61  ;;  %v1687_v47 = vcombine.high %v903_v1, %v903_v1  ;;  %v3441_v57 = vmax.f32 %v3265_v15, %v3273_v49  ;;  %v3698_v16 = vpack.c.bf16 %v3439_v2, %v3439_v2 }
 0x20a   : > { %v3699_v50 = vpack.c.bf16 %v3440_v11, %v3440_v11  ;;  %v3953_v33 = vunpack.c.l.b16 %v3697_v7  ;;  %v1694_v58 = vrot.slane %v903_v1, %v9356_v0  ;;  %v3534_v17 = vsel %vm9315_vm4, 0, %v3533_v19  ;;  %v9806_v11 = vpop.f32.mrb[60].mxu0 }
 0x20b   : > { %v1701_v35 = vrot.slane %v1687_v47, %v9356_v0  ;;  %v3597_v18 = vsel %vm9322_vm6, 0, %v3596_v13  ;;  %v3700_v60 = vpack.c.bf16 %v3441_v57, %v3441_v57  ;;  %v3954_v38 = vunpack.c.l.b16 %v3698_v16  ;;  %3535 = vst [vmem:[#allocation2 + $0x68] sm:$0x1] %v3534_v17  ;;  %v9810_v57 = vpop.f32.mrb[61].mxu0 }
 0x20c   : > { %v3955_v45 = vunpack.c.l.b16 %v3699_v50  ;;  %v4137_v10 = vrot.slane %v3953_v33, 7  ;;  %3598 = vst [vmem:[#allocation2 + $0x68] sm:$0x10] %v3597_v18  ;;  %v1702_v23 = vcombine.high %v1694_v58, %v1694_v58  ;;  %v7982_v46 = vrot.slane %v1694_v58, 9 }
 0x20d   : > { %v1703_v63 = vcombine.high %v1701_v35, %v1701_v35  ;;  %v7984_v6 = vrot.slane %v1701_v35, 9  ;;  %v3956_v21 = vunpack.c.l.b16 %v3700_v60  ;;  %v4138_v1 = vrot.slane %v3954_v38, 6 }
 0x20e   : > { %v4140_v49 = vrot.slane %v3955_v45, 5  ;;  %v792_v52 = vadd.f32 %v9727_v8, %v9609_v54  ;;  %v7983_v36 = vrot.slane %v1702_v23, 9  ;;  %v3266_v14 = vmax.f32 %v1694_v58, %v7982_v46 }
 0x20f   : > { %v7985_v26 = vrot.slane %v1703_v63, 9  ;;  %v3268_v40 = vmax.f32 %v1701_v35, %v7984_v6  ;;  %v4139_v42 = vsel %vm4003_vm7, %v4138_v1, %v4137_v10  ;;  %v4142_v53 = vrot.slane %v3956_v21, 4 }
 0x210   : > { %v908_v43 = vmax.f32 %v792_v52, 0.0  ;;  %v784_v31 = vadd.f32 %v9727_v8, %v9615_v4  ;;  %v4141_v61 = vsel %vm4006_vm8, %v4140_v49, %v4139_v42  ;;  %v3267_v19 = vmax.f32 %v1702_v23, %v7983_v36  ;;  %v9812_v4 = vpop.f32.mrb[62].mxu0  ;;  %v3536_v49 = vld [vmem:[#allocation2 + $0x70] sm:$0x1] }
 0x211   : > { %v3269_v15 = vmax.f32 %v1703_v63, %v7985_v26  ;;  %v3442_v2 = vmax.f32 %v3266_v14, %v3274_v3  ;;  %v3444_v7 = vmax.f32 %v3268_v40, %v3276_v5  ;;  %v4143_v54 = vsel %vm4009_vm9, %v4142_v53, %v4141_v61  ;;  %v9815_v60 = vpop.f32.mrb[63].mxu0 }
 0x212   : > { %v1772_v13 = vcombine.high %v908_v43, %v908_v43  ;;  %v1779_v47 = vrot.slane %v908_v43, %v9356_v0  ;;  %v3443_v16 = vmax.f32 %v3267_v19, %v3275_v30  ;;  %v906_v58 = vmax.f32 %v784_v31, 0.0 }
 0x213   : > { %v3445_v50 = vmax.f32 %v3269_v15, %v3277_v25  ;;  %v3701_v33 = vpack.c.bf16 %v3442_v2, %v3442_v2  ;;  %v3703_v35 = vpack.c.bf16 %v3444_v7, %v3444_v7  ;;  %v795_v61 = vadd.f32 %v9727_v8, %v9621_v44 }
 0x214   : > { %v1786_v17 = vrot.slane %v1772_v13, %v9356_v0  ;;  %v1787_v3 = vcombine.high %v1779_v47, %v1779_v47  ;;  %v8002_v18 = vrot.slane %v1779_v47, 9  ;;  %v3702_v5 = vpack.c.bf16 %v3443_v16, %v3443_v16  ;;  %v4281_v16 = vld [vmem:[#allocation2 + $0x68] sm:$0x1f] }
 0x215   : > { %v3704_v38 = vpack.c.bf16 %v3445_v50, %v3445_v50  ;;  %v3957_v45 = vunpack.c.l.b16 %v3701_v33  ;;  %v1738_v10 = vcombine.high %v906_v58, %v906_v58  ;;  %v3959_v23 = vunpack.c.l.b16 %v3703_v35 }
 0x216   : > { %v1788_v63 = vcombine.high %v1786_v17, %v1786_v17  ;;  %v8003_v46 = vrot.slane %v1787_v3, 9  ;;  %v8004_v30 = vrot.slane %v1786_v17, 9  ;;  %v3958_v25 = vunpack.c.l.b16 %v3702_v5 }
 0x217   : > { %v3960_v6 = vunpack.c.l.b16 %v3704_v38  ;;  %v4144_v21 = vrot.slane %v3957_v45, 3  ;;  %v3286_v1 = vmax.f32 %v1779_v47, %v8002_v18  ;;  %v4148_v52 = vrot.slane %v3959_v23, 1 }
 0x218   : > { %v8005_v36 = vrot.slane %v1788_v63, 9  ;;  %v3287_v26 = vmax.f32 %v1787_v3, %v8003_v46  ;;  %v3288_v14 = vmax.f32 %v1786_v17, %v8004_v30  ;;  %v4146_v42 = vrot.slane %v3958_v25, 2 }
 0x219   : > { %v4145_v40 = vsel %vm4012_vm10, %v4144_v21, %v4143_v54  ;;  %v1745_v53 = vrot.slane %v906_v58, %v9356_v0  ;;  %v1752_v43 = vrot.slane %v1738_v10, %v9356_v0  ;;  %v787_v19 = vadd.f32 %v9727_v8, %v9643_v12 }
 0x21a   : > { %v3289_v31 = vmax.f32 %v1788_v63, %v8005_v36  ;;  %v3537_v15 = vsel %vm9315_vm4, 0, %v3536_v49  ;;  %v4147_v2 = vsel %vm4015_vm11, %v4146_v42, %v4145_v40  ;;  %v909_v33 = vmax.f32 %v795_v61, 0.0 }
 0x21b   : > { %v1753_v7 = vcombine.high %v1745_v53, %v1745_v53  ;;  %v1754_v13 = vcombine.high %v1752_v43, %v1752_v43  ;;  %v7994_v54 = vrot.slane %v1745_v53, 9  ;;  %3538 = vst [vmem:[#allocation2 + $0x70] sm:$0x1] %v3537_v15  ;;  %v4149_v47 = vsel %vm4018_vm12, %v4148_v52, %v4147_v2 }
 0x21c   : > { %v7996_v50 = vrot.slane %v1752_v43, 9  ;;  %v907_v58 = vmax.f32 %v787_v19, 0.0  ;;  %v4225_v35 = vpack.c.b16 %v3960_v6, %v4149_v47  ;;  %v1789_v18 = vcombine.high %v909_v33, %v909_v33 }
 0x21d   : > { %v7995_v44 = vrot.slane %v1753_v7, 9  ;;  %v7997_v17 = vrot.slane %v1754_v13, 9  ;;  %v3278_v3 = vmax.f32 %v1745_v53, %v7994_v54  ;;  %v1796_v5 = vrot.slane %v909_v33, %v9356_v0 }
 0x21e   : > { %v3280_v12 = vmax.f32 %v1752_v43, %v7996_v50  ;;  %v1755_v38 = vcombine.high %v907_v58, %v907_v58  ;;  %v4282_v45 = vsel %vm9417_vm15, %v4225_v35, %v4281_v16  ;;  %v1803_v30 = vrot.slane %v1789_v18, %v9356_v0  ;;  %v4994_v50 = vld [vmem:[#allocation2 + $0x28] sm:$0x1f] }
 0x21f   : > { %v3279_v10 = vmax.f32 %v1753_v7, %v7995_v44  ;;  %v3281_v23 = vmax.f32 %v1754_v13, %v7997_v17  ;;  %v3446_v63 = vmax.f32 %v3278_v3, %v3286_v1  ;;  %4283 = vst [vmem:[#allocation2 + $0x68] sm:$0x1f] %v4282_v45  ;;  %v1804_v25 = vcombine.high %v1796_v5, %v1796_v5  ;;  %v4995_v17 = vld [vmem:[#allocation2 + $0x30] sm:$0x1f] }
 0x220   : > { %v3448_v46 = vmax.f32 %v3280_v12, %v3288_v14  ;;  %v8006_v6 = vrot.slane %v1796_v5, 9  ;;  %v1762_v36 = vrot.slane %v907_v58, %v9356_v0  ;;  %v1805_v42 = vcombine.high %v1803_v30, %v1803_v30 }
 0x221   : > { %v3447_v21 = vmax.f32 %v3279_v10, %v3287_v26  ;;  %v3449_v49 = vmax.f32 %v3281_v23, %v3289_v31  ;;  %v3705_v52 = vpack.c.bf16 %v3446_v63, %v3446_v63  ;;  %v8007_v53 = vrot.slane %v1804_v25, 9  ;;  %v3599_v31 = vld [vmem:[#allocation2 + $0x70] sm:$0x10] }
 0x222   : > { %v3707_v40 = vpack.c.bf16 %v3448_v46, %v3448_v46  ;;  %v8008_v43 = vrot.slane %v1803_v30, 9  ;;  %v3290_v2 = vmax.f32 %v1796_v5, %v8006_v6  ;;  %v8009_v7 = vrot.slane %v1805_v42, 9 }
 0x223   : > { %v3706_v61 = vpack.c.bf16 %v3447_v21, %v3447_v21  ;;  %v3708_v19 = vpack.c.bf16 %v3449_v49, %v3449_v49  ;;  %v3961_v15 = vunpack.c.l.b16 %v3705_v52  ;;  %v3291_v14 = vmax.f32 %v1804_v25, %v8007_v53 }
 0x224   : > { %v3963_v1 = vunpack.c.l.b16 %v3707_v40  ;;  %v3292_v13 = vmax.f32 %v1803_v30, %v8008_v43  ;;  %v1769_v26 = vrot.slane %v1755_v38, %v9356_v0  ;;  %v3293_v58 = vmax.f32 %v1805_v42, %v8009_v7 }
 0x225   : > { %v3962_v54 = vunpack.c.l.b16 %v3706_v61  ;;  %v3964_v47 = vunpack.c.l.b16 %v3708_v19  ;;  %v4150_v16 = vrot.slane %v3961_v15, 7  ;;  %v1770_v35 = vcombine.high %v1762_v36, %v1762_v36 }
 0x226   : > { %v4153_v33 = vrot.slane %v3963_v1, 5  ;;  %v7998_v44 = vrot.slane %v1762_v36, 9  ;;  %v1771_v18 = vcombine.high %v1769_v26, %v1769_v26  ;;  %v8000_v5 = vrot.slane %v1769_v26, 9 }
 0x227   : > { %v4151_v3 = vrot.slane %v3962_v54, 6  ;;  %v4155_v12 = vrot.slane %v3964_v47, 4  ;;  %v7999_v45 = vrot.slane %v1770_v35, 9  ;;  %v3600_v23 = vsel %vm9322_vm6, 0, %v3599_v31 }
 0x228   : > { %v3282_v10 = vmax.f32 %v1762_v36, %v7998_v44  ;;  %v8186_v63 = vcombine.low %v4994_v50, %v4994_v50  ;;  %v8001_v38 = vrot.slane %v1771_v18, 9  ;;  %v3284_v30 = vmax.f32 %v1769_v26, %v8000_v5  ;;  %3601 = vst [vmem:[#allocation2 + $0x70] sm:$0x10] %v3600_v23 }
 0x229   : > { %v4152_v46 = vsel %vm4003_vm7, %v4151_v3, %v4150_v16  ;;  %v8187_v25 = vcombine.high %v4994_v50, %v4994_v50  ;;  %v3283_v21 = vmax.f32 %v1770_v35, %v7999_v45  ;;  %v8188_v52 = vcombine.low %v4995_v17, %v4995_v17 }
 0x22a   : > { %v4154_v6 = vsel %vm4006_vm8, %v4153_v33, %v4152_v46  ;;  %v3450_v49 = vmax.f32 %v3282_v10, %v3290_v2  ;;  %v3285_v40 = vmax.f32 %v1771_v18, %v8001_v38  ;;  %v3452_v42 = vmax.f32 %v3284_v30, %v3292_v13  ;;  %v5315_v10 = vld [vmem:[#allocation2 + $0x30] sm:$0x1e] }
 0x22b   : > { %v4156_v53 = vsel %vm4009_vm9, %v4155_v12, %v4154_v6  ;;  %v8189_v36 = vcombine.high %v4995_v17, %v4995_v17  ;;  %v3451_v43 = vmax.f32 %v3283_v21, %v3291_v14  ;;  %v5143_v19 = vshrl.u32 %v8186_v63, 16  ;;  %v5314_v14 = vld [vmem:[#allocation2 + $0x28] sm:$0x1e] }
 0x22c   : > { %v3709_v61 = vpack.c.bf16 %v3450_v49, %v3450_v49  ;;  %v5146_v15 = vshll.u32 %v8186_v63, 16  ;;  %v3453_v1 = vmax.f32 %v3285_v40, %v3293_v58  ;;  %v3711_v7 = vpack.c.bf16 %v3452_v42, %v3452_v42 }
 0x22d   : > { %v5152_v54 = vshll.u32 %v8187_v25, 16  ;;  %v5157_v47 = vshrl.u32 %v8188_v52, 16  ;;  %v3710_v16 = vpack.c.bf16 %v3451_v43, %v3451_v43  ;;  %v5145_v31 = vrot.slane %v5143_v19, 4 }
 0x22e   : > { %v3965_v26 = vunpack.c.l.b16 %v3709_v61  ;;  %v5148_v50 = vrot.slane %v5146_v15, 5  ;;  %v3712_v33 = vpack.c.bf16 %v3453_v1, %v3453_v1  ;;  %v3967_v2 = vunpack.c.l.b16 %v3711_v7 }
 0x22f   : > { %v5154_v35 = vrot.slane %v5152_v54, 5  ;;  %v5159_v44 = vrot.slane %v5157_v47, 4  ;;  %v3966_v13 = vunpack.c.l.b16 %v3710_v16  ;;  %v5160_v17 = vshll.u32 %v8188_v52, 16 }
 0x230   : > { %v4157_v3 = vrot.slane %v3965_v26, 3  ;;  %v5149_v12 = vor.u32 %v5148_v50, %v5145_v31  ;;  %v3968_v18 = vunpack.c.l.b16 %v3712_v33  ;;  %v4161_v5 = vrot.slane %v3967_v2, 1 }
 0x231   : > { %v5166_v45 = vshll.u32 %v8189_v36, 16  ;;  %v808_v58 = vadd.f32 %v9727_v8, %v9677_v27  ;;  %v4159_v63 = vrot.slane %v3966_v13, 2  ;;  %v5162_v38 = vrot.slane %v5160_v17, 5  ;;  %v4284_v27 = vld [vmem:[#allocation2 + $0x70] sm:$0x1f] }
 0x232   : > { %v4158_v23 = vsel %vm4012_vm10, %v4157_v3, %v4156_v53  ;;  %v5150_v46 = vrot.slane %v5149_v12, 4  ;;  %v8218_v6 = vcombine.low %v5314_v14, %v5314_v14  ;;  %v8219_v21 = vcombine.high %v5314_v14, %v5314_v14  ;;  %v3539_v12 = vld [vmem:[#allocation2 + $0x78] sm:$0x1] }
 0x233   : > { %v5168_v30 = vrot.slane %v5166_v45, 5  ;;  %v912_v25 = vmax.f32 %v808_v58, 0.0  ;;  %v4160_v49 = vsel %vm4015_vm11, %v4159_v63, %v4158_v23  ;;  %v5163_v40 = vor.u32 %v5162_v38, %v5159_v44  ;;  %v3602_v45 = vld [vmem:[#allocation2 + $0x78] sm:$0x10] }
 0x234   : > { %v5155_v52 = vsel %vm9671_vm14, %v5150_v46, %v5154_v35  ;;  %v8220_v42 = vcombine.low %v5315_v10, %v5315_v10  ;;  %v4162_v36 = vsel %vm4018_vm12, %v4161_v5, %v4160_v49  ;;  %v8221_v61 = vcombine.high %v5315_v10, %v5315_v10 }
 0x235   : > { %v1840_v43 = vcombine.high %v912_v25, %v912_v25  ;;  %v1847_v53 = vrot.slane %v912_v25, %v9356_v0  ;;  %v4226_v19 = vpack.c.b16 %v3968_v18, %v4162_v36  ;;  %v5164_v15 = vrot.slane %v5163_v40, 4 }
 0x236   : > { %v8246_v1 = vrot.slane %v8218_v6, 9  ;;  %v5424_v7 = vrot.slane %v8219_v21, 5  ;;  %v8247_v26 = vrot.slane %v8220_v42, 9  ;;  %v5428_v2 = vrot.slane %v8221_v61, 5 }
 0x237   : > { %v1854_v54 = vrot.slane %v1840_v43, %v9356_v0  ;;  %v1855_v47 = vcombine.high %v1847_v53, %v1847_v53  ;;  %v8018_v16 = vrot.slane %v1847_v53, 9  ;;  %v4285_v31 = vsel %vm9417_vm15, %v4226_v19, %v4284_v27 }
 0x238   : > { %v5169_v50 = vsel %vm9671_vm14, %v5164_v15, %v5168_v30  ;;  %v5425_v33 = vsel %vm9627_vm3, %v8246_v1, %v5424_v7  ;;  %4286 = vst [vmem:[#allocation2 + $0x70] sm:$0x1f] %v4285_v31  ;;  %v5429_v14 = vsel %vm9627_vm3, %v8247_v26, %v5428_v2  ;;  %v800_v18 = vadd.f32 %v9727_v8, %v9686_v29 }
 0x239   : > { %v8268_v35 = vcombine.low %v5155_v52, %v5169_v50  ;;  %v1856_v44 = vcombine.high %v1854_v54, %v1854_v54  ;;  %v8019_v13 = vrot.slane %v1855_v47, 9  ;;  %v8020_v3 = vrot.slane %v1854_v54, 9 }
 0x23a   : > { %v3302_v17 = vmax.f32 %v1847_v53, %v8018_v16  ;;  %v811_v5 = vadd.f32 %v9727_v8, %v9709_v24  ;;  %v8276_v63 = vcombine.low %v5425_v33, %v5429_v14  ;;  %v910_v46 = vmax.f32 %v800_v18, 0.0 }
 0x23b   : > { %5538 = vrot.lane.b32.xlu0 %v8268_v35, %s9162_s25  ;;  %v8021_v58 = vrot.slane %v1856_v44, 9  ;;  %v3303_v10 = vmax.f32 %v1855_v47, %v8019_v13  ;;  %v3304_v23 = vmax.f32 %v1854_v54, %v8020_v3  ;;  %v803_v30 = vadd.f32 %v9727_v8, %v9711_v55 }
 0x23c   : > { %v913_v38 = vmax.f32 %v811_v5, 0.0  ;;  %v3540_v25 = vsel %vm9315_vm4, 0, %v3539_v12  ;;  %v3603_v29 = vsel %vm9322_vm6, 0, %v3602_v45  ;;  %v824_v24 = vadd.f32 %v9727_v8, %v9713_v51 }
 0x23d   : > { %v3305_v6 = vmax.f32 %v1856_v44, %v8021_v58  ;;  %3541 = vst [vmem:[#allocation2 + $0x78] sm:$0x1] %v3540_v25  ;;  %v816_v21 = vadd.f32 %v9727_v8, %v9716_v9  ;;  %v1806_v49 = vcombine.high %v910_v46, %v910_v46  ;;  %v1813_v52 = vrot.slane %v910_v46, %v9356_v0 }
 0x23e   : > { %v1857_v40 = vcombine.high %v913_v38, %v913_v38  ;;  %v1864_v55 = vrot.slane %v913_v38, %v9356_v0  ;;  %3604 = vst [vmem:[#allocation2 + $0x78] sm:$0x10] %v3603_v29  ;;  %v911_v42 = vmax.f32 %v803_v30, 0.0  ;;  %v9874_v36 = vmax.f32 %v824_v24, 0.0 }
 0x23f   : > { %5578 = vrot.lane.b32.xlu0 %v8276_v63, %s9161_s23  ;;  %v9876_v27 = vmax.f32 %v816_v21, 0.0  ;;  %v9880_v51 = vadd.f32 %v9727_v8, %v9719_v28  ;;  %v1820_v9 = vrot.slane %v1806_v49, %v9356_v0  ;;  %v1821_v43 = vcombine.high %v1813_v52, %v1813_v52 }
 0x240   : > { %v8010_v53 = vrot.slane %v1813_v52, 9  ;;  %v1871_v61 = vrot.slane %v1857_v40, %v9356_v0  ;;  %v1872_v19 = vcombine.high %v1864_v55, %v1864_v55  ;;  %v8022_v15 = vrot.slane %v1864_v55, 9 }
 0x241   : > { %v1823_v1 = vcombine.high %v911_v42, %v911_v42  ;;  %v1830_v7 = vrot.slane %v911_v42, %v9356_v0  ;;  %v1822_v54 = vcombine.high %v1820_v9, %v1820_v9  ;;  %v8011_v47 = vrot.slane %v1821_v43, 9 }
 0x242   : > { %v8012_v16 = vrot.slane %v1820_v9, 9  ;;  %v3294_v26 = vmax.f32 %v1813_v52, %v8010_v53  ;;  %v1873_v31 = vcombine.high %v1871_v61, %v1871_v61  ;;  %v8023_v50 = vrot.slane %v1872_v19, 9 }
 0x243   : > { %v8024_v33 = vrot.slane %v1871_v61, 9  ;;  %v3306_v28 = vmax.f32 %v1864_v55, %v8022_v15  ;;  %v8013_v8 = vrot.slane %v1822_v54, 9  ;;  %v3295_v2 = vmax.f32 %v1821_v43, %v8011_v47 }
 0x244   : > { %v3296_v35 = vmax.f32 %v1820_v9, %v8012_v16  ;;  %v3454_v44 = vmax.f32 %v3294_v26, %v3302_v17  ;;  %v8025_v13 = vrot.slane %v1873_v31, 9  ;;  %v3307_v3 = vmax.f32 %v1872_v19, %v8023_v50 }
 0x245   : > { %v3308_v12 = vmax.f32 %v1871_v61, %v8024_v33  ;;  %v1837_v14 = vrot.slane %v1823_v1, %v9356_v0  ;;  %v3297_v18 = vmax.f32 %v1822_v54, %v8013_v8  ;;  %v3455_v5 = vmax.f32 %v3295_v2, %v3303_v10 }
 0x246   : > { %v3456_v45 = vmax.f32 %v3296_v35, %v3304_v23  ;;  %v3713_v58 = vpack.c.bf16 %v3454_v44, %v3454_v44  ;;  %v3309_v63 = vmax.f32 %v1873_v31, %v8025_v13  ;;  %v1838_v46 = vcombine.high %v1830_v7, %v1830_v7 }
 0x247   : > { %v1839_v38 = vcombine.high %v1837_v14, %v1837_v14  ;;  %v8014_v30 = vrot.slane %v1830_v7, 9  ;;  %v3457_v25 = vmax.f32 %v3297_v18, %v3305_v6  ;;  %v3714_v29 = vpack.c.bf16 %v3455_v5, %v3455_v5 }
 0x248   : > { %v3715_v24 = vpack.c.bf16 %v3456_v45, %v3456_v45  ;;  %v3969_v21 = vunpack.c.l.b16 %v3713_v58  ;;  %v8015_v49 = vrot.slane %v1838_v46, 9  ;;  %v8016_v52 = vrot.slane %v1837_v14, 9 }
 0x249   : > { %v8017_v17 = vrot.slane %v1839_v38, 9  ;;  %v3298_v40 = vmax.f32 %v1830_v7, %v8014_v30  ;;  %v3716_v55 = vpack.c.bf16 %v3457_v25, %v3457_v25  ;;  %v3970_v42 = vunpack.c.l.b16 %v3714_v29 }
 0x24a   : > { %v3971_v9 = vunpack.c.l.b16 %v3715_v24  ;;  %v4163_v43 = vrot.slane %v3969_v21, 7  ;;  %v3299_v53 = vmax.f32 %v1838_v46, %v8015_v49  ;;  %v3300_v10 = vmax.f32 %v1837_v14, %v8016_v52  ;;  %v3542_v24 = vld [vmem:[#allocation2 + $0x80] sm:$0x1]  ;;  %v3605_v21 = vld [vmem:[#allocation2 + $0x80] sm:$0x10] }
 0x24b   : > { %v3301_v23 = vmax.f32 %v1839_v38, %v8017_v17  ;;  %v3458_v61 = vmax.f32 %v3298_v40, %v3306_v28  ;;  %v3972_v19 = vunpack.c.l.b16 %v3716_v55  ;;  %v4164_v15 = vrot.slane %v3970_v42, 6 }
 0x24c   : > { %v4166_v1 = vrot.slane %v3971_v9, 5  ;;  %v1908_v6 = vcombine.high %v9874_v36, %v9874_v36  ;;  %v3459_v54 = vmax.f32 %v3299_v53, %v3307_v3  ;;  %v3460_v47 = vmax.f32 %v3300_v10, %v3308_v12  ;;  %v4287_v10 = vld [vmem:[#allocation2 + $0x78] sm:$0x1f] }
 0x24d   : > { %v3461_v16 = vmax.f32 %v3301_v23, %v3309_v63  ;;  %v3717_v26 = vpack.c.bf16 %v3458_v61, %v3458_v61  ;;  %v4165_v7 = vsel %vm4003_vm7, %v4164_v15, %v4163_v43  ;;  %v4168_v31 = vrot.slane %v3972_v19, 4  ;;  %v9906_v23 = vld [vmem:[%s10644_s2] ss:$0 sm:$0xff] }
 0x24e   : > { %v1915_v50 = vrot.slane %v9874_v36, %v9356_v0  ;;  %v1922_v33 = vrot.slane %v1908_v6, %v9356_v0  ;;  %v4167_v28 = vsel %vm4006_vm8, %v4166_v1, %v4165_v7  ;;  %v3718_v8 = vpack.c.bf16 %v3459_v54, %v3459_v54 }
 0x24f   : > { %v3719_v2 = vpack.c.bf16 %v3460_v47, %v3460_v47  ;;  %v3720_v35 = vpack.c.bf16 %v3461_v16, %v3461_v16  ;;  %v3973_v44 = vunpack.c.l.b16 %v3717_v26  ;;  %v4169_v13 = vsel %vm4009_vm9, %v4168_v31, %v4167_v28 }
 0x250   : > { %v1923_v3 = vcombine.high %v1915_v50, %v1915_v50  ;;  %v1924_v12 = vcombine.high %v1922_v33, %v1922_v33  ;;  %v3974_v14 = vunpack.c.l.b16 %v3718_v8  ;;  %v8034_v45 = vrot.slane %v1915_v50, 9 }
 0x251   : > { %v3975_v18 = vunpack.c.l.b16 %v3719_v2  ;;  %v3976_v5 = vunpack.c.l.b16 %v3720_v35  ;;  %v4170_v58 = vrot.slane %v3973_v44, 3  ;;  %v8036_v46 = vrot.slane %v1922_v33, 9 }
 0x252   : > { %v8035_v63 = vrot.slane %v1923_v3, 9  ;;  %v8037_v36 = vrot.slane %v1924_v12, 9  ;;  %v4172_v38 = vrot.slane %v3974_v14, 2  ;;  %v3318_v25 = vmax.f32 %v1915_v50, %v8034_v45 }
 0x253   : > { %v4174_v30 = vrot.slane %v3975_v18, 1  ;;  %v1874_v29 = vcombine.high %v9876_v27, %v9876_v27  ;;  %v4171_v49 = vsel %vm4012_vm10, %v4170_v58, %v4169_v13  ;;  %v3320_v17 = vmax.f32 %v1922_v33, %v8036_v46 }
 0x254   : > { %v3319_v52 = vmax.f32 %v1923_v3, %v8035_v63  ;;  %v3321_v40 = vmax.f32 %v1924_v12, %v8037_v36  ;;  %v4173_v55 = vsel %vm4015_vm11, %v4172_v38, %v4171_v49  ;;  %v1881_v42 = vrot.slane %v9876_v27, %v9356_v0  ;;  %v4996_v36 = vld [vmem:[#allocation2 + $0x38] sm:$0x1f] }
 0x255   : > { %v1888_v9 = vrot.slane %v1874_v29, %v9356_v0  ;;  %v917_v43 = vmax.f32 %v9880_v51, 0.0  ;;  %v4175_v53 = vsel %vm4018_vm12, %v4174_v30, %v4173_v55  ;;  %v819_v61 = vadd.f32 %v9906_v23, %v9722_v41 }
 0x256   : > { %v3543_v19 = vsel %vm9315_vm4, 0, %v3542_v24  ;;  %v3606_v27 = vsel %vm9322_vm6, 0, %v3605_v21  ;;  %v4227_v15 = vpack.c.b16 %v3976_v5, %v4175_v53  ;;  %v1889_v1 = vcombine.high %v1881_v42, %v1881_v42  ;;  %v8923_v21 = vld [vmem:[%s10645_s3 + $0x30] sm:$0xff]  }
 0x257   : > { %v1890_v51 = vcombine.high %v1888_v9, %v1888_v9  ;;  %v8026_v6 = vrot.slane %v1881_v42, 9  ;;  %3544 = vst [vmem:[#allocation2 + $0x80] sm:$0x1] %v3543_v19  ;;  %3607 = vst [vmem:[#allocation2 + $0x80] sm:$0x10] %v3606_v27  ;;  %v8028_v54 = vrot.slane %v1888_v9, 9  ;;  %v1925_v47 = vcombine.high %v917_v43, %v917_v43  ;;  %8666 = vmatprep.subr.bf16.mxu1 %v8923_v21 }
 0x258   : > { %v1932_v16 = vrot.slane %v917_v43, %v9356_v0  ;;  %v915_v26 = vmax.f32 %v819_v61, 0.0  ;;  %v4288_v41 = vsel %vm9417_vm15, %v4227_v15, %v4287_v10  ;;  %v8027_v7 = vrot.slane %v1889_v1, 9  ;;  %v4997_v19 = vld [vmem:[#allocation2 + $0x40] sm:$0x1f]  ;;  %8667 = vmatpush3.bf16.msra.mxu1 %v8923_v21 }
 0x259   : > { %v8029_v31 = vrot.slane %v1890_v51, 9  ;;  %v3310_v50 = vmax.f32 %v1881_v42, %v8026_v6  ;;  %4289 = vst [vmem:[#allocation2 + $0x78] sm:$0x1f] %v4288_v41  ;;  %v3312_v33 = vmax.f32 %v1888_v9, %v8028_v54  ;;  %v1939_v28 = vrot.slane %v1925_v47, %v9356_v0  ;;  %v8932_v6 = vld [vmem:[%s10645_s3 + $0x38] sm:$0xff]  }
 0x25a   : > { %v1940_v8 = vcombine.high %v1932_v16, %v1932_v16  ;;  %v8038_v2 = vrot.slane %v1932_v16, 9  ;;  %v3311_v35 = vmax.f32 %v1889_v1, %v8027_v7  ;;  %v1891_v3 = vcombine.high %v915_v26, %v915_v26  ;;  %8668 = vmatprep.subr.bf16.mxu1 %v8932_v6 }
 0x25b   : > { %v3313_v44 = vmax.f32 %v1890_v51, %v8029_v31  ;;  %v3462_v13 = vmax.f32 %v3310_v50, %v3318_v25  ;;  %v3464_v12 = vmax.f32 %v3312_v33, %v3320_v17  ;;  %v1941_v14 = vcombine.high %v1939_v28, %v1939_v28 }
 0x25c   : > { %v8039_v18 = vrot.slane %v1940_v8, 9  ;;  %v8040_v5 = vrot.slane %v1939_v28, 9  ;;  %v3463_v45 = vmax.f32 %v3311_v35, %v3319_v52  ;;  %v3322_v46 = vmax.f32 %v1932_v16, %v8038_v2  ;;  %8669 = vmatpush3.bf16.msra.mxu1 %v8932_v6 }
 0x25d   : > { %v3465_v58 = vmax.f32 %v3313_v44, %v3321_v40  ;;  %v3721_v63 = vpack.c.bf16 %v3462_v13, %v3462_v13  ;;  %v3723_v38 = vpack.c.bf16 %v3464_v12, %v3464_v12  ;;  %v8041_v30 = vrot.slane %v1941_v14, 9  ;;  %v8942_v12 = vld [vmem:[%s10645_s3 + $0x40] sm:$0xff]  }
 0x25e   : > { %v3323_v29 = vmax.f32 %v1940_v8, %v8039_v18  ;;  %v3324_v24 = vmax.f32 %v1939_v28, %v8040_v5  ;;  %v3722_v49 = vpack.c.bf16 %v3463_v45, %v3463_v45  ;;  %v1898_v17 = vrot.slane %v915_v26, %v9356_v0  ;;  %8670 = vmatprep.subr.bf16.mxu1 %v8942_v12 }
 0x25f   : > { %v3724_v25 = vpack.c.bf16 %v3465_v58, %v3465_v58  ;;  %v3977_v55 = vunpack.c.l.b16 %v3721_v63  ;;  %v3979_v42 = vunpack.c.l.b16 %v3723_v38  ;;  %v3325_v9 = vmax.f32 %v1941_v14, %v8041_v30 }
 0x260   : > { %v1905_v52 = vrot.slane %v1891_v3, %v9356_v0  ;;  %v8190_v40 = vcombine.low %v4996_v36, %v4996_v36  ;;  %v3978_v43 = vunpack.c.l.b16 %v3722_v49  ;;  %v1906_v61 = vcombine.high %v1898_v17, %v1898_v17  ;;  %8671 = vmatpush3.bf16.msra.mxu1 %v8942_v12 }
 0x261   : > { %v3980_v53 = vunpack.c.l.b16 %v3724_v25  ;;  %v4176_v10 = vrot.slane %v3977_v55, 7  ;;  %v4179_v27 = vrot.slane %v3979_v42, 5  ;;  %v8030_v1 = vrot.slane %v1898_v17, 9 }
 0x262   : > { %v1907_v15 = vcombine.high %v1905_v52, %v1905_v52  ;;  %v8032_v51 = vrot.slane %v1905_v52, 9  ;;  %v4177_v54 = vrot.slane %v3978_v43, 6  ;;  %v8031_v16 = vrot.slane %v1906_v61, 9 }
 0x263   : > { %v4181_v47 = vrot.slane %v3980_v53, 4  ;;  %v8191_v26 = vcombine.high %v4996_v36, %v4996_v36  ;;  %v3314_v7 = vmax.f32 %v1898_v17, %v8030_v1  ;;  %v8192_v50 = vcombine.low %v4997_v19, %v4997_v19  ;;  %v5316_v53 = vld [vmem:[#allocation2 + $0x38] sm:$0x1e] }
 0x264   : > { %v8033_v41 = vrot.slane %v1907_v15, 9  ;;  %v3316_v31 = vmax.f32 %v1905_v52, %v8032_v51  ;;  %v4178_v33 = vsel %vm4003_vm7, %v4177_v54, %v4176_v10  ;;  %v3315_v28 = vmax.f32 %v1906_v61, %v8031_v16  ;;  %v5317_v51 = vld [vmem:[#allocation2 + $0x40] sm:$0x1e] }
 0x265   : > { %v8193_v8 = vcombine.high %v4997_v19, %v4997_v19  ;;  %v5171_v2 = vshrl.u32 %v8190_v40, 16  ;;  %v4180_v35 = vsel %vm4006_vm8, %v4179_v27, %v4178_v33  ;;  %v3466_v13 = vmax.f32 %v3314_v7, %v3322_v46  ;;  %v4290_v33 = vld [vmem:[#allocation2 + $0x80] sm:$0x1f] }
 0x266   : > { %v3317_v44 = vmax.f32 %v1907_v15, %v8033_v41  ;;  %v3468_v3 = vmax.f32 %v3316_v31, %v3324_v24  ;;  %v3467_v14 = vmax.f32 %v3315_v28, %v3323_v29  ;;  %v4182_v18 = vsel %vm4009_vm9, %v4181_v47, %v4180_v35 }
 0x267   : > { %v5173_v5 = vrot.slane %v5171_v2, 4  ;;  %v5174_v45 = vshll.u32 %v8190_v40, 16  ;;  %v3725_v63 = vpack.c.bf16 %v3466_v13, %v3466_v13  ;;  %v5180_v38 = vshll.u32 %v8191_v26, 16 }
 0x268   : > { %v3469_v58 = vmax.f32 %v3317_v44, %v3325_v9  ;;  %v3727_v36 = vpack.c.bf16 %v3468_v3, %v3468_v3  ;;  %v3726_v30 = vpack.c.bf16 %v3467_v14, %v3467_v14  ;;  %v5185_v49 = vshrl.u32 %v8192_v50, 16 }
 0x269   : > { %v5176_v21 = vrot.slane %v5174_v45, 5  ;;  %v5188_v25 = vshll.u32 %v8192_v50, 16  ;;  %v3981_v24 = vunpack.c.l.b16 %v3725_v63  ;;  %v5182_v17 = vrot.slane %v5180_v38, 5 }
 0x26a   : > { %v3728_v46 = vpack.c.bf16 %v3469_v58, %v3469_v58  ;;  %v3983_v55 = vunpack.c.l.b16 %v3727_v36  ;;  %v3982_v42 = vunpack.c.l.b16 %v3726_v30  ;;  %v5187_v52 = vrot.slane %v5185_v49, 4 }
 0x26b   : > { %v5177_v29 = vor.u32 %v5176_v21, %v5173_v5  ;;  %v5190_v43 = vrot.slane %v5188_v25, 5  ;;  %v4183_v9 = vrot.slane %v3981_v24, 3  ;;  %v5194_v61 = vshll.u32 %v8193_v8, 16  ;;  %v8951_v5 = vld [vmem:[%s10645_s3 + $0x48] sm:$0xff]  }
 0x26c   : > { %v3984_v40 = vunpack.c.l.b16 %v3728_v46  ;;  %v4187_v10 = vrot.slane %v3983_v55, 1  ;;  %v4185_v19 = vrot.slane %v3982_v42, 2  ;;  %v840_v1 = vadd.f32 %v9906_v23, %v9762_v59  ;;  %v3545_v25 = vld [vmem:[#allocation2 + $0x88] sm:$0x1]  ;;  %8672 = vmatprep.subr.bf16.mxu1 %v8951_v5 }
 0x26d   : > { %v5178_v27 = vrot.slane %v5177_v29, 4  ;;  %v5191_v15 = vor.u32 %v5190_v43, %v5187_v52  ;;  %v4184_v6 = vsel %vm4012_vm10, %v4183_v9, %v4182_v18  ;;  %v5196_v54 = vrot.slane %v5194_v61, 5  ;;  %8673 = vmatpush3.bf16.msra.mxu1 %v8951_v5 }
 0x26e   : > { %v8222_v47 = vcombine.low %v5316_v53, %v5316_v53  ;;  %v8223_v16 = vcombine.high %v5316_v53, %v5316_v53  ;;  %v4186_v26 = vsel %vm4015_vm11, %v4185_v19, %v4184_v6  ;;  %v920_v31 = vmax.f32 %v840_v1, 0.0  ;;  %v3608_v53 = vld [vmem:[#allocation2 + $0x88] sm:$0x10] }
 0x26f   : > { %v5183_v41 = vsel %vm9671_vm14, %v5178_v27, %v5182_v17  ;;  %v5192_v7 = vrot.slane %v5191_v15, 4  ;;  %v4188_v50 = vsel %vm4018_vm12, %v4187_v10, %v4186_v26  ;;  %v8224_v28 = vcombine.low %v5317_v51, %v5317_v51 }
 0x270   : > { %v8225_v8 = vcombine.high %v5317_v51, %v5317_v51  ;;  %v8248_v2 = vrot.slane %v8222_v47, 9  ;;  %v4228_v59 = vpack.c.b16 %v3984_v40, %v4188_v50  ;;  %v1976_v44 = vcombine.high %v920_v31, %v920_v31 }
 0x271   : > { %v5197_v35 = vsel %vm9671_vm14, %v5192_v7, %v5196_v54  ;;  %v1983_v13 = vrot.slane %v920_v31, %v9356_v0  ;;  %v5432_v12 = vrot.slane %v8223_v16, 5  ;;  %v8249_v14 = vrot.slane %v8224_v28, 9 }
 0x272   : > { %v8269_v3 = vcombine.low %v5183_v41, %v5197_v35  ;;  %v5436_v18 = vrot.slane %v8225_v8, 5  ;;  %v4291_v45 = vsel %vm9417_vm15, %v4228_v59, %v4290_v33  ;;  %v1990_v58 = vrot.slane %v1976_v44, %v9356_v0 }
 0x273   : > { %v1991_v63 = vcombine.high %v1983_v13, %v1983_v13  ;;  %v8050_v36 = vrot.slane %v1983_v13, 9  ;;  %4292 = vst [vmem:[#allocation2 + $0x80] sm:$0x1f] %v4291_v45  ;;  %v5433_v38 = vsel %vm9627_vm3, %v8248_v2, %v5432_v12  ;;  %v832_v21 = vadd.f32 %v9906_v23, %v9766_v48  ;;  %v8960_v48 = vld [vmem:[%s10645_s3 + $0x50] sm:$0xff]  }
 0x274   : > { %5540 = vrot.lane.b32.xlu1 %v8269_v3, %s9162_s25  ;;  %v5437_v30 = vsel %vm9627_vm3, %v8249_v14, %v5436_v18  ;;  %v843_v49 = vadd.f32 %v9906_v23, %v9790_v32  ;;  %v1992_v46 = vcombine.high %v1990_v58, %v1990_v58  ;;  %v8052_v55 = vrot.slane %v1990_v58, 9  ;;  %8674 = vmatprep.subr.bf16.mxu1 %v8960_v48 }
 0x275   : > { %v8051_v24 = vrot.slane %v1991_v63, 9  ;;  %v3334_v17 = vmax.f32 %v1983_v13, %v8050_v36  ;;  %v8277_v42 = vcombine.low %v5433_v38, %v5437_v30  ;;  %v918_v29 = vmax.f32 %v832_v21, 0.0  ;;  %8675 = vmatpush3.bf16.msra.mxu1 %v8960_v48  ;;  %v8969_v13 = vld [vmem:[%s10645_s3 + $0x58] sm:$0xff]  }
 0x276   : > { %v921_v52 = vmax.f32 %v843_v49, 0.0  ;;  %v835_v43 = vadd.f32 %v9906_v23, %v9792_v39  ;;  %v8053_v40 = vrot.slane %v1992_v46, 9  ;;  %v3336_v9 = vmax.f32 %v1990_v58, %v8052_v55  ;;  %8676 = vmatprep.subr.bf16.mxu1 %v8969_v13 }
 0x277   : > { %v3335_v32 = vmax.f32 %v1991_v63, %v8051_v24  ;;  %v3546_v10 = vsel %vm9315_vm4, 0, %v3545_v25  ;;  %v1942_v61 = vcombine.high %v918_v29, %v918_v29  ;;  %v1949_v19 = vrot.slane %v918_v29, %v9356_v0 }
 0x278   : > { %5580 = vrot.lane.b32.xlu1 %v8277_v42, %s9161_s23  ;;  %v1993_v27 = vcombine.high %v921_v52, %v921_v52  ;;  %v2000_v39 = vrot.slane %v921_v52, %v9356_v0  ;;  %3547 = vst [vmem:[#allocation2 + $0x88] sm:$0x1] %v3546_v10  ;;  %v3337_v15 = vmax.f32 %v1992_v46, %v8053_v40  ;;  %v919_v1 = vmax.f32 %v835_v43, 0.0 }
 0x279   : > { %v3609_v51 = vsel %vm9322_vm6, 0, %v3608_v53  ;;  %v856_v6 = vadd.f32 %v9906_v23, %v9806_v11  ;;  %v1956_v54 = vrot.slane %v1942_v61, %v9356_v0  ;;  %v1957_v47 = vcombine.high %v1949_v19, %v1949_v19  ;;  %8677 = vmatpush3.bf16.msra.mxu1 %v8969_v13 }
 0x27a   : > { %v8042_v16 = vrot.slane %v1949_v19, 9  ;;  %v2007_v26 = vrot.slane %v1993_v27, %v9356_v0  ;;  %3610 = vst [vmem:[#allocation2 + $0x88] sm:$0x10] %v3609_v51  ;;  %v2008_v41 = vcombine.high %v2000_v39, %v2000_v39  ;;  %v8054_v7 = vrot.slane %v2000_v39, 9 }
 0x27b   : > { %v1959_v31 = vcombine.high %v919_v1, %v919_v1  ;;  %v1966_v50 = vrot.slane %v919_v1, %v9356_v0  ;;  %v1958_v33 = vcombine.high %v1956_v54, %v1956_v54  ;;  %v8043_v28 = vrot.slane %v1957_v47, 9 }
 0x27c   : > { %v8044_v8 = vrot.slane %v1956_v54, 9  ;;  %v3326_v2 = vmax.f32 %v1949_v19, %v8042_v16  ;;  %v2009_v59 = vcombine.high %v2007_v26, %v2007_v26  ;;  %v8055_v11 = vrot.slane %v2008_v41, 9 }
 0x27d   : > { %v8056_v35 = vrot.slane %v2007_v26, 9  ;;  %v3338_v44 = vmax.f32 %v2000_v39, %v8054_v7  ;;  %v8045_v3 = vrot.slane %v1958_v33, 9  ;;  %v3327_v12 = vmax.f32 %v1957_v47, %v8043_v28 }
 0x27e   : > { %v3328_v14 = vmax.f32 %v1956_v54, %v8044_v8  ;;  %v3470_v18 = vmax.f32 %v3326_v2, %v3334_v17  ;;  %v8057_v5 = vrot.slane %v2009_v59, 9  ;;  %v3339_v45 = vmax.f32 %v2008_v41, %v8055_v11 }
 0x27f   : > { %v3340_v58 = vmax.f32 %v2007_v26, %v8056_v35  ;;  %v1973_v63 = vrot.slane %v1959_v31, %v9356_v0  ;;  %v3329_v36 = vmax.f32 %v1958_v33, %v8045_v3  ;;  %v3471_v38 = vmax.f32 %v3327_v12, %v3335_v32 }
 0x280   : > { %v3472_v30 = vmax.f32 %v3328_v14, %v3336_v9  ;;  %v3729_v21 = vpack.c.bf16 %v3470_v18, %v3470_v18  ;;  %v3341_v49 = vmax.f32 %v2009_v59, %v8057_v5  ;;  %v1974_v25 = vcombine.high %v1966_v50, %v1966_v50 }
 0x281   : > { %v1975_v46 = vcombine.high %v1973_v63, %v1973_v63  ;;  %v8046_v24 = vrot.slane %v1966_v50, 9  ;;  %v3473_v55 = vmax.f32 %v3329_v36, %v3337_v15  ;;  %v3730_v42 = vpack.c.bf16 %v3471_v38, %v3471_v38 }
 0x282   : > { %v3731_v29 = vpack.c.bf16 %v3472_v30, %v3472_v30  ;;  %v3985_v52 = vunpack.c.l.b16 %v3729_v21  ;;  %v8047_v17 = vrot.slane %v1974_v25, 9  ;;  %v8048_v43 = vrot.slane %v1973_v63, 9  ;;  %v3548_v21 = vld [vmem:[#allocation2 + $0x90] sm:$0x1] }
 0x283   : > { %v8049_v53 = vrot.slane %v1975_v46, 9  ;;  %v3330_v48 = vmax.f32 %v1966_v50, %v8046_v24  ;;  %v3732_v40 = vpack.c.bf16 %v3473_v55, %v3473_v55  ;;  %v3986_v10 = vunpack.c.l.b16 %v3730_v42 }
 0x284   : > { %v3987_v61 = vunpack.c.l.b16 %v3731_v29  ;;  %v4189_v19 = vrot.slane %v3985_v52, 7  ;;  %v3331_v32 = vmax.f32 %v1974_v25, %v8047_v17  ;;  %v3332_v9 = vmax.f32 %v1973_v63, %v8048_v43  ;;  %v9991_v43 = vld [vmem:[#allocation2 + $0x58] sm:$0x1f] }
 0x285   : > { %v3333_v27 = vmax.f32 %v1975_v46, %v8049_v53  ;;  %v3474_v39 = vmax.f32 %v3330_v48, %v3338_v44  ;;  %v3988_v1 = vunpack.c.l.b16 %v3732_v40  ;;  %v4190_v51 = vrot.slane %v3986_v10, 6  ;;  %v9993_v53 = vld [vmem:[#allocation2 + $0x60] sm:$0x1f]  ;;  %v4293_v48 = vld [vmem:[#allocation2 + $0x88] sm:$0x1f] }
 0x286   : > { %v4192_v54 = vrot.slane %v3987_v61, 5  ;;  %v924_v47 = vmax.f32 %v856_v6, 0.0  ;;  %v3475_v15 = vmax.f32 %v3331_v32, %v3339_v45  ;;  %v3476_v16 = vmax.f32 %v3332_v9, %v3340_v58 }
 0x287   : > { %v3477_v26 = vmax.f32 %v3333_v27, %v3341_v49  ;;  %v3733_v41 = vpack.c.bf16 %v3474_v39, %v3474_v39  ;;  %v4191_v7 = vsel %vm4003_vm7, %v4190_v51, %v4189_v19  ;;  %v4194_v31 = vrot.slane %v3988_v1, 4  ;;  %v3611_v49 = vld [vmem:[#allocation2 + $0x90] sm:$0x10] }
 0x288   : > { %v2044_v50 = vcombine.high %v924_v47, %v924_v47  ;;  %v2051_v33 = vrot.slane %v924_v47, %v9356_v0  ;;  %v4193_v28 = vsel %vm4006_vm8, %v4192_v54, %v4191_v7  ;;  %v3734_v8 = vpack.c.bf16 %v3475_v15, %v3475_v15 }
 0x289   : > { %v3735_v2 = vpack.c.bf16 %v3476_v16, %v3476_v16  ;;  %v3736_v59 = vpack.c.bf16 %v3477_v26, %v3477_v26  ;;  %v3989_v11 = vunpack.c.l.b16 %v3733_v41  ;;  %v4195_v35 = vsel %vm4009_vm9, %v4194_v31, %v4193_v28 }
 0x28a   : > { %v2058_v6 = vrot.slane %v2044_v50, %v9356_v0  ;;  %v2059_v44 = vcombine.high %v2051_v33, %v2051_v33  ;;  %v3990_v13 = vunpack.c.l.b16 %v3734_v8  ;;  %v8066_v14 = vrot.slane %v2051_v33, 9 }
 0x28b   : > { %v3991_v3 = vunpack.c.l.b16 %v3735_v2  ;;  %v3992_v12 = vunpack.c.l.b16 %v3736_v59  ;;  %v4196_v18 = vrot.slane %v3989_v11, 3  ;;  %v848_v30 = vadd.f32 %v9906_v23, %v9810_v57 }
 0x28c   : > { %v2060_v5 = vcombine.high %v2058_v6, %v2058_v6  ;;  %v8067_v45 = vrot.slane %v2059_v44, 9  ;;  %v8068_v58 = vrot.slane %v2058_v6, 9  ;;  %v4198_v63 = vrot.slane %v3990_v13, 2 }
 0x28d   : > { %v4200_v36 = vrot.slane %v3991_v3, 1  ;;  %v3350_v38 = vmax.f32 %v2051_v33, %v8066_v14  ;;  %v4197_v25 = vsel %vm4012_vm10, %v4196_v18, %v4195_v35  ;;  %v922_v29 = vmax.f32 %v848_v30, 0.0 }
 0x28e   : > { %v8069_v46 = vrot.slane %v2060_v5, 9  ;;  %v3351_v24 = vmax.f32 %v2059_v44, %v8067_v45  ;;  %v3352_v55 = vmax.f32 %v2058_v6, %v8068_v58  ;;  %v4199_v42 = vsel %vm4015_vm11, %v4198_v63, %v4197_v25 }
 0x28f   : > { %v859_v52 = vadd.f32 %v9906_v23, %v9812_v4  ;;  %v851_v17 = vadd.f32 %v9906_v23, %v9815_v60  ;;  %v4201_v57 = vsel %vm4018_vm12, %v4200_v36, %v4199_v42  ;;  %v3549_v10 = vsel %vm9315_vm4, 0, %v3548_v21 }
 0x290   : > { %v3353_v40 = vmax.f32 %v2060_v5, %v8069_v46  ;;  %v3612_v61 = vsel %vm9322_vm6, 0, %v3611_v49  ;;  %v4229_v19 = vpack.c.b16 %v3992_v12, %v4201_v57  ;;  %v2010_v32 = vcombine.high %v922_v29, %v922_v29  ;;  %3550 = vst [vmem:[#allocation2 + $0x90] sm:$0x1] %v3549_v10 }
 0x291   : > { %v2017_v4 = vrot.slane %v922_v29, %v9356_v0  ;;  %v925_v9 = vmax.f32 %v859_v52, 0.0  ;;  %3613 = vst [vmem:[#allocation2 + $0x90] sm:$0x10] %v3612_v61  ;;  %v923_v60 = vmax.f32 %v851_v17, 0.0  ;;  %v10003_v23 = vcombine.low %v9991_v43, %v9991_v43 }
 0x292   : > { %v8195_v27 = vcombine.high %v9991_v43, %v9991_v43  ;;  %v10009_v39 = vcombine.low %v9993_v53, %v9993_v53  ;;  %v4294_v1 = vsel %vm9417_vm15, %v4229_v19, %v4293_v48  ;;  %v2024_v51 = vrot.slane %v2010_v32, %v9356_v0 }
 0x293   : > { %v2025_v54 = vcombine.high %v2017_v4, %v2017_v4  ;;  %v8058_v47 = vrot.slane %v2017_v4, 9  ;;  %4295 = vst [vmem:[#allocation2 + $0x88] sm:$0x1f] %v4294_v1  ;;  %v2061_v15 = vcombine.high %v925_v9, %v925_v9  ;;  %v2068_v16 = vrot.slane %v925_v9, %v9356_v0 }
 0x294   : > { %v2027_v26 = vcombine.high %v923_v60, %v923_v60  ;;  %v2034_v41 = vrot.slane %v923_v60, %v9356_v0  ;;  %v2026_v7 = vcombine.high %v2024_v51, %v2024_v51  ;;  %v8060_v50 = vrot.slane %v2024_v51, 9 }
 0x295   : > { %v8059_v31 = vrot.slane %v2025_v54, 9  ;;  %v3342_v33 = vmax.f32 %v2017_v4, %v8058_v47  ;;  %v2075_v28 = vrot.slane %v2061_v15, %v9356_v0  ;;  %v2076_v8 = vcombine.high %v2068_v16, %v2068_v16 }
 0x296   : > { %v8070_v2 = vrot.slane %v2068_v16, 9  ;;  %v2041_v59 = vrot.slane %v2027_v26, %v9356_v0  ;;  %v8061_v11 = vrot.slane %v2026_v7, 9  ;;  %v3344_v6 = vmax.f32 %v2024_v51, %v8060_v50 }
 0x297   : > { %v3343_v35 = vmax.f32 %v2025_v54, %v8059_v31  ;;  %v3478_v44 = vmax.f32 %v3342_v33, %v3350_v38  ;;  %v2077_v13 = vcombine.high %v2075_v28, %v2075_v28  ;;  %v8071_v3 = vrot.slane %v2076_v8, 9 }
 0x298   : > { %v8072_v12 = vrot.slane %v2075_v28, 9  ;;  %v3354_v14 = vmax.f32 %v2068_v16, %v8070_v2  ;;  %v3345_v18 = vmax.f32 %v2026_v7, %v8061_v11  ;;  %v3480_v45 = vmax.f32 %v3344_v6, %v3352_v55 }
 0x299   : > { %v3479_v5 = vmax.f32 %v3343_v35, %v3351_v24  ;;  %v3737_v58 = vpack.c.bf16 %v3478_v44, %v3478_v44  ;;  %v8073_v63 = vrot.slane %v2077_v13, 9  ;;  %v3355_v36 = vmax.f32 %v2076_v8, %v8071_v3 }
 0x29a   : > { %v3356_v30 = vmax.f32 %v2075_v28, %v8072_v12  ;;  %v2042_v21 = vcombine.high %v2034_v41, %v2034_v41  ;;  %v3481_v49 = vmax.f32 %v3345_v18, %v3353_v40  ;;  %v3739_v46 = vpack.c.bf16 %v3480_v45, %v3480_v45  ;;  %v5318_v12 = vld [vmem:[#allocation2 + $0x58] sm:$0x1e] }
 0x29b   : > { %v3738_v25 = vpack.c.bf16 %v3479_v5, %v3479_v5  ;;  %v3993_v42 = vunpack.c.l.b16 %v3737_v58  ;;  %v3357_v29 = vmax.f32 %v2077_v13, %v8073_v63  ;;  %v2043_v52 = vcombine.high %v2041_v59, %v2041_v59 }
 0x29c   : > { %v8062_v17 = vrot.slane %v2034_v41, 9  ;;  %v8063_v38 = vrot.slane %v2042_v21, 9  ;;  %v3740_v57 = vpack.c.bf16 %v3481_v49, %v3481_v49  ;;  %v3995_v10 = vunpack.c.l.b16 %v3739_v46 }
 0x29d   : > { %v3994_v48 = vunpack.c.l.b16 %v3738_v25  ;;  %v4202_v61 = vrot.slane %v3993_v42, 7  ;;  %v8064_v19 = vrot.slane %v2041_v59, 9  ;;  %v8065_v24 = vrot.slane %v2043_v52, 9 }
 0x29e   : > { %v3346_v55 = vmax.f32 %v2034_v41, %v8062_v17  ;;  %v3347_v32 = vmax.f32 %v2042_v21, %v8063_v38  ;;  %v3996_v4 = vunpack.c.l.b16 %v3740_v57  ;;  %v4205_v60 = vrot.slane %v3995_v10, 5  ;;  %v5319_v21 = vld [vmem:[#allocation2 + $0x60] sm:$0x1e]  ;;  %v4296_v38 = vld [vmem:[#allocation2 + $0x90] sm:$0x1f] }
 0x29f   : > { %v4203_v9 = vrot.slane %v3994_v48, 6  ;;  %v8197_v40 = vcombine.high %v9993_v53, %v9993_v53  ;;  %v3348_v1 = vmax.f32 %v2041_v59, %v8064_v19  ;;  %v3349_v51 = vmax.f32 %v2043_v52, %v8065_v24  ;;  %v5000_v52 = vld [vmem:[#allocation2 + $0x68] sm:$0x1f] }
 0x2a0   : > { %v3482_v54 = vmax.f32 %v3346_v55, %v3354_v14  ;;  %v3483_v47 = vmax.f32 %v3347_v32, %v3355_v36  ;;  %v4207_v16 = vrot.slane %v3996_v4, 4  ;;  %v5199_v26 = vshrl.u32 %v10003_v23, 16 }
 0x2a1   : > { %v4204_v15 = vsel %vm4003_vm7, %v4203_v9, %v4202_v61  ;;  %v5202_v7 = vshll.u32 %v10003_v23, 16  ;;  %v3484_v31 = vmax.f32 %v3348_v1, %v3356_v30  ;;  %v3485_v50 = vmax.f32 %v3349_v51, %v3357_v29  ;;  %v5001_v61 = vld [vmem:[#allocation2 + $0x70] sm:$0x1f] }
 0x2a2   : > { %v4206_v41 = vsel %vm4006_vm8, %v4205_v60, %v4204_v15  ;;  %v3741_v33 = vpack.c.bf16 %v3482_v54, %v3482_v54  ;;  %v3742_v28 = vpack.c.bf16 %v3483_v47, %v3483_v47  ;;  %v5201_v53 = vrot.slane %v5199_v26, 4  ;;  %v5320_v15 = vld [vmem:[#allocation2 + $0x68] sm:$0x1e] }
 0x2a3   : > { %v4208_v8 = vsel %vm4009_vm9, %v4207_v16, %v4206_v41  ;;  %v5204_v2 = vrot.slane %v5202_v7, 5  ;;  %v3743_v59 = vpack.c.bf16 %v3484_v31, %v3484_v31  ;;  %v3744_v11 = vpack.c.bf16 %v3485_v50, %v3485_v50 }
 0x2a4   : > { %v3997_v35 = vunpack.c.l.b16 %v3741_v33  ;;  %v5208_v6 = vshll.u32 %v8195_v27, 16  ;;  %v3998_v44 = vunpack.c.l.b16 %v3742_v28  ;;  %v5213_v23 = vshrl.u32 %v10009_v39, 16  ;;  %v5321_v28 = vld [vmem:[#allocation2 + $0x70] sm:$0x1e] }
 0x2a5   : > { %v5205_v13 = vor.u32 %v5204_v2, %v5201_v53  ;;  %v5216_v3 = vshll.u32 %v10009_v39, 16  ;;  %v3999_v14 = vunpack.c.l.b16 %v3743_v59  ;;  %v4000_v18 = vunpack.c.l.b16 %v3744_v11  ;;  %v5002_v11 = vld [vmem:[#allocation2 + $0x78] sm:$0x1f] }
 0x2a6   : > { %v4209_v5 = vrot.slane %v3997_v35, 3  ;;  %v5210_v45 = vrot.slane %v5208_v6, 5  ;;  %v4211_v58 = vrot.slane %v3998_v44, 2  ;;  %v5215_v36 = vrot.slane %v5213_v23, 4 }
 0x2a7   : > { %v5206_v63 = vrot.slane %v5205_v13, 4  ;;  %v5218_v30 = vrot.slane %v5216_v3, 5  ;;  %v4213_v43 = vrot.slane %v3999_v14, 1  ;;  %v5222_v27 = vshll.u32 %v8197_v40, 16 }
 0x2a8   : > { %v4210_v49 = vsel %vm4012_vm10, %v4209_v5, %v4208_v8  ;;  %v8226_v25 = vcombine.low %v5318_v12, %v5318_v12  ;;  %v8227_v29 = vcombine.high %v5318_v12, %v5318_v12  ;;  %v8228_v48 = vcombine.low %v5319_v21, %v5319_v21 }
 0x2a9   : > { %v4212_v46 = vsel %vm4015_vm11, %v4211_v58, %v4210_v49  ;;  %v5211_v39 = vsel %vm9671_vm14, %v5206_v63, %v5210_v45  ;;  %v5219_v42 = vor.u32 %v5218_v30, %v5215_v36  ;;  %v5224_v57 = vrot.slane %v5222_v27, 5 }
 0x2aa   : > { %v4214_v17 = vsel %vm4018_vm12, %v4213_v43, %v4212_v46  ;;  %v8229_v10 = vcombine.high %v5319_v21, %v5319_v21  ;;  %v8250_v55 = vrot.slane %v8226_v25, 9  ;;  %v5440_v32 = vrot.slane %v8227_v29, 5 }
 0x2ab   : > { %v4230_v19 = vpack.c.b16 %v4000_v18, %v4214_v17  ;;  %v5220_v24 = vrot.slane %v5219_v42, 4  ;;  %v8251_v4 = vrot.slane %v8228_v48, 9  ;;  %v8198_v60 = vcombine.low %v5000_v52, %v5000_v52  ;;  %v5003_v18 = vld [vmem:[#allocation2 + $0x80] sm:$0x1f]  ;;  %v5322_v17 = vld [vmem:[#allocation2 + $0x78] sm:$0x1e] }
 0x2ac   : > { %v5444_v9 = vrot.slane %v8229_v10, 5  ;;  %v8199_v40 = vcombine.high %v5000_v52, %v5000_v52  ;;  %v5441_v54 = vsel %vm9627_vm3, %v8250_v55, %v5440_v32  ;;  %v8200_v47 = vcombine.low %v5001_v61, %v5001_v61  ;;  %v5323_v32 = vld [vmem:[#allocation2 + $0x80] sm:$0x1e] }
 0x2ad   : > { %v4297_v1 = vsel %vm9417_vm15, %v4230_v19, %v4296_v38  ;;  %v5225_v51 = vsel %vm9671_vm14, %v5220_v24, %v5224_v57  ;;  %v8201_v7 = vcombine.high %v5001_v61, %v5001_v61  ;;  %v5227_v41 = vshrl.u32 %v8198_v60, 16 }
 0x2ae   : > { %4298 = vst [vmem:[#allocation2 + $0x90] sm:$0x1f] %v4297_v1  ;;  %v8270_v16 = vcombine.low %v5211_v39, %v5225_v51  ;;  %v5445_v26 = vsel %vm9627_vm3, %v8251_v4, %v5444_v9  ;;  %v5230_v50 = vshll.u32 %v8198_v60, 16  ;;  %v5236_v33 = vshll.u32 %v8199_v40, 16 }
 0x2af   : > { %v8278_v31 = vcombine.low %v5441_v54, %v5445_v26  ;;  %v5241_v20 = vshrl.u32 %v8200_v47, 16  ;;  %v5229_v8 = vrot.slane %v5227_v41, 4  ;;  %v5244_v53 = vshll.u32 %v8200_v47, 16  ;;  %v4639_v41 = vld [vmem:[#allocation2 + $0x8] sm:$0x1e] }
 0x2b0   : > { %5542 = vrot.lane.b32.xlu0 %v8270_v16, %s9162_s25  ;;  %v5250_v2 = vshll.u32 %v8201_v7, 16  ;;  %v8230_v59 = vcombine.low %v5320_v15, %v5320_v15  ;;  %v5232_v35 = vrot.slane %v5230_v50, 5  ;;  %v5238_v6 = vrot.slane %v5236_v33, 5 }
 0x2b1   : > { %v5243_v44 = vrot.slane %v5241_v20, 4  ;;  %v8231_v13 = vcombine.high %v5320_v15, %v5320_v15  ;;  %v5246_v23 = vrot.slane %v5244_v53, 5  ;;  %v8232_v12 = vcombine.low %v5321_v28, %v5321_v28  ;;  %v4316_v15 = vld [vmem:[#allocation2 + $0x8] sm:$0x1f] }
 0x2b2   : > { %v5252_v3 = vrot.slane %v5250_v2, 5  ;;  %v8233_v14 = vcombine.high %v5321_v28, %v5321_v28  ;;  %v5233_v5 = vor.u32 %v5232_v35, %v5229_v8  ;;  %v8252_v45 = vrot.slane %v8230_v59, 9 }
 0x2b3   : > { %v5448_v58 = vrot.slane %v8231_v13, 5  ;;  %v8202_v63 = vcombine.low %v5002_v11, %v5002_v11  ;;  %v5247_v36 = vor.u32 %v5246_v23, %v5243_v44  ;;  %v8253_v30 = vrot.slane %v8232_v12, 9  ;;  %v5004_v13 = vld [vmem:[#allocation2 + $0x88] sm:$0x1f] }
 0x2b4   : > { %5582 = vrot.lane.b32.xlu0 %v8278_v31, %s9161_s23  ;;  %v5452_v21 = vrot.slane %v8233_v14, 5  ;;  %v8203_v49 = vcombine.high %v5002_v11, %v5002_v11  ;;  %v5234_v43 = vrot.slane %v5233_v5, 4  ;;  %v8204_v25 = vcombine.low %v5003_v18, %v5003_v18 }
 0x2b5   : > { %v5449_v27 = vsel %vm9627_vm3, %v8252_v45, %v5448_v58  ;;  %v8205_v46 = vcombine.high %v5003_v18, %v5003_v18  ;;  %v5248_v39 = vrot.slane %v5247_v36, 4  ;;  %v5255_v29 = vshrl.u32 %v8202_v63, 16  ;;  %v5005_v18 = vld [vmem:[#allocation2 + $0x90] sm:$0x1f]  ;;  %v4319_v36 = vld [vmem:[#allocation2 + $0x20] sm:$0x1f] }
 0x2b6   : > { %v5453_v42 = vsel %vm9627_vm3, %v8253_v30, %v5452_v21  ;;  %v5258_v52 = vshll.u32 %v8202_v63, 16  ;;  %v5239_v38 = vsel %vm9671_vm14, %v5234_v43, %v5238_v6  ;;  %v5264_v48 = vshll.u32 %v8203_v49, 16 }
 0x2b7   : > { %v8279_v57 = vcombine.low %v5449_v27, %v5453_v42  ;;  %v5269_v10 = vshrl.u32 %v8204_v25, 16  ;;  %v5253_v61 = vsel %vm9671_vm14, %v5248_v39, %v5252_v3  ;;  %v5257_v19 = vrot.slane %v5255_v29, 4 }
 0x2b8   : > { %v5260_v24 = vrot.slane %v5258_v52, 5  ;;  %v5272_v55 = vshll.u32 %v8204_v25, 16  ;;  %v8271_v4 = vcombine.low %v5239_v38, %v5253_v61  ;;  %v5266_v9 = vrot.slane %v5264_v48, 5  ;;  %v4320_v38 = vld [vmem:[#allocation2 + $0x28] sm:$0x1f] }
 0x2b9   : > { %v5271_v60 = vrot.slane %v5269_v10, 4  ;;  %v5278_v40 = vshll.u32 %v8205_v46, 16  ;;  %v8234_v54 = vcombine.low %v5322_v17, %v5322_v17  ;;  %v8235_v47 = vcombine.high %v5322_v17, %v5322_v17 }
 0x2ba   : > { %v5261_v1 = vor.u32 %v5260_v24, %v5257_v19  ;;  %v5274_v51 = vrot.slane %v5272_v55, 5  ;;  %5544 = vrot.lane.b32.xlu1 %v8271_v4, %s9162_s25  ;;  %v8236_v26 = vcombine.low %v5323_v32, %v5323_v32  ;;  %v8237_v7 = vcombine.high %v5323_v32, %v5323_v32 }
 0x2bb   : > { %v5280_v16 = vrot.slane %v5278_v40, 5  ;;  %v8254_v33 = vrot.slane %v8234_v54, 9  ;;  %v5456_v20 = vrot.slane %v8235_v47, 5  ;;  %v9163_v28 = vmov 0  }
 0x2bc   : > { %v5262_v31 = vrot.slane %v5261_v1, 4  ;;  %v5275_v50 = vor.u32 %v5274_v51, %v5271_v60  ;;  %3486 = vst.msk [vmem:[#allocation2] sm:$0xff] %vm476_vm0, %v9163_v28  ;;  %3487 = vst.msk [vmem:[#allocation2 + $0x50] sm:$0xff] %vm476_vm0, %v9163_v28  ;;  %v8255_v8 = vrot.slane %v8236_v26, 9  ;;  %v5460_v53 = vrot.slane %v8237_v7, 5 }
 0x2bd   : > { %3489 = vst.msk [vmem:[#allocation2 + $0x48] sm:$0xff] %vm476_vm0, %v9163_v28  ;;  %3490 = vst.msk [vmem:[#allocation2 + $0x98] sm:$0xff] %vm476_vm0, %v9163_v28  ;;  %v8076_v2 = vcombine.low %v4316_v15, %v4316_v15  ;;  %v8077_v59 = vcombine.high %v4316_v15, %v4316_v15  ;;  %v5457_v6 = vsel %vm9627_vm3, %v8254_v33, %v5456_v20  ;;  %vm4945_vm15 = vcmask 523264  }
 0x2be   : > { %v5267_v11 = vsel %vm9671_vm14, %v5262_v31, %v5266_v9  ;;  %v5276_v35 = vrot.slane %v5275_v50, 4  ;;  %v8108_v44 = vcombine.low %v4639_v41, %v4639_v41  ;;  %5584 = vrot.lane.b32.xlu1 %v8279_v57, %s9161_s23  ;;  %v5461_v23 = vsel %vm9627_vm3, %v8255_v8, %v5460_v53  ;;  %v5535_v8 = vpop.permute.xlu0 %5534  ;;  %v5324_v53 = vld [vmem:[#allocation2 + $0x88] sm:$0x1e] }
 0x2bf   : > { %v4429_v3 = vshrl.u32 %v8076_v2, 16  ;;  %v4432_v12 = vshll.u32 %v8076_v2, 16  ;;  %v4438_v14 = vshll.u32 %v8077_v59, 16  ;;  %v8280_v45 = vcombine.low %v5457_v6, %v5461_v23  ;;  %v8933_v6 = vld [vmem:[#allocation2 + $0x8] ss:$8 sps:$4 sm:$0xff]  }
 0x2c0   : > { %v5281_v5 = vsel %vm9671_vm14, %v5276_v35, %v5280_v16  ;;  %v8109_v58 = vcombine.high %v4639_v41, %v4639_v41  ;;  %v10067_v63 = vrot.slane %v8108_v44, 9  ;;  %v8206_v25 = vcombine.low %v5004_v13, %v5004_v13 }
 0x2c1   : > { %v8272_v30 = vcombine.low %v5267_v11, %v5281_v5  ;;  %v4431_v21 = vrot.slane %v4429_v3, 4  ;;  %v4434_v49 = vrot.slane %v4432_v12, 5  ;;  %v4440_v43 = vrot.slane %v4438_v14, 5 }
 0x2c2   : > { %v10069_v27 = vrot.slane %v8109_v58, 5  ;;  %v8207_v46 = vcombine.high %v5004_v13, %v5004_v13  ;;  %v8208_v39 = vcombine.low %v5005_v18, %v5005_v18  ;;  %v8209_v17 = vcombine.high %v5005_v18, %v5005_v18 }
 0x2c3   : > { %5546 = vrot.lane.b32.xlu0 %v8272_v30, %s9162_s25  ;;  %v3494_v42 = vld [vmem:[#allocation2] sm:$0x1]  ;;  %v3557_v29 = vld [vmem:[#allocation2] sm:$0x10]  ;;  %v4435_v52 = vor.u32 %v4434_v49, %v4431_v21  ;;  %v8082_v57 = vcombine.low %v4319_v36, %v4319_v36  ;;  %v8083_v48 = vcombine.high %v4319_v36, %v4319_v36  ;;  %v5283_v24 = vshrl.u32 %v8206_v25, 16 }
 0x2c4   : > { %v3495_v10 = vsel %vm9315_vm4, 0, %v3494_v42  ;;  %v3558_v61 = vsel %vm9322_vm6, 0, %v3557_v29  ;;  %v4744_v19 = vsel %vm9627_vm3, %v10067_v63, %v10069_v27  ;;  %v5286_v32 = vshll.u32 %v8206_v25, 16 }
 0x2c5   : > { %3496 = vst [vmem:[#allocation2] sm:$0x1] %v3495_v10  ;;  %3559 = vst [vmem:[#allocation2] sm:$0x10] %v3558_v61  ;;  %v4436_v55 = vrot.slane %v4435_v52, 4  ;;  %v5292_v4 = vshll.u32 %v8207_v46, 16  ;;  %v8084_v51 = vcombine.low %v4320_v38, %v4320_v38  ;;  %v8085_v41 = vcombine.high %v4320_v38, %v4320_v38 }
 0x2c6   : > { %v5297_v9 = vshrl.u32 %v8208_v39, 16  ;;  %v5285_v60 = vrot.slane %v5283_v24, 4  ;;  %v5300_v40 = vshll.u32 %v8208_v39, 16  ;;  %v5306_v1 = vshll.u32 %v8209_v17, 16  ;;  %v5325_v38 = vld [vmem:[#allocation2 + $0x90] sm:$0x1e] }
 0x2c7   : > { %5586 = vrot.lane.b32.xlu0 %v8280_v45, %s9161_s23  ;;  %v10083_v54 = vsel %vm9671_vm14, %v4436_v55, %v4440_v43  ;;  %v5288_v47 = vrot.slane %v5286_v32, 5  ;;  %v5294_v15 = vrot.slane %v5292_v4, 5  ;;  %v4471_v31 = vshrl.u32 %v8082_v57, 16 }
 0x2c8   : > { %v5299_v16 = vrot.slane %v5297_v9, 4  ;;  %v5302_v26 = vrot.slane %v5300_v40, 5  ;;  %v5308_v7 = vrot.slane %v5306_v1, 5  ;;  %v4474_v33 = vshll.u32 %v8082_v57, 16 }
 0x2c9   : > { %v5289_v50 = vor.u32 %v5288_v47, %v5285_v60  ;;  %v4480_v20 = vshll.u32 %v8083_v48, 16  ;;  %v4485_v28 = vshrl.u32 %v8084_v51, 16  ;;  %v4473_v59 = vrot.slane %v4471_v31, 4 }
 0x2ca   : > { %v5303_v2 = vor.u32 %v5302_v26, %v5299_v16  ;;  %v4488_v11 = vshll.u32 %v8084_v51, 16  ;;  %v4494_v35 = vshll.u32 %v8085_v41, 16  ;;  %v4476_v13 = vrot.slane %v4474_v33, 5  ;;  %v4642_v51 = vld [vmem:[#allocation2 + $0x20] sm:$0x1e] }
 0x2cb   : > { %v5290_v44 = vrot.slane %v5289_v50, 4  ;;  %v4482_v23 = vrot.slane %v4480_v20, 5  ;;  %v4487_v3 = vrot.slane %v4485_v28, 4  ;;  %v5592_v45 = vsel %vm476_vm0, %v8933_v6, %v5535_v8 }
 0x2cc   : > { %v4315_v12 = vld [vmem:[#allocation2] sm:$0x1f]  ;;  %v5304_v18 = vrot.slane %v5303_v2, 4  ;;  %v4490_v5 = vrot.slane %v4488_v11, 5  ;;  %v8238_v58 = vcombine.low %v5324_v53, %v5324_v53  ;;  %v4477_v46 = vor.u32 %v4476_v13, %v4473_v59  ;;  %v4317_v2 = vld [vmem:[#allocation2 + $0x10] sm:$0x1f] }
 0x2cd   : > { %v4638_v14 = vld [vmem:[#allocation2] sm:$0x1e]  ;;  %v8074_v36 = vcombine.low %v4315_v12, %v4315_v12  ;;  %v8075_v30 = vcombine.high %v4315_v12, %v4315_v12  ;;  %v5295_v43 = vsel %vm9671_vm14, %v5290_v44, %v5294_v15  ;;  %v4496_v4 = vrot.slane %v4494_v35, 5  ;;  %v4318_v44 = vld [vmem:[#allocation2 + $0x18] sm:$0x1f] }
 0x2ce   : > { %v8106_v21 = vcombine.low %v4638_v14, %v4638_v14  ;;  %v8107_v49 = vcombine.high %v4638_v14, %v4638_v14  ;;  %v5309_v25 = vsel %vm9671_vm14, %v5304_v18, %v5308_v7  ;;  %v4491_v39 = vor.u32 %v4490_v5, %v4487_v3  ;;  %v4643_v7 = vld [vmem:[#allocation2 + $0x28] sm:$0x1e]  ;;  %v3524_v13 = vld [vmem:[#allocation2 + $0x50] sm:$0x1]  ;;  %v5575_v3 = vpop.permute.xlu1 %5574 }
 0x2cf   : > { %v4415_v42 = vshrl.u32 %v8074_v36, 16  ;;  %v4418_v29 = vshll.u32 %v8074_v36, 16  ;;  %v4424_v52 = vshll.u32 %v8075_v30, 16  ;;  %v8273_v48 = vcombine.low %v5295_v43, %v5309_v25  ;;  %v3587_v30 = vld [vmem:[#allocation2 + $0x50] sm:$0x10] }
 0x2d0   : > { %v8138_v17 = vrot.slane %v8106_v21, 9  ;;  %v4739_v57 = vrot.slane %v8107_v49, 5  ;;  %v4478_v10 = vrot.slane %v4477_v46, 4  ;;  %v4492_v61 = vrot.slane %v4491_v39, 4  ;;  %v4324_v25 = vld [vmem:[#allocation2 + $0x58] sm:$0x1f] }
 0x2d1   : > { %v4417_v24 = vrot.slane %v4415_v42, 4  ;;  %v4420_v55 = vrot.slane %v4418_v29, 5  ;;  %v4426_v32 = vrot.slane %v4424_v52, 5  ;;  %5548 = vrot.lane.b32.xlu1 %v8273_v48, %s9162_s25  ;;  %v8239_v40 = vcombine.high %v5324_v53, %v5324_v53 }
 0x2d2   : > { %v4740_v9 = vsel %vm9627_vm3, %v8138_v17, %v4739_v57  ;;  %v10095_v60 = vsel %vm9671_vm14, %v4478_v10, %v4482_v23  ;;  %v8240_v1 = vcombine.low %v5325_v38, %v5325_v38  ;;  %v10104_v16 = vsel %vm9671_vm14, %v4492_v61, %v4496_v4 }
 0x2d3   : > { %v4421_v47 = vor.u32 %v4420_v55, %v4417_v24  ;;  %v8170_v15 = vcombine.low %v4740_v9, %v4744_v19  ;;  %v8241_v26 = vcombine.high %v5325_v38, %v5325_v38  ;;  %v8164_v41 = vcombine.low %v10095_v60, %v10104_v16  ;;  %v4640_v24 = vld [vmem:[#allocation2 + $0x10] sm:$0x1e] }
 0x2d4   : > { %v8256_v31 = vrot.slane %v8238_v58, 9  ;;  %v5464_v50 = vrot.slane %v8239_v40, 5  ;;  %v8257_v33 = vrot.slane %v8240_v1, 9  ;;  %v8114_v8 = vcombine.low %v4642_v51, %v4642_v51  ;;  %v4641_v40 = vld [vmem:[#allocation2 + $0x18] sm:$0x1e] }
 0x2d5   : > { %v4422_v20 = vrot.slane %v4421_v47, 4  ;;  %v5468_v28 = vrot.slane %v8241_v26, 5  ;;  %v8115_v53 = vcombine.high %v4642_v51, %v4642_v51  ;;  %v8116_v27 = vcombine.low %v4643_v7, %v4643_v7 }
 0x2d6   : > { %v5465_v63 = vsel %vm9627_vm3, %v8256_v31, %v5464_v50  ;;  %v8117_v19 = vcombine.high %v4643_v7, %v4643_v7  ;;  %v8142_v35 = vrot.slane %v8114_v8, 9  ;;  %v5615_v58 = vsel %vm4945_vm15, %v5592_v45, %v5575_v3 }
 0x2d7   : > { %v4427_v59 = vsel %vm9671_vm14, %v4422_v20, %v4426_v32  ;;  %v5469_v11 = vsel %vm9627_vm3, %v8257_v33, %v5468_v28  ;;  %v4755_v6 = vrot.slane %v8115_v53, 5  ;;  %v8143_v14 = vrot.slane %v8116_v27, 9  ;;  %8678 = vmatprep.mubr.msk.bf16.mxu1 %vm5679_vm1, %v5615_v58 }
 0x2d8   : > { %v8162_v23 = vcombine.low %v4427_v59, %v10083_v54  ;;  %v8281_v12 = vcombine.low %v5465_v63, %v5469_v11  ;;  %v4759_v18 = vrot.slane %v8117_v19, 5  ;;  %v8078_v36 = vcombine.low %v4317_v2, %v4317_v2  ;;  %v4647_v63 = vld [vmem:[#allocation2 + $0x58] sm:$0x1e] }
 0x2d9   : > { %v4756_v5 = vsel %vm9627_vm3, %v8142_v35, %v4755_v6  ;;  %v8079_v54 = vcombine.high %v4317_v2, %v4317_v2  ;;  %v8080_v49 = vcombine.low %v4318_v44, %v4318_v44  ;;  %v3525_v43 = vsel %vm9315_vm4, 0, %v3524_v13 }
 0x2da   : > { %4865 = vrot.lane.b32.xlu0 %v8162_v23, %s9162_s25  ;;  %5588 = vrot.lane.b32.xlu1 %v8281_v12, %s9161_s23  ;;  %v4760_v21 = vsel %vm9627_vm3, %v8143_v14, %v4759_v18  ;;  %v8081_v45 = vcombine.high %v4318_v44, %v4318_v44  ;;  %v4443_v39 = vshrl.u32 %v8078_v36, 16  ;;  %v4446_v42 = vshll.u32 %v8078_v36, 16  ;;  %3526 = vst [vmem:[#allocation2 + $0x50] sm:$0x1] %v3525_v43  ;;  %v10137_v44 = vld [vmem:[%s10645_s3] sm:$0xff]  }
 0x2db   : > { %v8172_v46 = vcombine.low %v4756_v5, %v4760_v21  ;;  %v4452_v29 = vshll.u32 %v8079_v54, 16  ;;  %v4457_v52 = vshrl.u32 %v8080_v49, 16  ;;  %v4460_v17 = vshll.u32 %v8080_v49, 16  ;;  %8694 = vmatprep.subr.bf16.mxu1 %v10137_v44  ;;  %v4321_v54 = vld [vmem:[#allocation2 + $0x30] sm:$0x1f] }
 0x2dc   : > { %v3588_v38 = vsel %vm9322_vm6, 0, %v3587_v30  ;;  %v4445_v57 = vrot.slane %v4443_v39, 4  ;;  %v4448_v48 = vrot.slane %v4446_v42, 5  ;;  %v4466_v10 = vshll.u32 %v8081_v45, 16  ;;  %v4322_v39 = vld [vmem:[#allocation2 + $0x38] sm:$0x1f] }
 0x2dd   : > { %3589 = vst [vmem:[#allocation2 + $0x50] sm:$0x10] %v3588_v38  ;;  %v8092_v61 = vcombine.low %v4324_v25, %v4324_v25  ;;  %v4454_v55 = vrot.slane %v4452_v29, 5  ;;  %v4459_v32 = vrot.slane %v4457_v52, 4  ;;  %v4462_v4 = vrot.slane %v4460_v17, 5 }
 0x2de   : > { %4905 = vrot.lane.b32.xlu0 %v8170_v15, %s9161_s23  ;;  %v8093_v9 = vcombine.high %v4324_v25, %v4324_v25  ;;  %v4449_v1 = vor.u32 %v4448_v48, %v4445_v57  ;;  %v4468_v51 = vrot.slane %v4466_v10, 5  ;;  %v8110_v50 = vcombine.low %v4640_v24, %v4640_v24  ;;  %v4327_v17 = vld [vmem:[#allocation2 + $0x70] sm:$0x1f] }
 0x2df   : > { %v4541_v47 = vshrl.u32 %v8092_v61, 16  ;;  %v4544_v26 = vshll.u32 %v8092_v61, 16  ;;  %v4463_v7 = vor.u32 %v4462_v4, %v4459_v32  ;;  %v8111_v33 = vcombine.high %v4640_v24, %v4640_v24 }
 0x2e0   : > { %v4550_v31 = vshll.u32 %v8093_v9, 16  ;;  %v4450_v20 = vrot.slane %v4449_v1, 4  ;;  %v8112_v53 = vcombine.low %v4641_v40, %v4641_v40  ;;  %v8113_v19 = vcombine.high %v4641_v40, %v4641_v40 }
 0x2e1   : > { %v4543_v28 = vrot.slane %v4541_v47, 4  ;;  %v4546_v8 = vrot.slane %v4544_v26, 5  ;;  %v4464_v15 = vrot.slane %v4463_v7, 4  ;;  %v8140_v2 = vrot.slane %v8110_v50, 9 }
 0x2e2   : > { %4869 = vrot.lane.b32.xlu0 %v8164_v41, %s9162_s25  ;;  %v4552_v27 = vrot.slane %v4550_v31, 5  ;;  %v4455_v59 = vsel %vm9671_vm14, %v4450_v20, %v4454_v55  ;;  %v4747_v35 = vrot.slane %v8111_v33, 5  ;;  %v8141_v6 = vrot.slane %v8112_v53, 9 }
 0x2e3   : > { %v4547_v11 = vor.u32 %v4546_v8, %v4543_v28  ;;  %v4469_v13 = vsel %vm9671_vm14, %v4464_v15, %v4468_v51  ;;  %v4751_v16 = vrot.slane %v8113_v19, 5  ;;  %v8124_v23 = vcombine.low %v4647_v63, %v4647_v63  ;;  %v4328_v28 = vld [vmem:[#allocation2 + $0x78] sm:$0x1f] }
 0x2e4   : > { %v4323_v60 = vld [vmem:[#allocation2 + $0x50] sm:$0x1f]  ;;  %v8125_v3 = vcombine.high %v4647_v63, %v4647_v63  ;;  %v8163_v12 = vcombine.low %v4455_v59, %v4469_v13  ;;  %v4748_v58 = vsel %vm9627_vm3, %v8140_v2, %v4747_v35  ;;  %v8086_v24 = vcombine.low %v4321_v54, %v4321_v54 }
 0x2e5   : > { %v4646_v41 = vld [vmem:[#allocation2 + $0x50] sm:$0x1e]  ;;  %v8090_v14 = vcombine.low %v4323_v60, %v4323_v60  ;;  %v8091_v18 = vcombine.high %v4323_v60, %v4323_v60  ;;  %v4548_v5 = vrot.slane %v4547_v11, 4  ;;  %v4752_v36 = vsel %vm9627_vm3, %v8141_v6, %v4751_v16 }
 0x2e6   : > { %4909 = vrot.lane.b32.xlu0 %v8172_v46, %s9161_s23  ;;  %v8122_v30 = vcombine.low %v4646_v41, %v4646_v41  ;;  %v8123_v21 = vcombine.high %v4646_v41, %v4646_v41  ;;  %4867 = vrot.lane.b32.xlu1 %v8163_v12, %s9162_s25  ;;  %v8171_v42 = vcombine.low %v4748_v58, %v4752_v36  ;;  %v8147_v52 = vrot.slane %v8124_v23, 9  ;;  %v5537_v58 = vpop.permute.xlu0 %5536  ;;  %v4644_v36 = vld [vmem:[#allocation2 + $0x30] sm:$0x1e] }
 0x2e7   : > { %v4527_v49 = vshrl.u32 %v8090_v14, 16  ;;  %v4530_v43 = vshll.u32 %v8090_v14, 16  ;;  %v4536_v25 = vshll.u32 %v8091_v18, 16  ;;  %v4553_v45 = vsel %vm9671_vm14, %v4548_v5, %v4552_v27 }
 0x2e8   : > { %v8146_v46 = vrot.slane %v8122_v30, 9  ;;  %v4771_v29 = vrot.slane %v8123_v21, 5  ;;  %v4775_v10 = vrot.slane %v8125_v3, 5  ;;  %v8087_v55 = vcombine.high %v4321_v54, %v4321_v54  ;;  %v8970_v3 = vld [vmem:[#allocation2 + $0x18] ss:$8 sps:$4 sm:$0xff]  }
 0x2e9   : > { %v4529_v38 = vrot.slane %v4527_v49, 4  ;;  %v4532_v57 = vrot.slane %v4530_v43, 5  ;;  %v4538_v48 = vrot.slane %v4536_v25, 5  ;;  %v8088_v32 = vcombine.low %v4322_v39, %v4322_v39  ;;  %v4645_v43 = vld [vmem:[#allocation2 + $0x38] sm:$0x1e] }
 0x2ea   : > { %v4772_v61 = vsel %vm9627_vm3, %v8146_v46, %v4771_v29  ;;  %4907 = vrot.lane.b32.xlu1 %v8171_v42, %s9161_s23  ;;  %v4776_v9 = vsel %vm9627_vm3, %v8147_v52, %v4775_v10  ;;  %v8089_v40 = vcombine.high %v4322_v39, %v4322_v39  ;;  %v8098_v1 = vcombine.low %v4327_v17, %v4327_v17  ;;  %v4650_v46 = vld [vmem:[#allocation2 + $0x70] sm:$0x1e] }
 0x2eb   : > { %v4533_v4 = vor.u32 %v4532_v57, %v4529_v38  ;;  %v8174_v51 = vcombine.low %v4772_v61, %v4776_v9  ;;  %v4499_v47 = vshrl.u32 %v8086_v24, 16  ;;  %v4502_v26 = vshll.u32 %v8086_v24, 16  ;;  %v4651_v24 = vld [vmem:[#allocation2 + $0x78] sm:$0x1e] }
 0x2ec   : > { %v4508_v7 = vshll.u32 %v8087_v55, 16  ;;  %v4513_v50 = vshrl.u32 %v8088_v32, 16  ;;  %v4516_v33 = vshll.u32 %v8088_v32, 16  ;;  %v4522_v20 = vshll.u32 %v8089_v40, 16 }
 0x2ed   : > { %v4534_v31 = vrot.slane %v4533_v4, 4  ;;  %v4501_v8 = vrot.slane %v4499_v47, 4  ;;  %v4504_v53 = vrot.slane %v4502_v26, 5  ;;  %v8099_v15 = vcombine.high %v4327_v17, %v4327_v17 }
 0x2ee   : > { %v4510_v63 = vrot.slane %v4508_v7, 5  ;;  %v4515_v19 = vrot.slane %v4513_v50, 4  ;;  %v4518_v2 = vrot.slane %v4516_v33, 5  ;;  %v4524_v59 = vrot.slane %v4522_v20, 5  ;;  %v4325_v33 = vld [vmem:[#allocation2 + $0x60] sm:$0x1f] }
 0x2ef   : > { %v4539_v27 = vsel %vm9671_vm14, %v4534_v31, %v4538_v48  ;;  %v4505_v35 = vor.u32 %v4504_v53, %v4501_v8  ;;  %v8100_v6 = vcombine.low %v4328_v28, %v4328_v28  ;;  %v8101_v13 = vcombine.high %v4328_v28, %v4328_v28 }
 0x2f0   : > { %v8166_v11 = vcombine.low %v4539_v27, %v4553_v45  ;;  %v4519_v60 = vor.u32 %v4518_v2, %v4515_v19  ;;  %v4583_v16 = vshrl.u32 %v8098_v1, 16  ;;  %v4586_v41 = vshll.u32 %v8098_v1, 16  ;;  %v5577_v27 = vpop.permute.xlu1 %5576 }
 0x2f1   : > { %v4592_v23 = vshll.u32 %v8099_v15, 16  ;;  %v4506_v12 = vrot.slane %v4505_v35, 4  ;;  %v4597_v14 = vshrl.u32 %v8100_v6, 16  ;;  %v4600_v18 = vshll.u32 %v8100_v6, 16  ;;  %v3521_v15 = vld [vmem:[#allocation2 + $0x48] sm:$0x1] }
 0x2f2   : > { %4873 = vrot.lane.b32.xlu0 %v8166_v11, %s9162_s25  ;;  %v4606_v5 = vshll.u32 %v8101_v13, 16  ;;  %v4520_v30 = vrot.slane %v4519_v60, 4  ;;  %v4585_v21 = vrot.slane %v4583_v16, 4  ;;  %v4588_v54 = vrot.slane %v4586_v41, 5  ;;  %v9065_v35 = vld [vmem:[%s10645_s3 + $0x8] sm:$0xff]  }
 0x2f3   : > { %v4594_v49 = vrot.slane %v4592_v23, 5  ;;  %v4511_v25 = vsel %vm9671_vm14, %v4506_v12, %v4510_v63  ;;  %v4599_v45 = vrot.slane %v4597_v14, 4  ;;  %v4602_v39 = vrot.slane %v4600_v18, 5  ;;  %v4326_v63 = vld [vmem:[#allocation2 + $0x68] sm:$0x1f] }
 0x2f4   : > { %v4608_v42 = vrot.slane %v4606_v5, 5  ;;  %v4525_v29 = vsel %vm9671_vm14, %v4520_v30, %v4524_v59  ;;  %v4589_v52 = vor.u32 %v4588_v54, %v4585_v21  ;;  %v5595_v17 = vsel %vm476_vm0, %v8970_v3, %v5537_v58  ;;  %v5959_v41 = vld [vmem:[#allocation2 + $0x10] sm:$0x1f]  ;;  %v5960_v30 = vld [vmem:[#allocation2 + $0x18] sm:$0x1f] }
 0x2f5   : > { %v8118_v38 = vcombine.low %v4644_v36, %v4644_v36  ;;  %v8165_v57 = vcombine.low %v4511_v25, %v4525_v29  ;;  %v4603_v48 = vor.u32 %v4602_v39, %v4599_v45  ;;  %v8119_v10 = vcombine.high %v4644_v36, %v4644_v36  ;;  %v9066_v25 = vld [vmem:[%s10645_s3 + $0x10] sm:$0xff]  }
 0x2f6   : > { %4913 = vrot.lane.b32.xlu0 %v8174_v51, %s9161_s23  ;;  %v8120_v61 = vcombine.low %v4645_v43, %v4645_v43  ;;  %v4590_v55 = vrot.slane %v4589_v52, 4  ;;  %v8121_v32 = vcombine.high %v4645_v43, %v4645_v43  ;;  %v8130_v9 = vcombine.low %v4650_v46, %v4650_v46 }
 0x2f7   : > { %v8144_v4 = vrot.slane %v8118_v38, 9  ;;  %4871 = vrot.lane.b32.xlu1 %v8165_v57, %s9162_s25  ;;  %v4604_v40 = vrot.slane %v4603_v48, 4  ;;  %v4763_v1 = vrot.slane %v8119_v10, 5  ;;  %v8131_v26 = vcombine.high %v4650_v46, %v4650_v46 }
 0x2f8   : > { %v8145_v47 = vrot.slane %v8120_v61, 9  ;;  %v4595_v7 = vsel %vm9671_vm14, %v4590_v55, %v4594_v49  ;;  %v4767_v31 = vrot.slane %v8121_v32, 5  ;;  %v8132_v51 = vcombine.low %v4651_v24, %v4651_v24 }
 0x2f9   : > { %v8133_v50 = vcombine.high %v4651_v24, %v4651_v24  ;;  %v4609_v20 = vsel %vm9671_vm14, %v4604_v40, %v4608_v42  ;;  %v4764_v28 = vsel %vm9627_vm3, %v8144_v4, %v4763_v1  ;;  %v8150_v8 = vrot.slane %v8130_v9, 9  ;;  %v4648_v4 = vld [vmem:[#allocation2 + $0x60] sm:$0x1e]  ;;  %v9068_v9 = vld [vmem:[%s10645_s3 + $0x18] sm:$0xff]  }
 0x2fa   : > { %v4787_v53 = vrot.slane %v8131_v26, 5  ;;  %v8168_v19 = vcombine.low %v4595_v7, %v4609_v20  ;;  %v4768_v2 = vsel %vm9627_vm3, %v8145_v47, %v4767_v31  ;;  %v8151_v59 = vrot.slane %v8132_v51, 9  ;;  %v4649_v7 = vld [vmem:[#allocation2 + $0x68] sm:$0x1e] }
 0x2fb   : > { %v4791_v11 = vrot.slane %v8133_v50, 5  ;;  %v8173_v6 = vcombine.low %v4764_v28, %v4768_v2  ;;  %v5617_v60 = vsel %vm4945_vm15, %v5595_v17, %v5577_v27  ;;  %v8094_v16 = vcombine.low %v4325_v33, %v4325_v33 }
 0x2fc   : > { %v4788_v13 = vsel %vm9627_vm3, %v8150_v8, %v4787_v53  ;;  %4877 = vrot.lane.b32.xlu0 %v8168_v19, %s9162_s25  ;;  %8679 = vmatmul.mubr.msk.bf16.vlgmr.msra.gmra.mrb[0].mxu1 %vm5679_vm1, %v5617_v60  ;;  %v8095_v3 = vcombine.high %v4325_v33, %v4325_v33  ;;  %v8096_v12 = vcombine.low %v4326_v63, %v4326_v63  ;;  %v3522_v14 = vsel %vm9315_vm4, 0, %v3521_v15 }
 0x2fd   : > { %v4792_v23 = vsel %vm9627_vm3, %v8151_v59, %v4791_v11  ;;  %4911 = vrot.lane.b32.xlu1 %v8173_v6, %s9161_s23  ;;  %v8097_v5 = vcombine.high %v4326_v63, %v4326_v63  ;;  %v4555_v58 = vshrl.u32 %v8094_v16, 16  ;;  %v4558_v36 = vshll.u32 %v8094_v16, 16  ;;  %3523 = vst [vmem:[#allocation2 + $0x48] sm:$0x1] %v3522_v14  ;;  %8695 = vmatpush3.bf16.msra.mxu1 %v10137_v44  ;;  %v6279_v63 = vld [vmem:[#allocation2 + $0x10] sm:$0x1e] }
 0x2fe   : > { %v8176_v18 = vcombine.low %v4788_v13, %v4792_v23  ;;  %v4564_v21 = vshll.u32 %v8095_v3, 16  ;;  %v4569_v54 = vshrl.u32 %v8096_v12, 16  ;;  %v4572_v49 = vshll.u32 %v8096_v12, 16  ;;  %8696 = vmatprep.subr.bf16.mxu1 %v9065_v35  ;;  %v6280_v59 = vld [vmem:[#allocation2 + $0x18] sm:$0x1e]  ;;  %v9071_v11 = vld [vmem:[%s10645_s3 + $0x20] sm:$0xff]  }
 0x2ff   : > { %v8322_v43 = vcombine.low %v5959_v41, %v5959_v41  ;;  %v4557_v45 = vrot.slane %v4555_v58, 4  ;;  %v4560_v39 = vrot.slane %v4558_v36, 5  ;;  %v4578_v42 = vshll.u32 %v8097_v5, 16  ;;  %v4329_v58 = vld [vmem:[#allocation2 + $0x80] sm:$0x1f] }
 0x300   : > { %v8323_v46 = vcombine.high %v5959_v41, %v5959_v41  ;;  %4917 = vrot.lane.b32.xlu0 %v8176_v18, %s9161_s23  ;;  %v4566_v29 = vrot.slane %v4564_v21, 5  ;;  %v4571_v52 = vrot.slane %v4569_v54, 4  ;;  %v4574_v17 = vrot.slane %v4572_v49, 5  ;;  %v4330_v49 = vld [vmem:[#allocation2 + $0x88] sm:$0x1f] }
 0x301   : > { %v8324_v38 = vcombine.low %v5960_v30, %v5960_v30  ;;  %v4561_v44 = vor.u32 %v4560_v39, %v4557_v45  ;;  %v4580_v57 = vrot.slane %v4578_v42, 5  ;;  %v8325_v48 = vcombine.high %v5960_v30, %v5960_v30  ;;  %8697 = vmatpush3.bf16.msra.mxu1 %v9065_v35  ;;  %v5963_v42 = vld [vmem:[#allocation2 + $0x30] sm:$0x1f] }
 0x302   : > { %v6056_v10 = vshrl.u32 %v8322_v43, 16  ;;  %v4575_v61 = vor.u32 %v4574_v17, %v4571_v52  ;;  %v6059_v24 = vshll.u32 %v8322_v43, 16  ;;  %v6065_v55 = vshll.u32 %v8323_v46, 16  ;;  %8698 = vmatprep.subr.bf16.mxu1 %v9066_v25  ;;  %v9073_v46 = vld [vmem:[%s10645_s3 + $0x28] sm:$0xff]  }
 0x303   : > { %v6070_v32 = vshrl.u32 %v8324_v38, 16  ;;  %v4562_v40 = vrot.slane %v4561_v44, 4  ;;  %v6073_v47 = vshll.u32 %v8324_v38, 16  ;;  %v6079_v26 = vshll.u32 %v8325_v48, 16 }
 0x304   : > { %v6058_v1 = vrot.slane %v6056_v10, 4  ;;  %v4576_v31 = vrot.slane %v4575_v61, 4  ;;  %v6061_v51 = vrot.slane %v6059_v24, 5  ;;  %v6067_v50 = vrot.slane %v6065_v55, 5 }
 0x305   : > { %v6072_v33 = vrot.slane %v6070_v32, 4  ;;  %v4567_v20 = vsel %vm9671_vm14, %v4562_v40, %v4566_v29  ;;  %v6075_v28 = vrot.slane %v6073_v47, 5  ;;  %v6081_v8 = vrot.slane %v6079_v26, 5  ;;  %8699 = vmatpush3.bf16.msra.mxu1 %v9066_v25  ;;  %v5964_v32 = vld [vmem:[#allocation2 + $0x38] sm:$0x1f] }
 0x306   : > { %v8126_v53 = vcombine.low %v4648_v4, %v4648_v4  ;;  %v4581_v15 = vsel %vm9671_vm14, %v4576_v31, %v4580_v57  ;;  %v6062_v27 = vor.u32 %v6061_v51, %v6058_v1  ;;  %v8127_v19 = vcombine.high %v4648_v4, %v4648_v4  ;;  %8700 = vmatprep.subr.bf16.mxu1 %v9068_v9 }
 0x307   : > { %v8128_v2 = vcombine.low %v4649_v7, %v4649_v7  ;;  %v8167_v35 = vcombine.low %v4567_v20, %v4581_v15  ;;  %v6076_v6 = vor.u32 %v6075_v28, %v6072_v33  ;;  %v8129_v13 = vcombine.high %v4649_v7, %v4649_v7 }
 0x308   : > { %v8148_v60 = vrot.slane %v8126_v53, 9  ;;  %v6063_v16 = vrot.slane %v6062_v27, 4  ;;  %v4779_v41 = vrot.slane %v8127_v19, 5  ;;  %v8354_v3 = vcombine.low %v6279_v63, %v6279_v63 }
 0x309   : > { %v8149_v23 = vrot.slane %v8128_v2, 9  ;;  %4875 = vrot.lane.b32.xlu1 %v8167_v35, %s9162_s25  ;;  %v6077_v12 = vrot.slane %v6076_v6, 4  ;;  %v4783_v14 = vrot.slane %v8129_v13, 5  ;;  %v8355_v18 = vcombine.high %v6279_v63, %v6279_v63  ;;  %8701 = vmatpush3.bf16.msra.mxu1 %v9068_v9  ;;  %v10222_v9 = vld [vmem:[%s10645_s3 + $0x60] sm:$0xff]   ;;  %v9003_v35 = vld [vmem:[#allocation2 + $0x28] ss:$8 sps:$4 sm:$0xff]   ;;  %v5539_v6 = vpop.permute.xlu0 %5538 }
 0x30a   : > { %v8356_v5 = vcombine.low %v6280_v59, %v6280_v59  ;;  %v6068_v36 = vsel %vm9671_vm14, %v6063_v16, %v6067_v50  ;;  %v4780_v30 = vsel %vm9627_vm3, %v8148_v60, %v4779_v41  ;;  %v8357_v21 = vcombine.high %v6280_v59, %v6280_v59  ;;  %8702 = vmatprep.subr.bf16.mxu1 %v9071_v11 }
 0x30b   : > { %v8386_v54 = vrot.slane %v8354_v3, 9  ;;  %v6082_v43 = vsel %vm9671_vm14, %v6077_v12, %v6081_v8  ;;  %v4784_v25 = vsel %vm9627_vm3, %v8149_v23, %v4783_v14  ;;  %v6377_v45 = vrot.slane %v8355_v18, 5  ;;  %v4652_v23 = vld [vmem:[#allocation2 + $0x80] sm:$0x1e] }
 0x30c   : > { %v8387_v39 = vrot.slane %v8356_v5, 9  ;;  %v8410_v29 = vcombine.low %v6068_v36, %v6082_v43  ;;  %v8175_v52 = vcombine.low %v4780_v30, %v4784_v25  ;;  %v6381_v17 = vrot.slane %v8357_v21, 5  ;;  %v4653_v5 = vld [vmem:[#allocation2 + $0x88] sm:$0x1e] }
 0x30d   : > { %v8102_v38 = vcombine.low %v4329_v58, %v4329_v58  ;;  %v6378_v44 = vsel %vm9627_vm3, %v8386_v54, %v6377_v45  ;;  %v8103_v57 = vcombine.high %v4329_v58, %v4329_v58  ;;  %v8104_v48 = vcombine.low %v4330_v49, %v4330_v49  ;;  %8703 = vmatpush3.bf16.msra.mxu1 %v9071_v11  ;;  %v6283_v54 = vld [vmem:[#allocation2 + $0x30] sm:$0x1e] }
 0x30e   : > { %v8105_v10 = vcombine.high %v4330_v49, %v4330_v49  ;;  %6503 = vrot.lane.b32.xlu0 %v8410_v29, %s9162_s25  ;;  %4915 = vrot.lane.b32.xlu1 %v8175_v52, %s9161_s23  ;;  %v6382_v61 = vsel %vm9627_vm3, %v8387_v39, %v6381_v17  ;;  %v8330_v4 = vcombine.low %v5963_v42, %v5963_v42  ;;  %v6284_v52 = vld [vmem:[#allocation2 + $0x38] sm:$0x1e] }
 0x30f   : > { %v4611_v24 = vshrl.u32 %v8102_v38, 16  ;;  %v4614_v55 = vshll.u32 %v8102_v38, 16  ;;  %v8418_v40 = vcombine.low %v6378_v44, %v6382_v61  ;;  %v4620_v1 = vshll.u32 %v8103_v57, 16  ;;  %8704 = vmatprep.subr.bf16.mxu1 %v9073_v46 }
 0x310   : > { %v4625_v47 = vshrl.u32 %v8104_v48, 16  ;;  %v4628_v26 = vshll.u32 %v8104_v48, 16  ;;  %v4634_v51 = vshll.u32 %v8105_v10, 16  ;;  %v8331_v50 = vcombine.high %v5963_v42, %v5963_v42 }
 0x311   : > { %v4613_v7 = vrot.slane %v4611_v24, 4  ;;  %v4616_v31 = vrot.slane %v4614_v55, 5  ;;  %v4622_v33 = vrot.slane %v4620_v1, 5  ;;  %v8332_v8 = vcombine.low %v5964_v32, %v5964_v32  ;;  %8705 = vmatpush3.bf16.msra.mxu1 %v9073_v46  ;;  %v5579_v1 = vpop.permute.xlu0 %5578 }
 0x312   : > { %v4627_v20 = vrot.slane %v4625_v47, 4  ;;  %v4630_v28 = vrot.slane %v4628_v26, 5  ;;  %6543 = vrot.lane.b32.xlu0 %v8418_v40, %s9161_s23  ;;  %v4636_v63 = vrot.slane %v4634_v51, 5  ;;  %v8333_v15 = vcombine.high %v5964_v32, %v5964_v32  ;;  %8722 = vmatprep.subr.bf16.mxu1 %v10222_v9  ;;  %v5961_v47 = vld [vmem:[#allocation2 + $0x20] sm:$0x1f] }
 0x313   : > { %v4617_v53 = vor.u32 %v4616_v31, %v4613_v7  ;;  %v6112_v27 = vshrl.u32 %v8330_v4, 16  ;;  %v6115_v2 = vshll.u32 %v8330_v4, 16  ;;  %v6121_v59 = vshll.u32 %v8331_v50, 16  ;;  %v5962_v50 = vld [vmem:[#allocation2 + $0x28] sm:$0x1f] }
 0x314   : > { %v4631_v19 = vor.u32 %v4630_v28, %v4627_v20  ;;  %v6126_v11 = vshrl.u32 %v8332_v8, 16  ;;  %v6129_v16 = vshll.u32 %v8332_v8, 16  ;;  %v6135_v41 = vshll.u32 %v8333_v15, 16 }
 0x315   : > { %v4618_v13 = vrot.slane %v4617_v53, 4  ;;  %v6114_v60 = vrot.slane %v6112_v27, 4  ;;  %v6117_v12 = vrot.slane %v6115_v2, 5  ;;  %v6123_v14 = vrot.slane %v6121_v59, 5  ;;  %v5967_v2 = vld [vmem:[#allocation2 + $0x60] sm:$0x1f] }
 0x316   : > { %v4632_v3 = vrot.slane %v4631_v19, 4  ;;  %v6128_v18 = vrot.slane %v6126_v11, 4  ;;  %v6131_v36 = vrot.slane %v6129_v16, 5  ;;  %v6137_v30 = vrot.slane %v6135_v41, 5 }
 0x317   : > { %v4623_v58 = vsel %vm9671_vm14, %v4618_v13, %v4622_v33  ;;  %v5598_v21 = vsel %vm476_vm0, %v9003_v35, %v5539_v6  ;;  %v6118_v43 = vor.u32 %v6117_v12, %v6114_v60  ;;  %v8134_v25 = vcombine.low %v4652_v23, %v4652_v23  ;;  %v3584_v33 = vld [vmem:[#allocation2 + $0x48] sm:$0x10] }
 0x318   : > { %v4637_v49 = vsel %vm9671_vm14, %v4632_v3, %v4636_v63  ;;  %v8135_v45 = vcombine.high %v4652_v23, %v4652_v23  ;;  %v6132_v42 = vor.u32 %v6131_v36, %v6128_v18  ;;  %v8136_v46 = vcombine.low %v4653_v5, %v4653_v5  ;;  %v5968_v23 = vld [vmem:[#allocation2 + $0x68] sm:$0x1f] }
 0x319   : > { %v8169_v39 = vcombine.low %v4623_v58, %v4637_v49  ;;  %v8137_v29 = vcombine.high %v4653_v5, %v4653_v5  ;;  %v6119_v17 = vrot.slane %v6118_v43, 4  ;;  %v8152_v38 = vrot.slane %v8134_v25, 9 }
 0x31a   : > { %v4795_v44 = vrot.slane %v8135_v45, 5  ;;  %v8362_v57 = vcombine.low %v6283_v54, %v6283_v54  ;;  %v6133_v48 = vrot.slane %v6132_v42, 4  ;;  %v8153_v10 = vrot.slane %v8136_v46, 9 }
 0x31b   : > { %4879 = vrot.lane.b32.xlu1 %v8169_v39, %s9162_s25  ;;  %v4799_v61 = vrot.slane %v8137_v29, 5  ;;  %v8363_v24 = vcombine.high %v6283_v54, %v6283_v54  ;;  %v6124_v55 = vsel %vm9671_vm14, %v6119_v17, %v6123_v14  ;;  %v8364_v4 = vcombine.low %v6284_v52, %v6284_v52 }
 0x31c   : > { %v4796_v32 = vsel %vm9627_vm3, %v8152_v38, %v4795_v44  ;;  %v8365_v40 = vcombine.high %v6284_v52, %v6284_v52  ;;  %v6138_v26 = vsel %vm9671_vm14, %v6133_v48, %v6137_v30  ;;  %v8390_v31 = vrot.slane %v8362_v57, 9  ;;  %v6281_v38 = vld [vmem:[#allocation2 + $0x20] sm:$0x1e] }
 0x31d   : > { %v4800_v7 = vsel %vm9627_vm3, %v8153_v10, %v4799_v61  ;;  %v6393_v51 = vrot.slane %v8363_v24, 5  ;;  %v8412_v20 = vcombine.low %v6124_v55, %v6138_v26  ;;  %v8391_v8 = vrot.slane %v8364_v4, 9  ;;  %v6282_v61 = vld [vmem:[#allocation2 + $0x28] sm:$0x1e] }
 0x31e   : > { %v8177_v28 = vcombine.low %v4796_v32, %v4800_v7  ;;  %v6397_v53 = vrot.slane %v8365_v40, 5  ;;  %v5619_v15 = vsel %vm4945_vm15, %v5598_v21, %v5579_v1  ;;  %v8326_v27 = vcombine.low %v5961_v47, %v5961_v47  ;;  %v6287_v7 = vld [vmem:[#allocation2 + $0x60] sm:$0x1e] }
 0x31f   : > { %v6394_v63 = vsel %vm9627_vm3, %v8390_v31, %v6393_v51  ;;  %v8327_v19 = vcombine.high %v5961_v47, %v5961_v47  ;;  %6507 = vrot.lane.b32.xlu0 %v8412_v20, %s9162_s25  ;;  %v8328_v11 = vcombine.low %v5962_v50, %v5962_v50  ;;  %v8329_v35 = vcombine.high %v5962_v50, %v5962_v50  ;;  %v6288_v20 = vld [vmem:[#allocation2 + $0x68] sm:$0x1e] }
 0x320   : > { %4919 = vrot.lane.b32.xlu1 %v8177_v28, %s9161_s23  ;;  %v6398_v59 = vsel %vm9627_vm3, %v8391_v8, %v6397_v53  ;;  %v3585_v6 = vsel %vm9322_vm6, 0, %v3584_v33  ;;  %v6084_v60 = vshrl.u32 %v8326_v27, 16  ;;  %v6087_v16 = vshll.u32 %v8326_v27, 16  ;;  %8682 = vmatprep.mubr.msk.bf16.mxu1 %vm5679_vm1, %v5619_v15 }
 0x321   : > { %v8420_v13 = vcombine.low %v6394_v63, %v6398_v59  ;;  %v6093_v41 = vshll.u32 %v8327_v19, 16  ;;  %3586 = vst [vmem:[#allocation2 + $0x48] sm:$0x10] %v3585_v6  ;;  %v6098_v3 = vshrl.u32 %v8328_v11, 16  ;;  %v6101_v12 = vshll.u32 %v8328_v11, 16 }
 0x322   : > { %v6107_v14 = vshll.u32 %v8329_v35, 16  ;;  %v8338_v18 = vcombine.low %v5967_v2, %v5967_v2  ;;  %v6086_v5 = vrot.slane %v6084_v60, 4  ;;  %v6089_v58 = vrot.slane %v6087_v16, 5 }
 0x323   : > { %v6095_v36 = vrot.slane %v6093_v41, 5  ;;  %v8339_v30 = vcombine.high %v5967_v2, %v5967_v2  ;;  %6547 = vrot.lane.b32.xlu0 %v8420_v13, %s9161_s23  ;;  %v6100_v21 = vrot.slane %v6098_v3, 4  ;;  %v6103_v54 = vrot.slane %v6101_v12, 5  ;;  %v5965_v13 = vld [vmem:[#allocation2 + $0x40] sm:$0x1f] }
 0x324   : > { %v6109_v49 = vrot.slane %v6107_v14, 5  ;;  %v8340_v43 = vcombine.low %v5968_v23, %v5968_v23  ;;  %v6090_v25 = vor.u32 %v6089_v58, %v6086_v5  ;;  %v8341_v45 = vcombine.high %v5968_v23, %v5968_v23  ;;  %v5971_v12 = vld [vmem:[#allocation2 + $0x80] sm:$0x1f] }
 0x325   : > { %v6168_v39 = vshrl.u32 %v8338_v18, 16  ;;  %v6171_v42 = vshll.u32 %v8338_v18, 16  ;;  %v6104_v46 = vor.u32 %v6103_v54, %v6100_v21  ;;  %v6177_v29 = vshll.u32 %v8339_v30, 16 }
 0x326   : > { %v6182_v52 = vshrl.u32 %v8340_v43, 16  ;;  %v6185_v17 = vshll.u32 %v8340_v43, 16  ;;  %v6091_v44 = vrot.slane %v6090_v25, 4  ;;  %v6191_v10 = vshll.u32 %v8341_v45, 16 }
 0x327   : > { %v6170_v57 = vrot.slane %v6168_v39, 4  ;;  %v6173_v48 = vrot.slane %v6171_v42, 5  ;;  %v6105_v24 = vrot.slane %v6104_v46, 4  ;;  %v6179_v55 = vrot.slane %v6177_v29, 5 }
 0x328   : > { %v6184_v32 = vrot.slane %v6182_v52, 4  ;;  %v6187_v4 = vrot.slane %v6185_v17, 5  ;;  %v6096_v40 = vsel %vm9671_vm14, %v6091_v44, %v6095_v36  ;;  %v6193_v47 = vrot.slane %v6191_v10, 5  ;;  %v5966_v3 = vld [vmem:[#allocation2 + $0x48] sm:$0x1f] }
 0x329   : > { %v6174_v1 = vor.u32 %v6173_v48, %v6170_v57  ;;  %v8358_v26 = vcombine.low %v6281_v38, %v6281_v38  ;;  %v6110_v31 = vsel %vm9671_vm14, %v6105_v24, %v6109_v49  ;;  %v8359_v50 = vcombine.high %v6281_v38, %v6281_v38  ;;  %v5972_v52 = vld [vmem:[#allocation2 + $0x88] sm:$0x1f] }
 0x32a   : > { %v6188_v51 = vor.u32 %v6187_v4, %v6184_v32  ;;  %v8360_v33 = vcombine.low %v6282_v61, %v6282_v61  ;;  %v8411_v28 = vcombine.low %v6096_v40, %v6110_v31  ;;  %v8361_v53 = vcombine.high %v6282_v61, %v6282_v61  ;;  %v10271_v31 = vpop.permute.xlu0 %5542 }
 0x32b   : > { %v6175_v8 = vrot.slane %v6174_v1, 4  ;;  %v8388_v63 = vrot.slane %v8358_v26, 9  ;;  %v6385_v27 = vrot.slane %v8359_v50, 5  ;;  %v8370_v2 = vcombine.low %v6287_v7, %v6287_v7 }
 0x32c   : > { %v6189_v15 = vrot.slane %v6188_v51, 4  ;;  %v8389_v19 = vrot.slane %v8360_v33, 9  ;;  %6505 = vrot.lane.b32.xlu1 %v8411_v28, %s9162_s25  ;;  %v6389_v11 = vrot.slane %v8361_v53, 5  ;;  %v8371_v35 = vcombine.high %v6287_v7, %v6287_v7  ;;  %v9036_v28 = vld [vmem:[#allocation2 + $0x38] ss:$8 sps:$4 sm:$0xff]  }
 0x32d   : > { %v6180_v59 = vsel %vm9671_vm14, %v6175_v8, %v6179_v55  ;;  %v8372_v6 = vcombine.low %v6288_v20, %v6288_v20  ;;  %v6386_v16 = vsel %vm9627_vm3, %v8388_v63, %v6385_v27  ;;  %v8373_v41 = vcombine.high %v6288_v20, %v6288_v20  ;;  %v5541_v8 = vpop.permute.xlu1 %5540 }
 0x32e   : > { %v6194_v60 = vsel %vm9671_vm14, %v6189_v15, %v6193_v47  ;;  %v8394_v23 = vrot.slane %v8370_v2, 9  ;;  %v6390_v18 = vsel %vm9627_vm3, %v8389_v19, %v6389_v11  ;;  %v6409_v5 = vrot.slane %v8371_v35, 5  ;;  %v6285_v19 = vld [vmem:[#allocation2 + $0x40] sm:$0x1e] }
 0x32f   : > { %v8414_v14 = vcombine.low %v6180_v59, %v6194_v60  ;;  %v8395_v58 = vrot.slane %v8372_v6, 9  ;;  %v8419_v36 = vcombine.low %v6386_v16, %v6390_v18  ;;  %v6413_v30 = vrot.slane %v8373_v41, 5  ;;  %v6286_v6 = vld [vmem:[#allocation2 + $0x48] sm:$0x1e] }
 0x330   : > { %v8334_v21 = vcombine.low %v5965_v13, %v5965_v13  ;;  %v8335_v54 = vcombine.high %v5965_v13, %v5965_v13  ;;  %v6410_v49 = vsel %vm9627_vm3, %v8394_v23, %v6409_v5  ;;  %v8336_v43 = vcombine.low %v5966_v3, %v5966_v3  ;;  %v6291_v23 = vld [vmem:[#allocation2 + $0x80] sm:$0x1e] }
 0x331   : > { %6511 = vrot.lane.b32.xlu0 %v8414_v14, %s9162_s25  ;;  %v8337_v25 = vcombine.high %v5966_v3, %v5966_v3  ;;  %v8346_v45 = vcombine.low %v5971_v12, %v5971_v12  ;;  %6545 = vrot.lane.b32.xlu1 %v8419_v36, %s9161_s23  ;;  %v6414_v39 = vsel %vm9627_vm3, %v8395_v58, %v6413_v30 }
 0x332   : > { %v6140_v42 = vshrl.u32 %v8334_v21, 16  ;;  %v6143_v46 = vshll.u32 %v8334_v21, 16  ;;  %v6149_v29 = vshll.u32 %v8335_v54, 16  ;;  %v8422_v17 = vcombine.low %v6410_v49, %v6414_v39  ;;  %v6292_v21 = vld [vmem:[#allocation2 + $0x88] sm:$0x1e]  ;;  %v10278_v54 = vpop.permute.xlu0 %5582 }
 0x333   : > { %v6154_v38 = vshrl.u32 %v8336_v43, 16  ;;  %v6157_v44 = vshll.u32 %v8336_v43, 16  ;;  %v6163_v57 = vshll.u32 %v8337_v25, 16  ;;  %v8347_v24 = vcombine.high %v5971_v12, %v5971_v12 }
 0x334   : > { %v6142_v48 = vrot.slane %v6140_v42, 4  ;;  %v6145_v10 = vrot.slane %v6143_v46, 5  ;;  %v6151_v61 = vrot.slane %v6149_v29, 5  ;;  %v8348_v40 = vcombine.low %v5972_v52, %v5972_v52 }
 0x335   : > { %6551 = vrot.lane.b32.xlu0 %v8422_v17, %s9161_s23  ;;  %v6156_v55 = vrot.slane %v6154_v38, 4  ;;  %v6159_v32 = vrot.slane %v6157_v44, 5  ;;  %v6165_v4 = vrot.slane %v6163_v57, 5  ;;  %v8349_v47 = vcombine.high %v5972_v52, %v5972_v52  ;;  %v5581_v52 = vpop.permute.xlu1 %5580 }
 0x336   : > { %v6146_v1 = vor.u32 %v6145_v10, %v6142_v48  ;;  %v6224_v26 = vshrl.u32 %v8346_v45, 16  ;;  %v6227_v7 = vshll.u32 %v8346_v45, 16  ;;  %v6233_v50 = vshll.u32 %v8347_v24, 16  ;;  %v5969_v48 = vld [vmem:[#allocation2 + $0x70] sm:$0x1f] }
 0x337   : > { %v6160_v51 = vor.u32 %v6159_v32, %v6156_v55  ;;  %v6238_v33 = vshrl.u32 %v8348_v40, 16  ;;  %v6241_v20 = vshll.u32 %v8348_v40, 16  ;;  %v6247_v27 = vshll.u32 %v8349_v47, 16  ;;  %v5970_v10 = vld [vmem:[#allocation2 + $0x78] sm:$0x1f]  ;;  %v10289_v40 = vpop.permute.xlu0 %5546 }
 0x338   : > { %v6147_v53 = vrot.slane %v6146_v1, 4  ;;  %v6226_v63 = vrot.slane %v6224_v26, 4  ;;  %v6229_v15 = vrot.slane %v6227_v7, 5  ;;  %v6235_v59 = vrot.slane %v6233_v50, 5 }
 0x339   : > { %v6161_v2 = vrot.slane %v6160_v51, 4  ;;  %v6240_v11 = vrot.slane %v6238_v33, 4  ;;  %v6243_v35 = vrot.slane %v6241_v20, 5  ;;  %v6249_v16 = vrot.slane %v6247_v27, 5  ;;  %v5545_v20 = vpop.permute.xlu1 %5544 }
 0x33a   : > { %v6152_v13 = vsel %vm9671_vm14, %v6147_v53, %v6151_v61  ;;  %v6230_v60 = vor.u32 %v6229_v15, %v6226_v63  ;;  %v5601_v41 = vsel %vm476_vm0, %v9036_v28, %v5541_v8  ;;  %v8366_v14 = vcombine.low %v6285_v19, %v6285_v19  ;;  %v6290_v63 = vld [vmem:[#allocation2 + $0x78] sm:$0x1e] }
 0x33b   : > { %v6166_v3 = vsel %vm9671_vm14, %v6161_v2, %v6165_v4  ;;  %v6244_v12 = vor.u32 %v6243_v35, %v6240_v11  ;;  %v8367_v18 = vcombine.high %v6285_v19, %v6285_v19  ;;  %v8368_v36 = vcombine.low %v6286_v6, %v6286_v6  ;;  %v3551_v4 = vld [vmem:[#allocation2 + $0x98] sm:$0x1] }
 0x33c   : > { %v8413_v5 = vcombine.low %v6152_v13, %v6166_v3  ;;  %v6231_v58 = vrot.slane %v6230_v60, 4  ;;  %v8369_v30 = vcombine.high %v6286_v6, %v6286_v6  ;;  %v8392_v43 = vrot.slane %v8366_v14, 9  ;;  %v3614_v13 = vld [vmem:[#allocation2 + $0x98] sm:$0x10]  ;;  %v5973_v3 = vld [vmem:[#allocation2 + $0x90] sm:$0x1f] }
 0x33d   : > { %v6245_v49 = vrot.slane %v6244_v12, 4  ;;  %v6401_v25 = vrot.slane %v8367_v18, 5  ;;  %v8378_v45 = vcombine.low %v6291_v23, %v6291_v23  ;;  %v8393_v42 = vrot.slane %v8368_v36, 9  ;;  %v5587_v12 = vpop.permute.xlu0 %5586 }
 0x33e   : > { %6509 = vrot.lane.b32.xlu1 %v8413_v5, %s9162_s25  ;;  %v6236_v39 = vsel %vm9671_vm14, %v6231_v58, %v6235_v59  ;;  %v6405_v46 = vrot.slane %v8369_v30, 5  ;;  %v8379_v29 = vcombine.high %v6291_v23, %v6291_v23  ;;  %v8380_v44 = vcombine.low %v6292_v21, %v6292_v21  ;;  %v6289_v59 = vld [vmem:[#allocation2 + $0x70] sm:$0x1e]  ;;  %v5585_v30 = vpop.permute.xlu1 %5584 }
 0x33f   : > { %v6250_v17 = vsel %vm9671_vm14, %v6245_v49, %v6249_v16  ;;  %v6402_v38 = vsel %vm9627_vm3, %v8392_v43, %v6401_v25  ;;  %v8381_v57 = vcombine.high %v6292_v21, %v6292_v21  ;;  %v8398_v55 = vrot.slane %v8378_v45, 9 }
 0x340   : > { %v8416_v61 = vcombine.low %v6236_v39, %v6250_v17  ;;  %v6406_v24 = vsel %vm9627_vm3, %v8393_v42, %v6405_v46  ;;  %v6425_v32 = vrot.slane %v8379_v29, 5  ;;  %v8399_v47 = vrot.slane %v8380_v44, 9  ;;  %v9057_v46 = vld [vmem:[#allocation2 + $0x58] ss:$8 sps:$4 sm:$0xff]  }
 0x341   : > { %v8421_v1 = vcombine.low %v6402_v38, %v6406_v24  ;;  %v6429_v26 = vrot.slane %v8381_v57, 5  ;;  %v5621_v7 = vsel %vm4945_vm15, %v5601_v41, %v5581_v52  ;;  %v8342_v51 = vcombine.low %v5969_v48, %v5969_v48 }
 0x342   : > { %6515 = vrot.lane.b32.xlu0 %v8416_v61, %s9162_s25  ;;  %v8343_v50 = vcombine.high %v5969_v48, %v5969_v48  ;;  %v8344_v33 = vcombine.low %v5970_v10, %v5970_v10  ;;  %v6426_v28 = vsel %vm9627_vm3, %v8398_v55, %v6425_v32  ;;  %v8345_v53 = vcombine.high %v5970_v10, %v5970_v10 }
 0x343   : > { %6549 = vrot.lane.b32.xlu1 %v8421_v1, %s9161_s23  ;;  %v6430_v8 = vsel %vm9627_vm3, %v8399_v47, %v6429_v26  ;;  %8683 = vmatmul.mubr.msk.bf16.gmra.mrb[4].mxu1 %vm5679_vm1, %v5621_v7  ;;  %v3552_v15 = vsel %vm9315_vm4, 0, %v3551_v4  ;;  %v6196_v19 = vshrl.u32 %v8342_v51, 16  ;;  %v6199_v2 = vshll.u32 %v8342_v51, 16  ;;  %v5549_v61 = vpop.permute.xlu1 %5548  ;;  %v9062_v4 = vld [vmem:[#allocation2 + $0x68] ss:$8 sps:$4 sm:$0xff]  }
 0x344   : > { %v8424_v27 = vcombine.low %v6426_v28, %v6430_v8  ;;  %3553 = vst [vmem:[#allocation2 + $0x98] sm:$0x1] %v3552_v15  ;;  %v6205_v11 = vshll.u32 %v8343_v50, 16  ;;  %v6210_v35 = vshrl.u32 %v8344_v33, 16  ;;  %v6213_v6 = vshll.u32 %v8344_v33, 16 }
 0x345   : > { %v6198_v60 = vrot.slane %v6196_v19, 4  ;;  %v6201_v16 = vrot.slane %v6199_v2, 5  ;;  %v6219_v41 = vshll.u32 %v8345_v53, 16  ;;  %v8376_v23 = vcombine.low %v6290_v63, %v6290_v63  ;;  %v9064_v1 = vld [vmem:[#allocation2 + $0x78] ss:$8 sps:$4 sm:$0xff]  }
 0x346   : > { %6555 = vrot.lane.b32.xlu0 %v8424_v27, %s9161_s23  ;;  %v6212_v14 = vrot.slane %v6210_v35, 4  ;;  %v6215_v34 = vrot.slane %v6213_v6, 5  ;;  %v8377_v18 = vcombine.high %v6290_v63, %v6290_v63  ;;  %v8374_v58 = vcombine.low %v6289_v59, %v6289_v59  ;;  %v9069_v19 = vld [vmem:[#allocation2 + $0x88] ss:$8 sps:$4 sm:$0xff]  }
 0x347   : > { %v6202_v5 = vor.u32 %v6201_v16, %v6198_v60  ;;  %v8375_v36 = vcombine.high %v6289_v59, %v6289_v59  ;;  %v3615_v49 = vsel %vm9322_vm6, 0, %v3614_v13  ;;  %v8350_v43 = vcombine.low %v5973_v3, %v5973_v3 }
 0x348   : > { %v6216_v21 = vor.u32 %v6215_v34, %v6212_v14  ;;  %v6207_v45 = vrot.slane %v6205_v11, 5  ;;  %v6221_v39 = vrot.slane %v6219_v41, 5  ;;  %v8397_v42 = vrot.slane %v8376_v23, 9  ;;  %3616 = vst [vmem:[#allocation2 + $0x98] sm:$0x10] %v3615_v49 }
 0x349   : > { %v6203_v25 = vrot.slane %v6202_v5, 4  ;;  %v6421_v52 = vrot.slane %v8377_v18, 5  ;;  %v6252_v17 = vshrl.u32 %v8350_v43, 16  ;;  %v6255_v38 = vshll.u32 %v8350_v43, 16  ;;  %v9067_v5 = vld [vmem:[#allocation2] ss:$8 sps:$4 sm:$0xff]  }
 0x34a   : > { %v6217_v29 = vrot.slane %v6216_v21, 4  ;;  %v8396_v44 = vrot.slane %v8374_v58, 9  ;;  %v6417_v57 = vrot.slane %v8375_v36, 5  ;;  %v5604_v48 = vsel %vm476_vm0, %v9057_v46, %v10271_v31 }
 0x34b   : > { %v6208_v37 = vsel %vm9671_vm14, %v6203_v25, %v6207_v45  ;;  %v6254_v55 = vrot.slane %v6252_v17, 4  ;;  %v6257_v32 = vrot.slane %v6255_v38, 5  ;;  %v5623_v26 = vsel %vm4945_vm15, %v5604_v48, %v10278_v54  ;;  %v9072_v17 = vld [vmem:[#allocation2 + $0x10] ss:$8 sps:$4 sm:$0xff]  }
 0x34c   : > { %v4866_v10 = vpop.permute.xlu0 %4865  ;;  %v6222_v24 = vsel %vm9671_vm14, %v6217_v29, %v6221_v39  ;;  %v6422_v7 = vsel %vm9627_vm3, %v8397_v42, %v6421_v52  ;;  %v8351_v31 = vcombine.high %v5973_v3, %v5973_v3  ;;  %8686 = vmatprep.mubr.msk.bf16.mxu1 %vm5679_vm1, %v5623_v26  ;;  %v5607_v51 = vsel %vm476_vm0, %v9062_v4, %v5545_v20  ;;  %v6293_v20 = vld [vmem:[#allocation2 + $0x90] sm:$0x1e]  ;;  %v5589_v2 = vpop.permute.xlu1 %5588 }
 0x34d   : > { %v8415_v47 = vcombine.low %v6208_v37, %v6222_v24  ;;  %v5610_v50 = vsel %vm476_vm0, %v9064_v1, %v10289_v40  ;;  %v5625_v33 = vsel %vm4945_vm15, %v5607_v51, %v5585_v30  ;;  %v6418_v54 = vsel %vm9627_vm3, %v8396_v44, %v6417_v57  ;;  %v9070_v37 = vld [vmem:[#allocation2 + $0x20] ss:$8 sps:$4 sm:$0xff]   ;;  %v9074_v51 = vld [vmem:[#allocation2 + $0x50] ss:$8 sps:$4 sm:$0xff]  }
 0x34e   : > { %v5627_v28 = vsel %vm4945_vm15, %v5610_v50, %v5587_v12  ;;  %v6258_v53 = vor.u32 %v6257_v32, %v6254_v55  ;;  %8687 = vmatmul.mubr.msk.bf16.gmra.mrb[8].mxu1 %vm5679_vm1, %v5625_v33  ;;  %v8423_v63 = vcombine.low %v6418_v54, %v6422_v7  ;;  %v6261_v59 = vshll.u32 %v8351_v31, 16  ;;  %v9076_v31 = vld [vmem:[#allocation2 + $0x30] ss:$8 sps:$4 sm:$0xff]   ;;  %v9088_v54 = vld [vmem:[%s10645_s3 + $0x88] sm:$0xff]  }
 0x34f   : > { %6513 = vrot.lane.b32.xlu1 %v8415_v47, %s9162_s25  ;;  %v5974_v8 = vld [vmem:[#allocation2 + $0x98] sm:$0x1f]  ;;  %8690 = vmatprep.mubr.msk.bf16.mxu1 %vm5679_vm1, %v5627_v28  ;;  %v5613_v60 = vsel %vm476_vm0, %v9069_v19, %v5549_v61  ;;  %v8382_v41 = vcombine.low %v6293_v20, %v6293_v20  ;;  %v8383_v23 = vcombine.high %v6293_v20, %v6293_v20  ;;  %v9079_v20 = vld [vmem:[#allocation2 + $0x60] ss:$8 sps:$4 sm:$0xff]   ;;  %vm7666_vm4 = vcmask 1040384  }
 0x350   : > { %v8352_v15 = vcombine.low %v5974_v8, %v5974_v8  ;;  %v8353_v27 = vcombine.high %v5974_v8, %v5974_v8  ;;  %v4906_v40 = vpop.permute.xlu0 %4905  ;;  %v6294_v11 = vld [vmem:[#allocation2 + $0x98] sm:$0x1e]  ;;  %v6259_v16 = vrot.slane %v6258_v53, 4  ;;  %v5629_v3 = vsel %vm4945_vm15, %v5613_v60, %v5589_v2 }
 0x351   : > { %v8384_v34 = vcombine.low %v6294_v11, %v6294_v11  ;;  %v8385_v18 = vcombine.high %v6294_v11, %v6294_v11  ;;  %v6263_v58 = vrot.slane %v6261_v59, 5  ;;  %v4923_v21 = vsel %vm476_vm0, %v9067_v5, %v4866_v10  ;;  %v9082_v47 = vld [vmem:[%s10645_s3 + $0x78] sm:$0xff]  }
 0x352   : > { %v6266_v35 = vshrl.u32 %v8352_v15, 16  ;;  %v6269_v6 = vshll.u32 %v8352_v15, 16  ;;  %v6275_v13 = vshll.u32 %v8353_v27, 16  ;;  %v8400_v43 = vrot.slane %v8382_v41, 9  ;;  %v9080_v41 = vld [vmem:[#allocation2 + $0x10] ss:$8 sps:$4 sm:$0xff]  }
 0x353   : > { %6553 = vrot.lane.b32.xlu1 %v8423_v63, %s9161_s23  ;;  %v6433_v25 = vrot.slane %v8383_v23, 5  ;;  %v4947_v45 = vsel %vm4945_vm15, %v4923_v21, %v4906_v40  ;;  %v6264_v42 = vsel %vm9671_vm14, %v6259_v16, %v6263_v58  ;;  %v8401_v29 = vrot.slane %v8384_v34, 9  ;;  %v9077_v40 = vld [vmem:[#allocation2 + $0x70] ss:$8 sps:$4 sm:$0xff]   ;;  %v9083_v16 = vld [vmem:[#allocation2 + $0x80] ss:$8 sps:$4 sm:$0xff]  }
 0x354   : > { %v6268_v12 = vrot.slane %v6266_v35, 4  ;;  %v6271_v14 = vrot.slane %v6269_v6, 5  ;;  %v6277_v30 = vrot.slane %v6275_v13, 5  ;;  %v4870_v49 = vpop.permute.xlu0 %4869  ;;  %v6437_v52 = vrot.slane %v8385_v18, 5 }
 0x355   : > { %v6434_v10 = vsel %vm9627_vm3, %v8400_v43, %v6433_v25  ;;  %v4929_v32 = vsel %vm476_vm0, %v9070_v37, %v4870_v49 }
 0x356   : > { %v6272_v36 = vor.u32 %v6271_v14, %v6268_v12  ;;  %8691 = vmatmul.mubr.msk.bf16.gmra.mrb[12].mxu1 %vm5679_vm1, %v5629_v3  ;;  %v6438_v61 = vsel %vm9627_vm3, %v8401_v29, %v6437_v52  ;;  %v9089_v29 = vld [vmem:[#allocation2 + $0x40] ss:$8 sps:$4 sm:$0xff]  }
 0x357   : > { %8706 = vmatprep.mubr.msk.bf16.mxu1 %vm5679_vm1, %v4947_v45  ;;  %v8425_v4 = vcombine.low %v6434_v10, %v6438_v61  ;;  %v9087_v52 = vld [vmem:[#allocation2 + $0x60] ss:$8 sps:$4 sm:$0xff]  }
 0x358   : > { %v4868_v39 = vpop.permute.xlu1 %4867  ;;  %v6273_v46 = vrot.slane %v6272_v36, 4  ;;  %v4910_v24 = vpop.permute.xlu0 %4909  ;;  %v9086_v36 = vld [vmem:[#allocation2 + $0x20] ss:$8 sps:$4 sm:$0xff]  }
 0x359   : > { %v4926_v57 = vsel %vm476_vm0, %v9072_v17, %v4868_v39  ;;  %v4951_v1 = vsel %vm4945_vm15, %v4929_v32, %v4910_v24  ;;  %v9091_v24 = vld [vmem:[#allocation2 + $0x70] ss:$8 sps:$4 sm:$0xff]  }
 0x35a   : > { %v6278_v38 = vsel %vm9671_vm14, %v6273_v46, %v6277_v30  ;;  %v9084_v30 = vld [vmem:[#allocation2 + $0x30] ss:$8 sps:$4 sm:$0xff]  }
 0x35b   : > { %v8417_v44 = vcombine.low %v6264_v42, %v6278_v38 }
 0x35c   : > { %v4908_v48 = vpop.permute.xlu1 %4907 }
 0x35d   : > { %v4949_v55 = vsel %vm4945_vm15, %v4926_v57, %v4908_v48  ;;  %6517 = vrot.lane.b32.xlu1 %v8417_v44, %s9162_s25  ;;  %s10600_s25 = scalar_lea.hbm %s10647_s5, %s8518_s26 }
 0x35e   : > { %8707 = vmatmul.mubr.msk.bf16.vlgmr.msra.gmra.mrb[0].mxu1 %vm5679_vm1, %v4949_v55  ;;  %v9090_v55 = vld [vmem:[#allocation2 + $0x80] ss:$8 sps:$4 sm:$0xff]  }
 0x35f   : > { %8723 = vmatpush3.bf16.msra.mxu1 %v10222_v9  ;;  %8710 = vmatprep.mubr.msk.bf16.mxu1 %vm5679_vm1, %v4951_v1  ;;  %v9085_v9 = vld [vmem:[%s10645_s3 + $0x80] sm:$0xff]  }
 0x360   : > { %8724 = vmatprep.subr.bf16.mxu1 %v9078_v62 }
 0x361   : > { %6557 = vrot.lane.b32.xlu1 %v8425_v4, %s9161_s23 }
 0x363   : > { %8725 = vmatpush3.bf16.msra.mxu1 %v9078_v62 }
 0x364   : > { %8726 = vmatprep.subr.bf16.mxu1 %v9081_v22  ;;  %v4874_v26 = vpop.permute.xlu0 %4873 }
 0x365   : > { %v4935_v8 = vsel %vm476_vm0, %v9074_v51, %v4874_v26 }
 0x367   : > { %8727 = vmatpush3.bf16.msra.mxu1 %v9081_v22 }
 0x368   : > { %8728 = vmatprep.subr.bf16.mxu1 %v9082_v47  ;;  %v4914_v50 = vpop.permute.xlu0 %4913 }
 0x369   : > { %v4872_v7 = vpop.permute.xlu1 %4871  ;;  %v4955_v63 = vsel %vm4945_vm15, %v4935_v8, %v4914_v50  ;;  %v10406_v50 = vld [vmem:[%s10646_s4] ss:$0 sm:$0xff] }
 0x36a   : > { %v4932_v33 = vsel %vm476_vm0, %v9076_v31, %v4872_v7  ;;  %v9092_v7 = vld [vmem:[#allocation2 + $0x90] ss:$8 sps:$4 sm:$0xff]  }
 0x36b   : > { %8729 = vmatpush3.bf16.msra.mxu1 %v9082_v47 }
 0x36c   : > { %8730 = vmatprep.subr.bf16.mxu1 %v9085_v9 }
 0x36e   : > { %v4878_v15 = vpop.permute.xlu0 %4877 }
 0x36f   : > { %v4912_v28 = vpop.permute.xlu1 %4911  ;;  %8731 = vmatpush3.bf16.msra.mxu1 %v9085_v9  ;;  %v4941_v11 = vsel %vm476_vm0, %v9077_v40, %v4878_v15 }
 0x370   : > { %v4953_v53 = vsel %vm4945_vm15, %v4932_v33, %v4912_v28  ;;  %8732 = vmatprep.subr.bf16.mxu1 %v9088_v54 }
 0x371   : > { %8711 = vmatmul.mubr.msk.bf16.gmra.mrb[4].mxu1 %vm5679_vm1, %v4953_v53 }
 0x372   : > { %8714 = vmatprep.mubr.msk.bf16.mxu1 %vm5679_vm1, %v4955_v63  ;;  %v4918_v19 = vpop.permute.xlu0 %4917 }
 0x373   : > { %8733 = vmatpush3.bf16.msra.mxu1 %v9088_v54  ;;  %v4959_v6 = vsel %vm4945_vm15, %v4941_v11, %v4918_v19 }
 0x37b   : > { %v4876_v27 = vpop.permute.xlu1 %4875 }
 0x37c   : > { %v4938_v2 = vsel %vm476_vm0, %v9079_v20, %v4876_v27 }
 0x380   : > { %v4916_v59 = vpop.permute.xlu1 %4915  ;;  %v6504_v13 = vpop.permute.xlu0 %6503 }
 0x381   : > { %v4957_v35 = vsel %vm4945_vm15, %v4938_v2, %v4916_v59  ;;  %v6561_v14 = vsel %vm476_vm0, %v9080_v41, %v6504_v13 }
 0x382   : > { %8715 = vmatmul.mubr.msk.bf16.gmra.mrb[8].mxu1 %vm5679_vm1, %v4957_v35 }
 0x383   : > { %8718 = vmatprep.mubr.msk.bf16.mxu1 %vm5679_vm1, %v4959_v6 }
 0x384   : > { %v6544_v23 = vpop.permute.xlu0 %6543 }
 0x385   : > { %v6584_v18 = vsel %vm4945_vm15, %v6561_v14, %v6544_v23 }
 0x38d   : > { %v4880_v60 = vpop.permute.xlu1 %4879 }
 0x38e   : > { %v4944_v3 = vsel %vm476_vm0, %v9083_v16, %v4880_v60 }
 0x391   : > { %v6508_v5 = vpop.permute.xlu0 %6507 }
 0x392   : > { %v4920_v12 = vpop.permute.xlu1 %4919  ;;  %v6567_v25 = vsel %vm476_vm0, %v9084_v30, %v6508_v5  ;;  %v10418_v5 = vsub.s32 0, %v9343_v56 }
 0x393   : > { %v4961_v34 = vsel %vm4945_vm15, %v4944_v3, %v4920_v12 }
 0x394   : > { %8719 = vmatmul.mubr.msk.bf16.gmra.mrb[12].mxu1 %vm5679_vm1, %v4961_v34 }
 0x395   : > { %8734 = vmatprep.mubr.msk.bf16.mxu1 %vm5679_vm1, %v6584_v18  ;;  %v6548_v21 = vpop.permute.xlu0 %6547 }
 0x396   : > { %v6588_v39 = vsel %vm4945_vm15, %v6567_v25, %v6548_v21 }
 0x39e   : > { %v6506_v58 = vpop.permute.xlu1 %6505 }
 0x39f   : > { %v6564_v49 = vsel %vm476_vm0, %v9086_v36, %v6506_v58 }
 0x3a3   : > { %v6546_v43 = vpop.permute.xlu1 %6545  ;;  %v6512_v42 = vpop.permute.xlu0 %6511 }
 0x3a4   : > { %v6586_v45 = vsel %vm4945_vm15, %v6564_v49, %v6546_v43  ;;  %v6573_v57 = vsel %vm476_vm0, %v9087_v52, %v6512_v42 }
 0x3a5   : > { %8735 = vmatmul.mubr.msk.bf16.vlgmr.msra.gmra.mrb[0].mxu1 %vm5679_vm1, %v6586_v45 }
 0x3a6   : > { %8738 = vmatprep.mubr.msk.bf16.mxu1 %vm5679_vm1, %v6588_v39 }
 0x3a7   : > { %v6552_v17 = vpop.permute.xlu0 %6551 }
 0x3a8   : > { %v6592_v10 = vsel %vm4945_vm15, %v6573_v57, %v6552_v17 }
 0x3b0   : > { %v6510_v46 = vpop.permute.xlu1 %6509 }
 0x3b1   : > { %v6570_v38 = vsel %vm476_vm0, %v9089_v29, %v6510_v46 }
 0x3b4   : > { %v6516_v61 = vpop.permute.xlu0 %6515 }
 0x3b5   : > { %v6550_v44 = vpop.permute.xlu1 %6549  ;;  %v6579_v1 = vsel %vm476_vm0, %v9090_v55, %v6516_v61 }
 0x3b6   : > { %v6590_v48 = vsel %vm4945_vm15, %v6570_v38, %v6550_v44 }
 0x3b7   : > { %8739 = vmatmul.mubr.msk.bf16.gmra.mrb[4].mxu1 %vm5679_vm1, %v6590_v48 }
 0x3b8   : > { %8742 = vmatprep.mubr.msk.bf16.mxu1 %vm5679_vm1, %v6592_v10  ;;  %v6556_v62 = vpop.permute.xlu0 %6555 }
 0x3b9   : > { %v6596_v47 = vsel %vm4945_vm15, %v6579_v1, %v6556_v62 }
 0x3c1   : > { %v6514_v37 = vpop.permute.xlu1 %6513 }
 0x3c2   : > { %v6576_v32 = vsel %vm476_vm0, %v9091_v24, %v6514_v37 }
 0x3c5   : > { %v6554_v4 = vpop.permute.xlu1 %6553 }
 0x3c6   : > { %v6594_v22 = vsel %vm4945_vm15, %v6576_v32, %v6554_v4 }
 0x3c7   : > { %8743 = vmatmul.mubr.msk.bf16.gmra.mrb[8].mxu1 %vm5679_vm1, %v6594_v22 }
 0x3c8   : > { %8746 = vmatprep.mubr.msk.bf16.mxu1 %vm5679_vm1, %v6596_v47 }
 0x3cf   : > { %v6518_v26 = vpop.permute.xlu1 %6517 }
 0x3d0   : > { %v6582_v9 = vsel %vm476_vm0, %v9092_v7, %v6518_v26  ;;  %vm7536_vm0 = vcmask 1041409  }
 0x3d3   : > { %v6558_v31 = vpop.permute.xlu1 %6557 }
 0x3d4   : > { %v6598_v51 = vsel %vm4945_vm15, %v6582_v9, %v6558_v31 }
 0x3d5   : > { %8747 = vmatmul.mubr.msk.bf16.gmra.mrb[12].mxu1 %vm5679_vm1, %v6598_v51 }
 0x478   : > { %v8736_v33 = vpop.f32.mrb[0].mxu1 }
 0x479   : > { %v6786_v28 = vadd.f32 %v8736_v33, %v10406_v50  ;;  %v6698_v54 = vpop.f32.mrb[1].mxu1 }
 0x47a   : > { %v6784_v8 = vadd.f32 %v10406_v50, %v6698_v54  ;;  %v8737_v53 = vpop.f32.mrb[2].mxu1 }
 0x47b   : > { %v6802_v63 = vmax.f32 %v6786_v28, 0.0  ;;  %v6787_v15 = vadd.f32 %v8737_v53, %v10406_v50  ;;  %v6701_v27 = vpop.f32.mrb[3].mxu1 }
 0x47c   : > { %v6800_v20 = vmax.f32 %v6784_v8, 0.0  ;;  %v6785_v35 = vadd.f32 %v10406_v50, %v6701_v27 }
 0x47d   : > { %v6866_v40 = vcombine.high %v6802_v63, %v6802_v63  ;;  %v6873_v19 = vrot.slane %v6802_v63, %v9356_v0  ;;  %v6803_v2 = vmax.f32 %v6787_v15, 0.0 }
 0x47e   : > { %v6832_v59 = vcombine.high %v6800_v20, %v6800_v20  ;;  %v6839_v11 = vrot.slane %v6800_v20, %v9356_v0  ;;  %v6801_v58 = vmax.f32 %v6785_v35, 0.0 }
 0x47f   : > { %v6880_v6 = vrot.slane %v6866_v40, %v9356_v0  ;;  %v6881_v13 = vcombine.high %v6873_v19, %v6873_v19  ;;  %v8461_v60 = vrot.slane %v6873_v19, 9  ;;  %v6883_v16 = vcombine.high %v6803_v2, %v6803_v2 }
 0x480   : > { %v6846_v41 = vrot.slane %v6832_v59, %v9356_v0  ;;  %v6847_v23 = vcombine.high %v6839_v11, %v6839_v11  ;;  %v8453_v3 = vrot.slane %v6839_v11, 9  ;;  %v6890_v12 = vrot.slane %v6803_v2, %v9356_v0 }
 0x481   : > { %v6882_v14 = vcombine.high %v6880_v6, %v6880_v6  ;;  %v8462_v34 = vrot.slane %v6881_v13, 9  ;;  %v8463_v18 = vrot.slane %v6880_v6, 9  ;;  %v7368_v36 = vmax.f32 %v6873_v19, %v8461_v60 }
 0x482   : > { %v6848_v30 = vcombine.high %v6846_v41, %v6846_v41  ;;  %v8454_v21 = vrot.slane %v6847_v23, 9  ;;  %v6897_v49 = vrot.slane %v6883_v16, %v9356_v0  ;;  %v8455_v25 = vrot.slane %v6846_v41, 9 }
 0x483   : > { %v8464_v43 = vrot.slane %v6882_v14, 9  ;;  %v7360_v45 = vmax.f32 %v6839_v11, %v8453_v3  ;;  %v6898_v39 = vcombine.high %v6890_v12, %v6890_v12  ;;  %v10421_v42 = vmax.f32 %v6881_v13, %v8462_v34 }
 0x484   : > { %v6899_v46 = vcombine.high %v6897_v49, %v6897_v49  ;;  %v8465_v29 = vrot.slane %v6890_v12, 9  ;;  %v8467_v52 = vrot.slane %v6897_v49, 9  ;;  %v10423_v17 = vmax.f32 %v6880_v6, %v8463_v18 }
 0x485   : > { %v8466_v38 = vrot.slane %v6898_v39, 9  ;;  %v6849_v56 = vcombine.high %v6801_v58, %v6801_v58  ;;  %v6856_v44 = vrot.slane %v6801_v58, %v9356_v0  ;;  %v8456_v57 = vrot.slane %v6848_v30, 9 }
 0x486   : > { %v8468_v48 = vrot.slane %v6899_v46, 9  ;;  %v7372_v10 = vmax.f32 %v6890_v12, %v8465_v29  ;;  %v10426_v61 = vmax.f32 %v6897_v49, %v8467_v52  ;;  %v7371_v32 = vmax.f32 %v6882_v14, %v8464_v43 }
 0x487   : > { %v7373_v37 = vmax.f32 %v6898_v39, %v8466_v38  ;;  %v6863_v24 = vrot.slane %v6849_v56, %v9356_v0  ;;  %v6864_v55 = vcombine.high %v6856_v44, %v6856_v44  ;;  %v8457_v62 = vrot.slane %v6856_v44, 9 }
 0x488   : > { %v7375_v4 = vmax.f32 %v6899_v46, %v8468_v48  ;;  %v7428_v1 = vmax.f32 %v7368_v36, %v7372_v10  ;;  %v7430_v22 = vmax.f32 %v10423_v17, %v10426_v61  ;;  %v7361_v33 = vmax.f32 %v6847_v23, %v8454_v21 }
 0x489   : > { %v7429_v26 = vmax.f32 %v10421_v42, %v7373_v37  ;;  %v6865_v7 = vcombine.high %v6863_v24, %v6863_v24  ;;  %v8458_v9 = vrot.slane %v6864_v55, 9  ;;  %v8459_v31 = vrot.slane %v6863_v24, 9 }
 0x48a   : > { %v8740_v47 = vpop.f32.mrb[4].mxu1  ;;  %v7362_v28 = vmax.f32 %v6846_v41, %v8455_v25  ;;  %v7431_v54 = vmax.f32 %v7371_v32, %v7375_v4  ;;  %v7364_v8 = vmax.f32 %v6856_v44, %v8457_v62  ;;  %v7363_v63 = vmax.f32 %v6848_v30, %v8456_v57 }
 0x48b   : > { %v6714_v51 = vpop.f32.mrb[5].mxu1  ;;  %v8460_v15 = vrot.slane %v6865_v7, 9  ;;  %v7365_v27 = vmax.f32 %v6864_v55, %v8458_v9  ;;  %v7366_v20 = vmax.f32 %v6863_v24, %v8459_v31  ;;  %v7491_v19 = vrot.slane %v7428_v1, %v10418_v5 }
 0x48c   : > { %v8741_v53 = vpop.f32.mrb[6].mxu1  ;;  %v7424_v2 = vmax.f32 %v7360_v45, %v7364_v8  ;;  %v6790_v59 = vadd.f32 %v8740_v47, %v10406_v50  ;;  %v6788_v11 = vadd.f32 %v10406_v50, %v6714_v51  ;;  %v7495_v61 = vrot.slane %v7429_v26, %v10418_v5 }
 0x48d   : > { %v6717_v40 = vpop.f32.mrb[7].mxu1  ;;  %v7367_v35 = vmax.f32 %v6865_v7, %v8460_v15  ;;  %v7425_v6 = vmax.f32 %v7361_v33, %v7365_v27  ;;  %v7426_v13 = vmax.f32 %v7362_v28, %v7366_v20  ;;  %v6791_v60 = vadd.f32 %v8741_v53, %v10406_v50 }
 0x48e   : > { %v7475_v16 = vrot.slane %v7424_v2, %v10418_v5  ;;  %v6806_v41 = vmax.f32 %v6790_v59, 0.0  ;;  %v6804_v23 = vmax.f32 %v6788_v11, 0.0  ;;  %v6789_v3 = vadd.f32 %v10406_v50, %v6717_v40 }
 0x48f   : > { %v7427_v12 = vmax.f32 %v7363_v63, %v7367_v35  ;;  %v7479_v14 = vrot.slane %v7425_v6, %v10418_v5  ;;  %v7483_v34 = vrot.slane %v7426_v13, %v10418_v5  ;;  %v6807_v18 = vmax.f32 %v6791_v60, 0.0 }
 0x490   : > { %v6934_v58 = vcombine.high %v6806_v41, %v6806_v41  ;;  %v6941_v36 = vrot.slane %v6806_v41, %v9356_v0  ;;  %v6900_v30 = vcombine.high %v6804_v23, %v6804_v23  ;;  %v6907_v21 = vrot.slane %v6804_v23, %v9356_v0 }
 0x491   : > { %v7487_v49 = vrot.slane %v7427_v12, %v10418_v5  ;;  %v7537_v43 = vsel %vm7536_vm0, %v7479_v14, %v7475_v16  ;;  %v6951_v25 = vcombine.high %v6807_v18, %v6807_v18  ;;  %v6958_v45 = vrot.slane %v6807_v18, %v9356_v0 }
 0x492   : > { %v7538_v39 = vsel %vm4003_vm7, %v7483_v34, %v7537_v43  ;;  %v6948_v42 = vrot.slane %v6934_v58, %v9356_v0  ;;  %v6949_v46 = vcombine.high %v6941_v36, %v6941_v36  ;;  %v8477_v29 = vrot.slane %v6941_v36, 9 }
 0x493   : > { %v7539_v52 = vsel %vm4006_vm8, %v7487_v49, %v7538_v39  ;;  %v6914_v17 = vrot.slane %v6900_v30, %v9356_v0  ;;  %v6915_v38 = vcombine.high %v6907_v21, %v6907_v21  ;;  %v8469_v56 = vrot.slane %v6907_v21, 9 }
 0x494   : > { %v7540_v44 = vsel %vm4009_vm9, %v7491_v19, %v7539_v52  ;;  %v6950_v57 = vcombine.high %v6948_v42, %v6948_v42  ;;  %v8478_v48 = vrot.slane %v6949_v46, 9  ;;  %v8479_v10 = vrot.slane %v6948_v42, 9 }
 0x495   : > { %v10452_v37 = vrot.slane %v7430_v22, %v10418_v5  ;;  %v6916_v24 = vcombine.high %v6914_v17, %v6914_v17  ;;  %v8470_v55 = vrot.slane %v6915_v38, 9  ;;  %v10455_v62 = vrot.slane %v7431_v54, %v10418_v5 }
 0x496   : > { %v8480_v32 = vrot.slane %v6950_v57, 9  ;;  %v7384_v4 = vmax.f32 %v6941_v36, %v8477_v29  ;;  %v8471_v1 = vrot.slane %v6914_v17, 9  ;;  %v7385_v47 = vmax.f32 %v6949_v46, %v8478_v48 }
 0x497   : > { %v7386_v7 = vmax.f32 %v6948_v42, %v8479_v10  ;;  %v7376_v9 = vmax.f32 %v6907_v21, %v8469_v56  ;;  %v6965_v31 = vrot.slane %v6951_v25, %v9356_v0  ;;  %v8472_v51 = vrot.slane %v6916_v24, 9 }
 0x498   : > { %v6966_v33 = vcombine.high %v6958_v45, %v6958_v45  ;;  %v8481_v28 = vrot.slane %v6958_v45, 9  ;;  %v6805_v26 = vmax.f32 %v6789_v3, 0.0  ;;  %v7377_v8 = vmax.f32 %v6915_v38, %v8470_v55 }
 0x499   : > { %v6967_v22 = vcombine.high %v6965_v31, %v6965_v31  ;;  %v8483_v53 = vrot.slane %v6965_v31, 9  ;;  %v10459_v15 = vsel %vm4012_vm10, %v7495_v61, %v7540_v44  ;;  %v10462_v2 = vmax.f32 %v6950_v57, %v8480_v32 }
 0x49a   : > { %v8744_v63 = vpop.f32.mrb[8].mxu1  ;;  %v8482_v54 = vrot.slane %v6966_v33, 9  ;;  %v7388_v27 = vmax.f32 %v6958_v45, %v8481_v28  ;;  %v6917_v20 = vcombine.high %v6805_v26, %v6805_v26  ;;  %v6924_v40 = vrot.slane %v6805_v26, %v9356_v0 }
 0x49b   : > { %v6730_v19 = vpop.f32.mrb[9].mxu1  ;;  %v8484_v59 = vrot.slane %v6967_v22, 9  ;;  %v7390_v11 = vmax.f32 %v6965_v31, %v8483_v53  ;;  %v6794_v35 = vadd.f32 %v8744_v63, %v10406_v50  ;;  %v7378_v21 = vmax.f32 %v6914_v17, %v8471_v1 }
 0x49c   : > { %v8745_v6 = vpop.f32.mrb[10].mxu1  ;;  %v7389_v13 = vmax.f32 %v6966_v33, %v8482_v54  ;;  %v7436_v60 = vmax.f32 %v7384_v4, %v7388_v27  ;;  %v6931_v16 = vrot.slane %v6917_v20, %v9356_v0  ;;  %v6932_v41 = vcombine.high %v6924_v40, %v6924_v40 }
 0x49d   : > { %v6733_v23 = vpop.f32.mrb[11].mxu1  ;;  %v10466_v3 = vmax.f32 %v6967_v22, %v8484_v59  ;;  %v7438_v12 = vmax.f32 %v7386_v7, %v7390_v11  ;;  %v8473_v14 = vrot.slane %v6924_v40, 9  ;;  %v6810_v34 = vmax.f32 %v6794_v35, 0.0 }
 0x49e   : > { %v7437_v18 = vmax.f32 %v7385_v47, %v7389_v13  ;;  %v6933_v58 = vcombine.high %v6931_v16, %v6931_v16  ;;  %v8474_v36 = vrot.slane %v6932_v41, 9  ;;  %v6792_v30 = vadd.f32 %v10406_v50, %v6730_v19 }
 0x49f   : > { %v7439_v49 = vmax.f32 %v10462_v2, %v10466_v3  ;;  %v8475_v43 = vrot.slane %v6931_v16, 9  ;;  %v7380_v25 = vmax.f32 %v6924_v40, %v8473_v14  ;;  %v7379_v45 = vmax.f32 %v6916_v24, %v8472_v51 }
 0x4a0   : > { %v8476_v39 = vrot.slane %v6933_v58, 9  ;;  %v7381_v42 = vmax.f32 %v6932_v41, %v8474_v36  ;;  %v7002_v46 = vcombine.high %v6810_v34, %v6810_v34  ;;  %v7523_v29 = vrot.slane %v7436_v60, %v10418_v5 }
 0x4a1   : > { %v7382_v52 = vmax.f32 %v6931_v16, %v8475_v43  ;;  %v7432_v38 = vmax.f32 %v7376_v9, %v7380_v25  ;;  %v7009_v56 = vrot.slane %v6810_v34, %v9356_v0  ;;  %v6808_v17 = vmax.f32 %v6792_v30, 0.0 }
 0x4a2   : > { %v7383_v44 = vmax.f32 %v6933_v58, %v8476_v39  ;;  %v7433_v57 = vmax.f32 %v7377_v8, %v7381_v42  ;;  %v7016_v48 = vrot.slane %v7002_v46, %v9356_v0  ;;  %v10477_v7 = vrot.slane %v7437_v18, %v10418_v5 }
 0x4a3   : > { %v7434_v10 = vmax.f32 %v7378_v21, %v7382_v52  ;;  %v7507_v61 = vrot.slane %v7432_v38, %v10418_v5  ;;  %v7017_v55 = vcombine.high %v7009_v56, %v7009_v56  ;;  %v8493_v32 = vrot.slane %v7009_v56, 9 }
 0x4a4   : > { %v7435_v24 = vmax.f32 %v7379_v45, %v7383_v44  ;;  %v7511_v4 = vrot.slane %v7433_v57, %v10418_v5  ;;  %v7018_v1 = vcombine.high %v7016_v48, %v7016_v48  ;;  %v8495_v47 = vrot.slane %v7016_v48, 9 }
 0x4a5   : > { %v10480_v9 = vrot.slane %v7438_v12, %v10418_v5  ;;  %v7515_v31 = vrot.slane %v7434_v10, %v10418_v5  ;;  %v6968_v51 = vcombine.high %v6808_v17, %v6808_v17  ;;  %v8494_v26 = vrot.slane %v7017_v55, 9 }
 0x4a6   : > { %v7519_v33 = vrot.slane %v7435_v24, %v10418_v5  ;;  %v7544_v28 = vsel %vm7536_vm0, %v7511_v4, %v7507_v61  ;;  %v10485_v8 = vmax.f32 %v7009_v56, %v8493_v32  ;;  %v8496_v53 = vrot.slane %v7018_v1, 9 }
 0x4a7   : > { %v7545_v22 = vsel %vm4003_vm7, %v7515_v31, %v7544_v28  ;;  %v6975_v63 = vrot.slane %v6808_v17, %v9356_v0  ;;  %v6982_v54 = vrot.slane %v6968_v51, %v9356_v0  ;;  %v10491_v20 = vmax.f32 %v7016_v48, %v8495_v47 }
 0x4a8   : > { %v7546_v27 = vsel %vm4006_vm8, %v7519_v33, %v7545_v22  ;;  %v6795_v40 = vadd.f32 %v8745_v6, %v10406_v50  ;;  %v6793_v19 = vadd.f32 %v10406_v50, %v6733_v23  ;;  %v8748_v59 = vpop.f32.mrb[12].mxu1  ;;  %v7401_v58 = vmax.f32 %v7017_v55, %v8494_v26 }
 0x4a9   : > { %v10496_v11 = vsel %vm4009_vm9, %v7523_v29, %v7546_v27  ;;  %v6983_v35 = vcombine.high %v6975_v63, %v6975_v63  ;;  %v6984_v13 = vcombine.high %v6982_v54, %v6982_v54  ;;  %v8485_v60 = vrot.slane %v6975_v63, 9  ;;  %v6746_v16 = vpop.f32.mrb[13].mxu1 }
 0x4aa   : > { %v8487_v41 = vrot.slane %v6982_v54, 9  ;;  %v6811_v12 = vmax.f32 %v6795_v40, 0.0  ;;  %v6809_v14 = vmax.f32 %v6793_v19, 0.0  ;;  %v6798_v34 = vadd.f32 %v8748_v59, %v10406_v50  ;;  %v10499_v18 = vpop.f32.mrb[14].mxu1 }
 0x4ab   : > { %v10501_v36 = vmax.f32 %v7018_v1, %v8496_v53  ;;  %v8486_v6 = vrot.slane %v6983_v35, 9  ;;  %v8488_v23 = vrot.slane %v6984_v13, 9  ;;  %v10503_v30 = vpop.f32.mrb[15].mxu1  ;;  %v7392_v21 = vmax.f32 %v6975_v63, %v8485_v60 }
 0x4ac   : > { %v7019_v43 = vcombine.high %v6811_v12, %v6811_v12  ;;  %v7026_v25 = vrot.slane %v6811_v12, %v9356_v0  ;;  %v6985_v45 = vcombine.high %v6809_v14, %v6809_v14  ;;  %v7394_v42 = vmax.f32 %v6982_v54, %v8487_v41 }
 0x4ad   : > { %v7393_v39 = vmax.f32 %v6983_v35, %v8486_v6  ;;  %v6992_v46 = vrot.slane %v6809_v14, %v9356_v0  ;;  %v6814_v29 = vmax.f32 %v6798_v34, 0.0  ;;  %v6796_v59 = vadd.f32 %v10406_v50, %v6746_v16 }
 0x4ae   : > { %v7033_v52 = vrot.slane %v7019_v43, %v9356_v0  ;;  %v7034_v38 = vcombine.high %v7026_v25, %v7026_v25  ;;  %v8497_v56 = vrot.slane %v7026_v25, 9  ;;  %v6999_v44 = vrot.slane %v6985_v45, %v9356_v0 }
 0x4af   : > { %v7000_v57 = vcombine.high %v6992_v46, %v6992_v46  ;;  %v8489_v48 = vrot.slane %v6992_v46, 9  ;;  %v7070_v17 = vcombine.high %v6814_v29, %v6814_v29  ;;  %v7077_v10 = vrot.slane %v6814_v29, %v9356_v0 }
 0x4b0   : > { %v7035_v61 = vcombine.high %v7033_v52, %v7033_v52  ;;  %v8498_v55 = vrot.slane %v7034_v38, 9  ;;  %v8499_v32 = vrot.slane %v7033_v52, 9  ;;  %v7404_v24 = vmax.f32 %v7026_v25, %v8497_v56 }
 0x4b1   : > { %v7001_v4 = vcombine.high %v6999_v44, %v6999_v44  ;;  %v8490_v1 = vrot.slane %v7000_v57, 9  ;;  %v8491_v47 = vrot.slane %v6999_v44, 9  ;;  %v7396_v31 = vmax.f32 %v6992_v46, %v8489_v48 }
 0x4b2   : > { %v8500_v51 = vrot.slane %v7035_v61, 9  ;;  %v7405_v33 = vmax.f32 %v7034_v38, %v8498_v55  ;;  %v7406_v28 = vmax.f32 %v7033_v52, %v8499_v32  ;;  %v7444_v26 = vmax.f32 %v10485_v8, %v7404_v24 }
 0x4b3   : > { %v8492_v22 = vrot.slane %v7001_v4, 9  ;;  %v7397_v53 = vmax.f32 %v7000_v57, %v8490_v1  ;;  %v7398_v63 = vmax.f32 %v6999_v44, %v8491_v47  ;;  %v7440_v54 = vmax.f32 %v7392_v21, %v7396_v31 }
 0x4b4   : > { %v10511_v27 = vmax.f32 %v7035_v61, %v8500_v51  ;;  %v7445_v40 = vmax.f32 %v7401_v58, %v7405_v33  ;;  %v7446_v19 = vmax.f32 %v10491_v20, %v7406_v28  ;;  %v7395_v35 = vmax.f32 %v6984_v13, %v8488_v23 }
 0x4b5   : > { %v7399_v60 = vmax.f32 %v7001_v4, %v8492_v22  ;;  %v7441_v41 = vmax.f32 %v7393_v39, %v7397_v53  ;;  %v7442_v12 = vmax.f32 %v7394_v42, %v7398_v63  ;;  %v7535_v8 = vrot.slane %v7439_v49, %v10418_v5 }
 0x4b6   : > { %v7447_v14 = vmax.f32 %v10501_v36, %v10511_v27  ;;  %v7579_v34 = vrot.slane %v7440_v54, %v10418_v5  ;;  %v7084_v58 = vrot.slane %v7070_v17, %v9356_v0  ;;  %v7085_v16 = vcombine.high %v7077_v10, %v7077_v10 }
 0x4b7   : > { %v7443_v6 = vmax.f32 %v7395_v35, %v7399_v60  ;;  %v7583_v20 = vrot.slane %v7441_v41, %v10418_v5  ;;  %v7587_v13 = vrot.slane %v7442_v12, %v10418_v5  ;;  %v7595_v23 = vrot.slane %v7444_v26, %v10418_v5 }
 0x4b8   : > { %v10526_v21 = vcombine.high %v7084_v58, %v7084_v58  ;;  %v8509_v43 = vrot.slane %v7077_v10, 9  ;;  %v8511_v2 = vrot.slane %v7084_v58, 9  ;;  %v10529_v3 = vrot.slane %v7445_v40, %v10418_v5 }
 0x4b9   : > { %v7591_v49 = vrot.slane %v7443_v6, %v10418_v5  ;;  %v7640_v25 = vsel %vm7536_vm0, %v7583_v20, %v7579_v34  ;;  %v6812_v45 = vmax.f32 %v6796_v59, 0.0  ;;  %v10534_v39 = vrot.slane %v7446_v19, %v10418_v5 }
 0x4ba   : > { %v7641_v42 = vsel %vm4003_vm7, %v7587_v13, %v7640_v25  ;;  %v8510_v46 = vrot.slane %v7085_v16, 9  ;;  %v8512_v29 = vrot.slane %v10526_v21, 9  ;;  %v10539_v38 = vmax.f32 %v7077_v10, %v8509_v43 }
 0x4bb   : > { %v7642_v52 = vsel %vm4006_vm8, %v7591_v49, %v7641_v42  ;;  %v7036_v56 = vcombine.high %v6812_v45, %v6812_v45  ;;  %v7043_v44 = vrot.slane %v6812_v45, %v9356_v0  ;;  %v10545_v48 = vmax.f32 %v7084_v58, %v8511_v2 }
 0x4bc   : > { %v10543_v57 = vsel %vm4009_vm9, %v7595_v23, %v7642_v52  ;;  %v6799_v17 = vadd.f32 %v10499_v18, %v10406_v50  ;;  %v6797_v61 = vadd.f32 %v10406_v50, %v10503_v30  ;;  %v7542_v10 = vsel %vm4015_vm11, %v10452_v37, %v10459_v15 }
 0x4bd   : > { %v7050_v55 = vrot.slane %v7036_v56, %v9356_v0  ;;  %v7051_v32 = vcombine.high %v7043_v44, %v7043_v44  ;;  %v8501_v24 = vrot.slane %v7043_v44, 9  ;;  %v7543_v47 = vsel %vm4018_vm12, %v10455_v62, %v7542_v10 }
 0x4be   : > { %v6815_v4 = vmax.f32 %v6799_v17, 0.0  ;;  %v6813_v1 = vmax.f32 %v6797_v61, 0.0  ;;  %v7548_v18 = vsel %vm4012_vm10, %v10477_v7, %v10496_v11  ;;  %v7417_v31 = vmax.f32 %v7085_v16, %v8510_v46 }
 0x4bf   : > { %v7052_v51 = vcombine.high %v7050_v55, %v7050_v55  ;;  %v8502_v50 = vrot.slane %v7051_v32, 9  ;;  %v8503_v30 = vrot.slane %v7050_v55, 9  ;;  %v7408_v15 = vmax.f32 %v7043_v44, %v8501_v24 }
 0x4c0   : > { %v7087_v33 = vcombine.high %v6815_v4, %v6815_v4  ;;  %v7094_v28 = vrot.slane %v6815_v4, %v9356_v0  ;;  %v7053_v26 = vcombine.high %v6813_v1, %v6813_v1  ;;  %v7060_v22 = vrot.slane %v6813_v1, %v9356_v0 }
 0x4c1   : > { %v8504_v37 = vrot.slane %v7052_v51, 9  ;;  %v7409_v53 = vmax.f32 %v7051_v32, %v8502_v50  ;;  %v7549_v62 = vsel %vm4015_vm11, %v10480_v9, %v7548_v18  ;;  %v7410_v40 = vmax.f32 %v7050_v55, %v8503_v30 }
 0x4c2   : > { %v7101_v63 = vrot.slane %v7087_v33, %v9356_v0  ;;  %v7102_v54 = vcombine.high %v7094_v28, %v7094_v28  ;;  %v8513_v7 = vrot.slane %v7094_v28, 9  ;;  %v7067_v11 = vrot.slane %v7053_v26, %v9356_v0 }
 0x4c3   : > { %v7068_v19 = vcombine.high %v7060_v22, %v7060_v22  ;;  %v8505_v59 = vrot.slane %v7060_v22, 9  ;;  %v7550_v35 = vsel %vm4018_vm12, %v7535_v8, %v7549_v62  ;;  %v7419_v45 = vmax.f32 %v10526_v21, %v8512_v29 }
 0x4c4   : > { %v7103_v60 = vcombine.high %v7101_v63, %v7101_v63  ;;  %v8514_v41 = vrot.slane %v7102_v54, 9  ;;  %v8515_v12 = vrot.slane %v7101_v63, 9  ;;  %v7420_v34 = vmax.f32 %v7094_v28, %v8513_v7 }
 0x4c5   : > { %v7069_v58 = vcombine.high %v7067_v11, %v7067_v11  ;;  %v8506_v6 = vrot.slane %v7068_v19, 9  ;;  %v8507_v20 = vrot.slane %v7067_v11, 9  ;;  %v7412_v13 = vmax.f32 %v7060_v22, %v8505_v59 }
 0x4c6   : > { %v8516_v9 = vrot.slane %v7103_v60, 9  ;;  %v7421_v16 = vmax.f32 %v7102_v54, %v8514_v41  ;;  %v7422_v23 = vmax.f32 %v7101_v63, %v8515_v12  ;;  %v7452_v43 = vmax.f32 %v10539_v38, %v7420_v34 }
 0x4c7   : > { %v8508_v2 = vrot.slane %v7069_v58, 9  ;;  %v7413_v0 = vmax.f32 %v7068_v19, %v8506_v6  ;;  %v7414_v49 = vmax.f32 %v7067_v11, %v8507_v20  ;;  %v7448_v25 = vmax.f32 %v7408_v15, %v7412_v13 }
 0x4c8   : > { %v7423_v8 = vmax.f32 %v7103_v60, %v8516_v9  ;;  %v7453_v42 = vmax.f32 %v7417_v31, %v7421_v16  ;;  %v7454_v46 = vmax.f32 %v10545_v48, %v7422_v23  ;;  %v7411_v52 = vmax.f32 %v7052_v51, %v8504_v37 }
 0x4c9   : > { %v7415_v56 = vmax.f32 %v7069_v58, %v8508_v2  ;;  %v7449_v44 = vmax.f32 %v7409_v53, %v7413_v0  ;;  %v7450_v17 = vmax.f32 %v7410_v40, %v7414_v49  ;;  %v7607_v61 = vrot.slane %v7447_v14, %v10418_v5 }
 0x4ca   : > { %v7455_v38 = vmax.f32 %v7419_v45, %v7423_v8  ;;  %v7611_v55 = vrot.slane %v7448_v25, %v10418_v5  ;;  %v7553_v32 = vadd.f32 %v7550_v35, %v7543_v47  ;;  %v7644_v48 = vsel %vm4012_vm10, %v10529_v3, %v10543_v57 }
 0x4cb   : > { %v7451_v24 = vmax.f32 %v7411_v52, %v7415_v56  ;;  %v7615_v21 = vrot.slane %v7449_v44, %v10418_v5  ;;  %v7619_v29 = vrot.slane %v7450_v17, %v10418_v5  ;;  %v7645_v10 = vsel %vm4015_vm11, %v10534_v39, %v7644_v48 }
 0x4cc   : > { %v7646_v27 = vsel %vm4018_vm12, %v7607_v61, %v7645_v10  ;;  %v7627_v14 = vrot.slane %v7452_v43, %v10418_v5  ;;  %v7554_v47 = vrot.slane %v7553_v32, 4  ;;  %v7631_v18 = vrot.slane %v7453_v42, %v10418_v5 }
 0x4cd   : > { %v7623_v4 = vrot.slane %v7451_v24, %v10418_v5  ;;  %v7647_v36 = vsel %vm7536_vm0, %v7615_v21, %v7611_v55  ;;  %v7635_v3 = vrot.slane %v7454_v46, %v10418_v5  ;;  %v7639_v57 = vrot.slane %v7455_v38, %v10418_v5 }
 0x4ce   : > { %v7648_v1 = vsel %vm4003_vm7, %v7619_v29, %v7647_v36  ;;  %v7555_v50 = vadd.f32 %v7554_v47, %v7553_v32 }
 0x4cf   : > { %v7649_v31 = vsel %vm4006_vm8, %v7623_v4, %v7648_v1 }
 0x4d0   : > { %v7650_v39 = vsel %vm4009_vm9, %v7627_v14, %v7649_v31  ;;  %v7556_v26 = vrot.slane %v7555_v50, 2 }
 0x4d1   : > { %v7651_v51 = vsel %vm4012_vm10, %v7631_v18, %v7650_v39 }
 0x4d2   : > { %v7652_v30 = vsel %vm4015_vm11, %v7635_v3, %v7651_v51  ;;  %v7557_v15 = vadd.f32 %v7556_v26, %v7555_v50 }
 0x4d3   : > { %v7653_v33 = vsel %vm4018_vm12, %v7639_v57, %v7652_v30 }
 0x4d4   : > { %v7656_v28 = vadd.f32 %v7653_v33, %v7646_v27  ;;  %v7558_v63 = vrot.slane %v7557_v15, 1 }
 0x4d6   : > { %v7657_v22 = vrot.slane %v7656_v28, 4  ;;  %v7559_v7 = vadd.f32 %v7558_v63, %v7557_v15 }
 0x4d8   : > { %v7658_v37 = vadd.f32 %v7657_v22, %v7656_v28 }
 0x4da   : > { %v7659_v53 = vrot.slane %v7658_v37, 2 }
 0x4dc   : > { %v7660_v62 = vadd.f32 %v7659_v53, %v7658_v37 }
 0x4de   : > { %v7661_v54 = vrot.slane %v7660_v62, 1 }
 0x4e0   : > { %v7662_v5 = vadd.f32 %v7661_v54, %v7660_v62 }
 0x4e2   : > { %v7664_v11 = vrot.slane %v7662_v5, 7 }
 0x4e4   : > { %v7667_v40 = vsel %vm7666_vm4, %v7559_v7, %v7664_v11 }
 0x4e5   : > { %v7668_v19 = vmul.f32 0.0625, %v7667_v40 }
 0x4e7   : > { %7669 = vst [vmem:[%s220_s30] sm:$0x3] %v7668_v19 }
 0x4e8   : > { %9109 = shalt.err (!%p9106_p3)
}
 0x4e9   : > { %s9110_s23 = scalar_lea.hbm %s10600_s25, 32  ;;  %s9114_s15 = scalar_lea.hbm %s10647_s5, 64 }
 0x4ea   : > { %p9111_p4 = scmp.ne.s32.totalorder %s10600_s25, %s9110_s23  ;;  %p9115_p9 = scmp.lt.u32.totalorder %s10600_s25, %s10647_s5 }
 0x4eb   : > { %p9116_p10 = scmp.lt.u32.totalorder %s9114_s15, %s9110_s23  ;;  %p9118_p12 = scmp.lt.u32.totalorder %s9110_s23, %s10600_s25 }
 0x4ec   : > { %p9112_p7 = pnand %p9111_p4, %p9233_p5 }
 0x4ed   : > { %p9117_p11 = por %p9116_p10, %p9115_p9 }
 0x4ee   : > { %p9113_p8 = pneg %p9112_p7 }
 0x4ef   : > { %p9119_p13 = por %p9118_p12, %p9117_p11 }
 0x4f1   : > { %p9120_p0 = pnand %p9119_p13, %p9113_p8 }
 0x4f3   : > { %9123 = shalt.err (!%p9120_p0)
}
 0x4f4   : > { %8782 = dma.vmem_to_hbm [thread:$0]  (%p9233_p5), %s10602_s6, 32, %s10600_s25, %s7671_s9  }
 0x4f5 PF: > { %p8788_p1 = scmp.ge.s32.totalorder %s9158_s21, 2  ;;  %s7696_s26 = sand.u32 1, %s9146_s18  }
 0x4f6   : > { %s7697_s30 = scalar_lea.sflag [#allocation4], %s7696_s26 }
 0x4f7   : > { %p8785_p2 = pnand %p8788_p1, %p9237_p6 }
 0x4f9   : > { %9141 = dma.done.wait (!%p8785_p2), %s7697_s30, 32  }
 0x4fa   : > { %9143 = vsyncadd (!%p8785_p2), %s7697_s30, 4294967264  ;;  %p15_p3 = scmp.ge.s32.totalorder %s9220_s24, 4   ;;  %s10660_s18 = smov %s9150_s19 }
 0x4fb   : > { %s10661_s19 = smov %s9154_s20  ;;  %s10662_s20 = smov %s9231_s27 }
 0x4fc   : > { %s10663_s21 = smov %s9220_s24  ;;  %17 = sbr.rel (!%p15_p3) target bundleno = 3 (0x3), region = 80 }
 0x503   :  { %7702 = vsyncpa [#allocation4], 1 }
 0x504   :  { %7704 = vsyncpa [#allocation4 + $0x1], 1 }

</bundles_post_ra>
